<compile_context>
chip_gen: v7x
topology: tpu7x:2x2x1
jax: 0.10.0
libtpu: 0.0.40
codegen_flags: <defaults>
</compile_context>

<pallas_src>
import functools

import numpy as np

import jax
import jax.numpy as jnp
from jax.experimental import pallas as pl
from jax.experimental.pallas import tpu as pltpu


_LN_EPS = 1e-5
_NEG_SLOPE = 0.2


def _round_up(x, m):
    return ((x + m - 1) // m) * m


def _leaky(h):
    return jnp.where(h >= 0, h, h * _NEG_SLOPE)


# ---------------------------------------------------------------------------
# Fused decoder kernel (whole MSDecoder, activations never leave VMEM/vregs)
# ---------------------------------------------------------------------------

def _decoder_kernel(nmax, block_plan, fc_plan, x_ref, w_ref, p_ref, o_ref):
    """block_plan: tuple of (dout, w1_off, w2_off, w3_off, param_row, interp_off)
       fc_plan   : (fc_w_off, fc_b_row).  All offsets are static Python ints."""
    f32 = jnp.float32

    def row(r):                      # (1, Nmax) f32 broadcast row from the param slab
        return p_ref[r:r + 1, :]

    h = x_ref[...]                   # (TB, Nmax) f32, zero padded beyond in_dim
    hb = h.astype(jnp.bfloat16)      # each activation is cast to bf16 exactly once

    for (dout, w1o, w2o, w3o, pr, po) in block_plan:
        x_in, x_in_b = h, hb
        mask = row(pr)               # 1.0 on the first `dout` lanes, 0.0 beyond
        inv_d = 1.0 / dout

        def ln(t, g_row, b_row):
            # Padded lanes of t are exactly 0, so full-width sums are correct with
            # the true divisor; centering uses the mask so padded lanes stay 0.
            mu = jnp.sum(t, axis=-1, keepdims=True) * inv_d
            d = (t - mu) * mask
            var = jnp.sum(d * d, axis=-1, keepdims=True) * inv_d
            return d * jax.lax.rsqrt(var + _LN_EPS) * row(g_row) + row(b_row)

        t = jnp.dot(x_in_b, w_ref[w1o:w1o + nmax, :], preferred_element_type=f32)
        t = _leaky(ln(t, pr + 1, pr + 2))
        t = jnp.dot(t.astype(jnp.bfloat16), w_ref[w2o:w2o + nmax, :],
                    preferred_element_type=f32)
        t = _leaky(ln(t, pr + 3, pr + 4))
        t = jnp.dot(t.astype(jnp.bfloat16), w_ref[w3o:w3o + nmax, :],
                    preferred_element_type=f32)
        t = ln(t, pr + 5, pr + 6)

        if po < 0:
            res = x_in               # interpolate(in_dim == out_dim) is the identity
        else:
            # Pre-baked 0/1 selection matrix, f32 matmul keeps the residual exact.
            res = jnp.dot(x_in, p_ref[po:po + nmax, :], preferred_element_type=f32)

        # TODO(synk): Dropout omitted (inference/eval semantics: identity).
        h = _leaky(t + res)
        hb = h.astype(jnp.bfloat16)

    fc_w_off, fc_b_row = fc_plan
    out = jnp.dot(hb, w_ref[fc_w_off:fc_w_off + nmax, :],
                  preferred_element_type=f32) + row(fc_b_row)
    o_ref[...] = out.astype(o_ref.dtype)


# ---------------------------------------------------------------------------
# Wrapper: pack params into 2 slabs, pad batch, launch one fused pallas_call
# ---------------------------------------------------------------------------

@jax.jit
def ms_decoder_forward(params, x):
    blocks = params["blocks"]
    nblocks = len(blocks)
    dims = [(b["w1"].shape[0], b["w1"].shape[1]) for b in blocks]
    in_dim = dims[0][0]
    out_dim = params["fc_w"].shape[1]
    nmax = _round_up(max([in_dim, out_dim] + [d for _, d in dims]), 128)

    # ---- batch padding (bf16 packs 16 sublanes) and batch tiling --------------
    B = x.shape[0]
    TB = 256
    Bp = max(16, _round_up(B, 16))
    if Bp <= TB:
        TB = Bp
    else:
        Bp = _round_up(Bp, TB)
    x_p = jnp.zeros((Bp, nmax), jnp.float32).at[:B, :in_dim].set(x.astype(jnp.float32))

    # ---- bf16 weight slab: [w1,w2,w3]*blocks + fc_w, each in an (Nmax,Nmax) tile
    n_w = 3 * nblocks + 1
    w_slab = jnp.zeros((n_w * nmax, nmax), jnp.bfloat16)
    w_offs, cur = [], 0
    for b in blocks:
        offs = []
        for name in ("w1", "w2", "w3"):
            w = b[name]
            w_slab = w_slab.at[cur:cur + w.shape[0], :w.shape[1]].set(
                w.astype(jnp.bfloat16))
            offs.append(cur)
            cur += nmax
        w_offs.append(offs)
    fc_w = params["fc_w"]
    w_slab = w_slab.at[cur:cur + fc_w.shape[0], :out_dim].set(fc_w.astype(jnp.bfloat16))
    fc_w_off = cur

    # ---- f32 param slab: [interp P blocks | per-block (mask,g1,b1,g2,b2,g3,b3) | fc_b]
    interp_offs, p_rows = [], 0
    for din, dout in dims:
        if din == dout:
            interp_offs.append(-1)
        else:
            interp_offs.append(p_rows)
            p_rows += nmax
    prow_offs = []
    for _ in range(nblocks):
        prow_offs.append(p_rows)
        p_rows += 8                     # 7 rows used, padded to the 8-sublane quantum
    fcb_row = p_rows
    p_rows += 8

    base = np.zeros((p_rows, nmax), np.float32)   # static part -> folded to a constant
    for (din, dout), po, pr in zip(dims, interp_offs, prow_offs):
        if po >= 0:
            idx = (np.arange(dout) * din) // dout      # PyTorch nearest interpolate
            base[po + idx, np.arange(dout)] = 1.0
        base[pr, :dout] = 1.0                          # LayerNorm lane mask
    p_slab = jnp.asarray(base)
    for b, pr, (_, dout) in zip(blocks, prow_offs, dims):
        for j, name in enumerate(("g1", "b1", "g2", "b2", "g3", "b3")):
            p_slab = p_slab.at[pr + 1 + j:pr + 2 + j, :dout].set(
                b[name].astype(jnp.float32))
    p_slab = p_slab.at[fcb_row:fcb_row + 1, :out_dim].set(
        params["fc_b"].astype(jnp.float32))

    block_plan = tuple(
        (dout, wo[0], wo[1], wo[2], pr, po)
        for (din, dout), wo, pr, po in zip(dims, w_offs, prow_offs, interp_offs))
    fc_plan = (fc_w_off, fcb_row)

    # ---- footprint-derived VMEM limit (v7x: 64 MiB per TC) --------------------
    w_bytes = n_w * nmax * nmax * 2
    p_bytes = p_rows * nmax * 4
    act_bytes = TB * nmax * 4
    vmem_limit = int(min(64 << 20,
                         max(16 << 20, 2 * (w_bytes + p_bytes + 2 * act_bytes) + (4 << 20))))

    n_interp = sum(1 for po in interp_offs if po >= 0)
    flops = (3 * nblocks + 1 + n_interp) * 2 * Bp * nmax * nmax
    trans = 3 * nblocks * Bp
    bytes_accessed = Bp * nmax * 4 * 2 + w_bytes + p_bytes

    grid = (Bp // TB,)
    out_p = pl.pallas_call(
        functools.partial(_decoder_kernel, nmax, block_plan, fc_plan),
        out_shape=jax.ShapeDtypeStruct((Bp, nmax), jnp.float32),
        grid=grid,
        in_specs=[
            pl.BlockSpec((TB, nmax), lambda i: (i, 0)),
            pl.BlockSpec((n_w * nmax, nmax), lambda i: (0, 0)),   # VMEM-resident
            pl.BlockSpec((p_rows, nmax), lambda i: (0, 0)),       # VMEM-resident
        ],
        out_specs=pl.BlockSpec((TB, nmax), lambda i: (i, 0)),
        cost_estimate=pl.CostEstimate(flops=int(flops),
                                      transcendentals=int(trans),
                                      bytes_accessed=int(bytes_accessed)),
        compiler_params=pltpu.CompilerParams(
            dimension_semantics=("parallel",),
            vmem_limit_bytes=vmem_limit),
    )(x_p, w_slab, p_slab)
    return out_p[:B, :out_dim]


# ---------------------------------------------------------------------------
# Deterministic parameter init (kaiming_normal_ fan_in, a=0.2; LN weight=1/bias=0)
# ---------------------------------------------------------------------------

def _kaiming_normal(key, in_dim, out_dim, a=0.2, dtype=jnp.bfloat16):
    gain = (2.0 / (1.0 + a * a)) ** 0.5
    std = gain / (in_dim ** 0.5)
    w = std * jax.random.normal(key, (in_dim, out_dim), dtype=jnp.float32)
    return w.astype(dtype)                       # weights stored in bf16


def init_fc_res_block(key, in_dim, out_dim):
    k1, k2, k3 = jax.random.split(key, 3)
    ones = jnp.ones((1, out_dim), jnp.float32)
    zeros = jnp.zeros((1, out_dim), jnp.float32)
    return {
        "w1": _kaiming_normal(k1, in_dim, out_dim),
        "w2": _kaiming_normal(k2, out_dim, out_dim),
        "w3": _kaiming_normal(k3, out_dim, out_dim),
        "g1": ones, "b1": zeros,
        "g2": ones, "b2": zeros,
        "g3": ones, "b3": zeros,
    }


def init_ms_decoder(key, in_dim, layers, out_dim):
    keys = jax.random.split(key, len(layers) + 2)
    blocks = [init_fc_res_block(keys[0], in_dim, layers[0])]
    for i in range(len(layers) - 1):
        blocks.append(init_fc_res_block(keys[i + 1], layers[i], layers[i + 1]))
    fc_w = _kaiming_normal(keys[-2], layers[-1], out_dim)
    bound = 1.0 / (layers[-1] ** 0.5)   # nn.Linear default bias init
    fc_b = jax.random.uniform(keys[-1], (1, out_dim), jnp.float32,
                              minval=-bound, maxval=bound)
    return {"blocks": blocks, "fc_w": fc_w, "fc_b": fc_b}


# ---------------------------------------------------------------------------
# Pure-JAX reference with the same mixed-precision policy (sanity check)
# ---------------------------------------------------------------------------

def _ln_ref(h, g, b):
    mu = jnp.mean(h, axis=-1, keepdims=True)
    var = jnp.mean((h - mu) ** 2, axis=-1, keepdims=True)
    return (h - mu) * jax.lax.rsqrt(var + _LN_EPS) * g + b


def _ref_block(x, p):
    din, dout = p["w1"].shape
    h = _leaky(_ln_ref(jnp.dot(x.astype(jnp.bfloat16), p["w1"],
                               preferred_element_type=jnp.float32), p["g1"], p["b1"]))
    h = _leaky(_ln_ref(jnp.dot(h.astype(jnp.bfloat16), p["w2"],
                               preferred_element_type=jnp.float32), p["g2"], p["b2"]))
    h = _ln_ref(jnp.dot(h.astype(jnp.bfloat16), p["w3"],
                        preferred_element_type=jnp.float32), p["g3"], p["b3"])
    if din == dout:
        res = x
    else:
        idx = (np.arange(dout) * din) // dout    # PyTorch nearest interpolate, exact f32
        res = x[:, idx]
    return _leaky(h + res)


def ms_decoder_ref(params, x):
    for blk in params["blocks"]:
        x = _ref_block(x, blk)
    return jnp.dot(x.astype(jnp.bfloat16), params["fc_w"],
                   preferred_element_type=jnp.float32) + params["fc_b"]


# ---------------------------------------------------------------------------
# Main
# ---------------------------------------------------------------------------

if __name__ == "__main__":
    key = jax.random.PRNGKey(0)
    kp, kx = jax.random.split(key)

    B = 2
    IN_DIM = 32
    LAYERS = [64, 128, 128]
    OUT_DIM = 256
    DROPOUT = 0.1  # inference-mode: no-op

    params = init_ms_decoder(kp, IN_DIM, LAYERS, OUT_DIM)
    x = jax.random.normal(kx, (B, IN_DIM), dtype=jnp.float32)

    out = ms_decoder_forward(params, x)
    jax.block_until_ready(out)

    ref = ms_decoder_ref(params, x)
    assert out.shape == (B, OUT_DIM), out.shape
    assert jnp.allclose(out, ref, atol=2e-3, rtol=2e-3), \
        f"mismatch vs JAX reference, max abs diff = {jnp.max(jnp.abs(out - ref))}"

    print("KERNEL_OK")
</pallas_src>

<mosaic_0001>
module attributes {stable_mosaic.version = 11 : i64} {
  func.func @_decoder_kernel(%arg0: i32, %arg1: memref<16x256xf32, #tpu.memory_space<vmem>>, %arg2: memref<2560x256xbf16, #tpu.memory_space<vmem>>, %arg3: memref<544x256xf32, #tpu.memory_space<vmem>>, %arg4: memref<16x256xf32, #tpu.memory_space<vmem>>) attributes {dimension_semantics = [#tpu.dimension_semantics<parallel>], iteration_bounds = array<i64: 1>, scalar_prefetch = 0 : i64, scratch_operands = 0 : i64, tpu.core_type = #tpu.core_type<tc>, window_params = [{transform_indices = @transform_0, window_bounds = array<i64: 16, 256>}, {pipeline_mode = #tpu.pipeline_mode<synchronous>, transform_indices = @transform_1, window_bounds = array<i64: 2560, 256>}, {pipeline_mode = #tpu.pipeline_mode<synchronous>, transform_indices = @transform_2, window_bounds = array<i64: 544, 256>}, {transform_indices = @transform_3, window_bounds = array<i64: 16, 256>}]} {
    %c0 = arith.constant 0 : index
    %c0_0 = arith.constant 0 : index
    %0 = vector.load %arg1[%c0, %c0_0] : memref<16x256xf32, #tpu.memory_space<vmem>>, vector<16x256xf32>
    %1 = arith.truncf %0 : vector<16x256xf32> to vector<16x256xbf16>
    %c512 = arith.constant 512 : index
    %c0_1 = arith.constant 0 : index
    %2 = vector.load %arg3[%c512, %c0_1] : memref<544x256xf32, #tpu.memory_space<vmem>>, vector<1x256xf32>
    %c0_2 = arith.constant 0 : index
    %c0_3 = arith.constant 0 : index
    %3 = vector.load %arg2[%c0_2, %c0_3] : memref<2560x256xbf16, #tpu.memory_space<vmem>>, vector<256x256xbf16>
    %cst = arith.constant dense<0.000000e+00> : vector<16x256xf32>
    %4 = tpu.matmul %1, %3, %cst {dimension_numbers = #tpu.dot_dimension_numbers<[1], [0], [0], [1], [0, 0, 1, 1], [], []>} : vector<16x256xbf16>, vector<256x256xbf16>, vector<16x256xf32> -> vector<16x256xf32>
    %cst_4 = arith.constant dense<0.000000e+00> : vector<16xf32>
    %5 = vector.multi_reduction <add>, %4, %cst_4 [1] : vector<16x256xf32> to vector<16xf32>
    %6 = vector.shape_cast %5 : vector<16xf32> to vector<16x1xf32>
    %cst_5 = arith.constant 1.562500e-02 : f32
    %7 = vector.broadcast %cst_5 : f32 to vector<16x1xf32>
    %8 = arith.mulf %6, %7 : vector<16x1xf32>
    %9 = vector.broadcast %8 : vector<16x1xf32> to vector<16x256xf32>
    %10 = arith.subf %4, %9 : vector<16x256xf32>
    %11 = vector.broadcast %2 : vector<1x256xf32> to vector<16x256xf32>
    %12 = arith.mulf %10, %11 : vector<16x256xf32>
    %13 = arith.mulf %12, %12 : vector<16x256xf32>
    %cst_6 = arith.constant dense<0.000000e+00> : vector<16xf32>
    %14 = vector.multi_reduction <add>, %13, %cst_6 [1] : vector<16x256xf32> to vector<16xf32>
    %15 = vector.shape_cast %14 : vector<16xf32> to vector<16x1xf32>
    %cst_7 = arith.constant 1.562500e-02 : f32
    %16 = vector.broadcast %cst_7 : f32 to vector<16x1xf32>
    %17 = arith.mulf %15, %16 : vector<16x1xf32>
    %cst_8 = arith.constant 9.99999974E-6 : f32
    %18 = vector.broadcast %cst_8 : f32 to vector<16x1xf32>
    %19 = arith.addf %17, %18 : vector<16x1xf32>
    %20 = math.rsqrt %19 : vector<16x1xf32>
    %21 = vector.broadcast %20 : vector<16x1xf32> to vector<16x256xf32>
    %22 = arith.mulf %12, %21 : vector<16x256xf32>
    %c513 = arith.constant 513 : index
    %c0_9 = arith.constant 0 : index
    %23 = vector.load %arg3[%c513, %c0_9] : memref<544x256xf32, #tpu.memory_space<vmem>>, vector<1x256xf32>
    %24 = vector.broadcast %23 : vector<1x256xf32> to vector<16x256xf32>
    %25 = arith.mulf %22, %24 : vector<16x256xf32>
    %c514 = arith.constant 514 : index
    %c0_10 = arith.constant 0 : index
    %26 = vector.load %arg3[%c514, %c0_10] : memref<544x256xf32, #tpu.memory_space<vmem>>, vector<1x256xf32>
    %27 = vector.broadcast %26 : vector<1x256xf32> to vector<16x256xf32>
    %28 = arith.addf %25, %27 : vector<16x256xf32>
    %cst_11 = arith.constant 0.000000e+00 : f32
    %29 = vector.broadcast %cst_11 : f32 to vector<16x256xf32>
    %30 = arith.cmpf oge, %28, %29 : vector<16x256xf32>
    %cst_12 = arith.constant 2.000000e-01 : f32
    %31 = vector.broadcast %cst_12 : f32 to vector<16x256xf32>
    %32 = arith.mulf %28, %31 : vector<16x256xf32>
    %33 = arith.select %30, %28, %32 : vector<16x256xi1>, vector<16x256xf32>
    %34 = arith.truncf %33 : vector<16x256xf32> to vector<16x256xbf16>
    %c256 = arith.constant 256 : index
    %c0_13 = arith.constant 0 : index
    %35 = vector.load %arg2[%c256, %c0_13] : memref<2560x256xbf16, #tpu.memory_space<vmem>>, vector<256x256xbf16>
    %cst_14 = arith.constant dense<0.000000e+00> : vector<16x256xf32>
    %36 = tpu.matmul %34, %35, %cst_14 {dimension_numbers = #tpu.dot_dimension_numbers<[1], [0], [0], [1], [0, 0, 1, 1], [], []>} : vector<16x256xbf16>, vector<256x256xbf16>, vector<16x256xf32> -> vector<16x256xf32>
    %cst_15 = arith.constant dense<0.000000e+00> : vector<16xf32>
    %37 = vector.multi_reduction <add>, %36, %cst_15 [1] : vector<16x256xf32> to vector<16xf32>
    %38 = vector.shape_cast %37 : vector<16xf32> to vector<16x1xf32>
    %cst_16 = arith.constant 1.562500e-02 : f32
    %39 = vector.broadcast %cst_16 : f32 to vector<16x1xf32>
    %40 = arith.mulf %38, %39 : vector<16x1xf32>
    %41 = vector.broadcast %40 : vector<16x1xf32> to vector<16x256xf32>
    %42 = arith.subf %36, %41 : vector<16x256xf32>
    %43 = vector.broadcast %2 : vector<1x256xf32> to vector<16x256xf32>
    %44 = arith.mulf %42, %43 : vector<16x256xf32>
    %45 = arith.mulf %44, %44 : vector<16x256xf32>
    %cst_17 = arith.constant dense<0.000000e+00> : vector<16xf32>
    %46 = vector.multi_reduction <add>, %45, %cst_17 [1] : vector<16x256xf32> to vector<16xf32>
    %47 = vector.shape_cast %46 : vector<16xf32> to vector<16x1xf32>
    %cst_18 = arith.constant 1.562500e-02 : f32
    %48 = vector.broadcast %cst_18 : f32 to vector<16x1xf32>
    %49 = arith.mulf %47, %48 : vector<16x1xf32>
    %cst_19 = arith.constant 9.99999974E-6 : f32
    %50 = vector.broadcast %cst_19 : f32 to vector<16x1xf32>
    %51 = arith.addf %49, %50 : vector<16x1xf32>
    %52 = math.rsqrt %51 : vector<16x1xf32>
    %53 = vector.broadcast %52 : vector<16x1xf32> to vector<16x256xf32>
    %54 = arith.mulf %44, %53 : vector<16x256xf32>
    %c515 = arith.constant 515 : index
    %c0_20 = arith.constant 0 : index
    %55 = vector.load %arg3[%c515, %c0_20] : memref<544x256xf32, #tpu.memory_space<vmem>>, vector<1x256xf32>
    %56 = vector.broadcast %55 : vector<1x256xf32> to vector<16x256xf32>
    %57 = arith.mulf %54, %56 : vector<16x256xf32>
    %c516 = arith.constant 516 : index
    %c0_21 = arith.constant 0 : index
    %58 = vector.load %arg3[%c516, %c0_21] : memref<544x256xf32, #tpu.memory_space<vmem>>, vector<1x256xf32>
    %59 = vector.broadcast %58 : vector<1x256xf32> to vector<16x256xf32>
    %60 = arith.addf %57, %59 : vector<16x256xf32>
    %cst_22 = arith.constant 0.000000e+00 : f32
    %61 = vector.broadcast %cst_22 : f32 to vector<16x256xf32>
    %62 = arith.cmpf oge, %60, %61 : vector<16x256xf32>
    %cst_23 = arith.constant 2.000000e-01 : f32
    %63 = vector.broadcast %cst_23 : f32 to vector<16x256xf32>
    %64 = arith.mulf %60, %63 : vector<16x256xf32>
    %65 = arith.select %62, %60, %64 : vector<16x256xi1>, vector<16x256xf32>
    %66 = arith.truncf %65 : vector<16x256xf32> to vector<16x256xbf16>
    %c512_24 = arith.constant 512 : index
    %c0_25 = arith.constant 0 : index
    %67 = vector.load %arg2[%c512_24, %c0_25] : memref<2560x256xbf16, #tpu.memory_space<vmem>>, vector<256x256xbf16>
    %cst_26 = arith.constant dense<0.000000e+00> : vector<16x256xf32>
    %68 = tpu.matmul %66, %67, %cst_26 {dimension_numbers = #tpu.dot_dimension_numbers<[1], [0], [0], [1], [0, 0, 1, 1], [], []>} : vector<16x256xbf16>, vector<256x256xbf16>, vector<16x256xf32> -> vector<16x256xf32>
    %cst_27 = arith.constant dense<0.000000e+00> : vector<16xf32>
    %69 = vector.multi_reduction <add>, %68, %cst_27 [1] : vector<16x256xf32> to vector<16xf32>
    %70 = vector.shape_cast %69 : vector<16xf32> to vector<16x1xf32>
    %cst_28 = arith.constant 1.562500e-02 : f32
    %71 = vector.broadcast %cst_28 : f32 to vector<16x1xf32>
    %72 = arith.mulf %70, %71 : vector<16x1xf32>
    %73 = vector.broadcast %72 : vector<16x1xf32> to vector<16x256xf32>
    %74 = arith.subf %68, %73 : vector<16x256xf32>
    %75 = vector.broadcast %2 : vector<1x256xf32> to vector<16x256xf32>
    %76 = arith.mulf %74, %75 : vector<16x256xf32>
    %77 = arith.mulf %76, %76 : vector<16x256xf32>
    %cst_29 = arith.constant dense<0.000000e+00> : vector<16xf32>
    %78 = vector.multi_reduction <add>, %77, %cst_29 [1] : vector<16x256xf32> to vector<16xf32>
    %79 = vector.shape_cast %78 : vector<16xf32> to vector<16x1xf32>
    %cst_30 = arith.constant 1.562500e-02 : f32
    %80 = vector.broadcast %cst_30 : f32 to vector<16x1xf32>
    %81 = arith.mulf %79, %80 : vector<16x1xf32>
    %cst_31 = arith.constant 9.99999974E-6 : f32
    %82 = vector.broadcast %cst_31 : f32 to vector<16x1xf32>
    %83 = arith.addf %81, %82 : vector<16x1xf32>
    %84 = math.rsqrt %83 : vector<16x1xf32>
    %85 = vector.broadcast %84 : vector<16x1xf32> to vector<16x256xf32>
    %86 = arith.mulf %76, %85 : vector<16x256xf32>
    %c517 = arith.constant 517 : index
    %c0_32 = arith.constant 0 : index
    %87 = vector.load %arg3[%c517, %c0_32] : memref<544x256xf32, #tpu.memory_space<vmem>>, vector<1x256xf32>
    %88 = vector.broadcast %87 : vector<1x256xf32> to vector<16x256xf32>
    %89 = arith.mulf %86, %88 : vector<16x256xf32>
    %c518 = arith.constant 518 : index
    %c0_33 = arith.constant 0 : index
    %90 = vector.load %arg3[%c518, %c0_33] : memref<544x256xf32, #tpu.memory_space<vmem>>, vector<1x256xf32>
    %91 = vector.broadcast %90 : vector<1x256xf32> to vector<16x256xf32>
    %92 = arith.addf %89, %91 : vector<16x256xf32>
    %c0_34 = arith.constant 0 : index
    %c0_35 = arith.constant 0 : index
    %93 = vector.load %arg3[%c0_34, %c0_35] : memref<544x256xf32, #tpu.memory_space<vmem>>, vector<256x256xf32>
    %cst_36 = arith.constant dense<0.000000e+00> : vector<16x256xf32>
    %94 = tpu.matmul %0, %93, %cst_36 {dimension_numbers = #tpu.dot_dimension_numbers<[1], [0], [0], [1], [0, 0, 1, 1], [], []>} : vector<16x256xf32>, vector<256x256xf32>, vector<16x256xf32> -> vector<16x256xf32>
    %95 = arith.addf %92, %94 : vector<16x256xf32>
    %cst_37 = arith.constant 0.000000e+00 : f32
    %96 = vector.broadcast %cst_37 : f32 to vector<16x256xf32>
    %97 = arith.cmpf oge, %95, %96 : vector<16x256xf32>
    %cst_38 = arith.constant 2.000000e-01 : f32
    %98 = vector.broadcast %cst_38 : f32 to vector<16x256xf32>
    %99 = arith.mulf %95, %98 : vector<16x256xf32>
    %100 = arith.select %97, %95, %99 : vector<16x256xi1>, vector<16x256xf32>
    %101 = arith.truncf %100 : vector<16x256xf32> to vector<16x256xbf16>
    %c520 = arith.constant 520 : index
    %c0_39 = arith.constant 0 : index
    %102 = vector.load %arg3[%c520, %c0_39] : memref<544x256xf32, #tpu.memory_space<vmem>>, vector<1x256xf32>
    %c768 = arith.constant 768 : index
    %c0_40 = arith.constant 0 : index
    %103 = vector.load %arg2[%c768, %c0_40] : memref<2560x256xbf16, #tpu.memory_space<vmem>>, vector<256x256xbf16>
    %cst_41 = arith.constant dense<0.000000e+00> : vector<16x256xf32>
    %104 = tpu.matmul %101, %103, %cst_41 {dimension_numbers = #tpu.dot_dimension_numbers<[1], [0], [0], [1], [0, 0, 1, 1], [], []>} : vector<16x256xbf16>, vector<256x256xbf16>, vector<16x256xf32> -> vector<16x256xf32>
    %cst_42 = arith.constant dense<0.000000e+00> : vector<16xf32>
    %105 = vector.multi_reduction <add>, %104, %cst_42 [1] : vector<16x256xf32> to vector<16xf32>
    %106 = vector.shape_cast %105 : vector<16xf32> to vector<16x1xf32>
    %cst_43 = arith.constant 7.812500e-03 : f32
    %107 = vector.broadcast %cst_43 : f32 to vector<16x1xf32>
    %108 = arith.mulf %106, %107 : vector<16x1xf32>
    %109 = vector.broadcast %108 : vector<16x1xf32> to vector<16x256xf32>
    %110 = arith.subf %104, %109 : vector<16x256xf32>
    %111 = vector.broadcast %102 : vector<1x256xf32> to vector<16x256xf32>
    %112 = arith.mulf %110, %111 : vector<16x256xf32>
    %113 = arith.mulf %112, %112 : vector<16x256xf32>
    %cst_44 = arith.constant dense<0.000000e+00> : vector<16xf32>
    %114 = vector.multi_reduction <add>, %113, %cst_44 [1] : vector<16x256xf32> to vector<16xf32>
    %115 = vector.shape_cast %114 : vector<16xf32> to vector<16x1xf32>
    %cst_45 = arith.constant 7.812500e-03 : f32
    %116 = vector.broadcast %cst_45 : f32 to vector<16x1xf32>
    %117 = arith.mulf %115, %116 : vector<16x1xf32>
    %cst_46 = arith.constant 9.99999974E-6 : f32
    %118 = vector.broadcast %cst_46 : f32 to vector<16x1xf32>
    %119 = arith.addf %117, %118 : vector<16x1xf32>
    %120 = math.rsqrt %119 : vector<16x1xf32>
    %121 = vector.broadcast %120 : vector<16x1xf32> to vector<16x256xf32>
    %122 = arith.mulf %112, %121 : vector<16x256xf32>
    %c521 = arith.constant 521 : index
    %c0_47 = arith.constant 0 : index
    %123 = vector.load %arg3[%c521, %c0_47] : memref<544x256xf32, #tpu.memory_space<vmem>>, vector<1x256xf32>
    %124 = vector.broadcast %123 : vector<1x256xf32> to vector<16x256xf32>
    %125 = arith.mulf %122, %124 : vector<16x256xf32>
    %c522 = arith.constant 522 : index
    %c0_48 = arith.constant 0 : index
    %126 = vector.load %arg3[%c522, %c0_48] : memref<544x256xf32, #tpu.memory_space<vmem>>, vector<1x256xf32>
    %127 = vector.broadcast %126 : vector<1x256xf32> to vector<16x256xf32>
    %128 = arith.addf %125, %127 : vector<16x256xf32>
    %cst_49 = arith.constant 0.000000e+00 : f32
    %129 = vector.broadcast %cst_49 : f32 to vector<16x256xf32>
    %130 = arith.cmpf oge, %128, %129 : vector<16x256xf32>
    %cst_50 = arith.constant 2.000000e-01 : f32
    %131 = vector.broadcast %cst_50 : f32 to vector<16x256xf32>
    %132 = arith.mulf %128, %131 : vector<16x256xf32>
    %133 = arith.select %130, %128, %132 : vector<16x256xi1>, vector<16x256xf32>
    %134 = arith.truncf %133 : vector<16x256xf32> to vector<16x256xbf16>
    %c1024 = arith.constant 1024 : index
    %c0_51 = arith.constant 0 : index
    %135 = vector.load %arg2[%c1024, %c0_51] : memref<2560x256xbf16, #tpu.memory_space<vmem>>, vector<256x256xbf16>
    %cst_52 = arith.constant dense<0.000000e+00> : vector<16x256xf32>
    %136 = tpu.matmul %134, %135, %cst_52 {dimension_numbers = #tpu.dot_dimension_numbers<[1], [0], [0], [1], [0, 0, 1, 1], [], []>} : vector<16x256xbf16>, vector<256x256xbf16>, vector<16x256xf32> -> vector<16x256xf32>
    %cst_53 = arith.constant dense<0.000000e+00> : vector<16xf32>
    %137 = vector.multi_reduction <add>, %136, %cst_53 [1] : vector<16x256xf32> to vector<16xf32>
    %138 = vector.shape_cast %137 : vector<16xf32> to vector<16x1xf32>
    %cst_54 = arith.constant 7.812500e-03 : f32
    %139 = vector.broadcast %cst_54 : f32 to vector<16x1xf32>
    %140 = arith.mulf %138, %139 : vector<16x1xf32>
    %141 = vector.broadcast %140 : vector<16x1xf32> to vector<16x256xf32>
    %142 = arith.subf %136, %141 : vector<16x256xf32>
    %143 = vector.broadcast %102 : vector<1x256xf32> to vector<16x256xf32>
    %144 = arith.mulf %142, %143 : vector<16x256xf32>
    %145 = arith.mulf %144, %144 : vector<16x256xf32>
    %cst_55 = arith.constant dense<0.000000e+00> : vector<16xf32>
    %146 = vector.multi_reduction <add>, %145, %cst_55 [1] : vector<16x256xf32> to vector<16xf32>
    %147 = vector.shape_cast %146 : vector<16xf32> to vector<16x1xf32>
    %cst_56 = arith.constant 7.812500e-03 : f32
    %148 = vector.broadcast %cst_56 : f32 to vector<16x1xf32>
    %149 = arith.mulf %147, %148 : vector<16x1xf32>
    %cst_57 = arith.constant 9.99999974E-6 : f32
    %150 = vector.broadcast %cst_57 : f32 to vector<16x1xf32>
    %151 = arith.addf %149, %150 : vector<16x1xf32>
    %152 = math.rsqrt %151 : vector<16x1xf32>
    %153 = vector.broadcast %152 : vector<16x1xf32> to vector<16x256xf32>
    %154 = arith.mulf %144, %153 : vector<16x256xf32>
    %c523 = arith.constant 523 : index
    %c0_58 = arith.constant 0 : index
    %155 = vector.load %arg3[%c523, %c0_58] : memref<544x256xf32, #tpu.memory_space<vmem>>, vector<1x256xf32>
    %156 = vector.broadcast %155 : vector<1x256xf32> to vector<16x256xf32>
    %157 = arith.mulf %154, %156 : vector<16x256xf32>
    %c524 = arith.constant 524 : index
    %c0_59 = arith.constant 0 : index
    %158 = vector.load %arg3[%c524, %c0_59] : memref<544x256xf32, #tpu.memory_space<vmem>>, vector<1x256xf32>
    %159 = vector.broadcast %158 : vector<1x256xf32> to vector<16x256xf32>
    %160 = arith.addf %157, %159 : vector<16x256xf32>
    %cst_60 = arith.constant 0.000000e+00 : f32
    %161 = vector.broadcast %cst_60 : f32 to vector<16x256xf32>
    %162 = arith.cmpf oge, %160, %161 : vector<16x256xf32>
    %cst_61 = arith.constant 2.000000e-01 : f32
    %163 = vector.broadcast %cst_61 : f32 to vector<16x256xf32>
    %164 = arith.mulf %160, %163 : vector<16x256xf32>
    %165 = arith.select %162, %160, %164 : vector<16x256xi1>, vector<16x256xf32>
    %166 = arith.truncf %165 : vector<16x256xf32> to vector<16x256xbf16>
    %c1280 = arith.constant 1280 : index
    %c0_62 = arith.constant 0 : index
    %167 = vector.load %arg2[%c1280, %c0_62] : memref<2560x256xbf16, #tpu.memory_space<vmem>>, vector<256x256xbf16>
    %cst_63 = arith.constant dense<0.000000e+00> : vector<16x256xf32>
    %168 = tpu.matmul %166, %167, %cst_63 {dimension_numbers = #tpu.dot_dimension_numbers<[1], [0], [0], [1], [0, 0, 1, 1], [], []>} : vector<16x256xbf16>, vector<256x256xbf16>, vector<16x256xf32> -> vector<16x256xf32>
    %cst_64 = arith.constant dense<0.000000e+00> : vector<16xf32>
    %169 = vector.multi_reduction <add>, %168, %cst_64 [1] : vector<16x256xf32> to vector<16xf32>
    %170 = vector.shape_cast %169 : vector<16xf32> to vector<16x1xf32>
    %cst_65 = arith.constant 7.812500e-03 : f32
    %171 = vector.broadcast %cst_65 : f32 to vector<16x1xf32>
    %172 = arith.mulf %170, %171 : vector<16x1xf32>
    %173 = vector.broadcast %172 : vector<16x1xf32> to vector<16x256xf32>
    %174 = arith.subf %168, %173 : vector<16x256xf32>
    %175 = vector.broadcast %102 : vector<1x256xf32> to vector<16x256xf32>
    %176 = arith.mulf %174, %175 : vector<16x256xf32>
    %177 = arith.mulf %176, %176 : vector<16x256xf32>
    %cst_66 = arith.constant dense<0.000000e+00> : vector<16xf32>
    %178 = vector.multi_reduction <add>, %177, %cst_66 [1] : vector<16x256xf32> to vector<16xf32>
    %179 = vector.shape_cast %178 : vector<16xf32> to vector<16x1xf32>
    %cst_67 = arith.constant 7.812500e-03 : f32
    %180 = vector.broadcast %cst_67 : f32 to vector<16x1xf32>
    %181 = arith.mulf %179, %180 : vector<16x1xf32>
    %cst_68 = arith.constant 9.99999974E-6 : f32
    %182 = vector.broadcast %cst_68 : f32 to vector<16x1xf32>
    %183 = arith.addf %181, %182 : vector<16x1xf32>
    %184 = math.rsqrt %183 : vector<16x1xf32>
    %185 = vector.broadcast %184 : vector<16x1xf32> to vector<16x256xf32>
    %186 = arith.mulf %176, %185 : vector<16x256xf32>
    %c525 = arith.constant 525 : index
    %c0_69 = arith.constant 0 : index
    %187 = vector.load %arg3[%c525, %c0_69] : memref<544x256xf32, #tpu.memory_space<vmem>>, vector<1x256xf32>
    %188 = vector.broadcast %187 : vector<1x256xf32> to vector<16x256xf32>
    %189 = arith.mulf %186, %188 : vector<16x256xf32>
    %c526 = arith.constant 526 : index
    %c0_70 = arith.constant 0 : index
    %190 = vector.load %arg3[%c526, %c0_70] : memref<544x256xf32, #tpu.memory_space<vmem>>, vector<1x256xf32>
    %191 = vector.broadcast %190 : vector<1x256xf32> to vector<16x256xf32>
    %192 = arith.addf %189, %191 : vector<16x256xf32>
    %c256_71 = arith.constant 256 : index
    %c0_72 = arith.constant 0 : index
    %193 = vector.load %arg3[%c256_71, %c0_72] : memref<544x256xf32, #tpu.memory_space<vmem>>, vector<256x256xf32>
    %cst_73 = arith.constant dense<0.000000e+00> : vector<16x256xf32>
    %194 = tpu.matmul %100, %193, %cst_73 {dimension_numbers = #tpu.dot_dimension_numbers<[1], [0], [0], [1], [0, 0, 1, 1], [], []>} : vector<16x256xf32>, vector<256x256xf32>, vector<16x256xf32> -> vector<16x256xf32>
    %195 = arith.addf %192, %194 : vector<16x256xf32>
    %cst_74 = arith.constant 0.000000e+00 : f32
    %196 = vector.broadcast %cst_74 : f32 to vector<16x256xf32>
    %197 = arith.cmpf oge, %195, %196 : vector<16x256xf32>
    %cst_75 = arith.constant 2.000000e-01 : f32
    %198 = vector.broadcast %cst_75 : f32 to vector<16x256xf32>
    %199 = arith.mulf %195, %198 : vector<16x256xf32>
    %200 = arith.select %197, %195, %199 : vector<16x256xi1>, vector<16x256xf32>
    %201 = arith.truncf %200 : vector<16x256xf32> to vector<16x256xbf16>
    %c528 = arith.constant 528 : index
    %c0_76 = arith.constant 0 : index
    %202 = vector.load %arg3[%c528, %c0_76] : memref<544x256xf32, #tpu.memory_space<vmem>>, vector<1x256xf32>
    %c1536 = arith.constant 1536 : index
    %c0_77 = arith.constant 0 : index
    %203 = vector.load %arg2[%c1536, %c0_77] : memref<2560x256xbf16, #tpu.memory_space<vmem>>, vector<256x256xbf16>
    %cst_78 = arith.constant dense<0.000000e+00> : vector<16x256xf32>
    %204 = tpu.matmul %201, %203, %cst_78 {dimension_numbers = #tpu.dot_dimension_numbers<[1], [0], [0], [1], [0, 0, 1, 1], [], []>} : vector<16x256xbf16>, vector<256x256xbf16>, vector<16x256xf32> -> vector<16x256xf32>
    %cst_79 = arith.constant dense<0.000000e+00> : vector<16xf32>
    %205 = vector.multi_reduction <add>, %204, %cst_79 [1] : vector<16x256xf32> to vector<16xf32>
    %206 = vector.shape_cast %205 : vector<16xf32> to vector<16x1xf32>
    %cst_80 = arith.constant 7.812500e-03 : f32
    %207 = vector.broadcast %cst_80 : f32 to vector<16x1xf32>
    %208 = arith.mulf %206, %207 : vector<16x1xf32>
    %209 = vector.broadcast %208 : vector<16x1xf32> to vector<16x256xf32>
    %210 = arith.subf %204, %209 : vector<16x256xf32>
    %211 = vector.broadcast %202 : vector<1x256xf32> to vector<16x256xf32>
    %212 = arith.mulf %210, %211 : vector<16x256xf32>
    %213 = arith.mulf %212, %212 : vector<16x256xf32>
    %cst_81 = arith.constant dense<0.000000e+00> : vector<16xf32>
    %214 = vector.multi_reduction <add>, %213, %cst_81 [1] : vector<16x256xf32> to vector<16xf32>
    %215 = vector.shape_cast %214 : vector<16xf32> to vector<16x1xf32>
    %cst_82 = arith.constant 7.812500e-03 : f32
    %216 = vector.broadcast %cst_82 : f32 to vector<16x1xf32>
    %217 = arith.mulf %215, %216 : vector<16x1xf32>
    %cst_83 = arith.constant 9.99999974E-6 : f32
    %218 = vector.broadcast %cst_83 : f32 to vector<16x1xf32>
    %219 = arith.addf %217, %218 : vector<16x1xf32>
    %220 = math.rsqrt %219 : vector<16x1xf32>
    %221 = vector.broadcast %220 : vector<16x1xf32> to vector<16x256xf32>
    %222 = arith.mulf %212, %221 : vector<16x256xf32>
    %c529 = arith.constant 529 : index
    %c0_84 = arith.constant 0 : index
    %223 = vector.load %arg3[%c529, %c0_84] : memref<544x256xf32, #tpu.memory_space<vmem>>, vector<1x256xf32>
    %224 = vector.broadcast %223 : vector<1x256xf32> to vector<16x256xf32>
    %225 = arith.mulf %222, %224 : vector<16x256xf32>
    %c530 = arith.constant 530 : index
    %c0_85 = arith.constant 0 : index
    %226 = vector.load %arg3[%c530, %c0_85] : memref<544x256xf32, #tpu.memory_space<vmem>>, vector<1x256xf32>
    %227 = vector.broadcast %226 : vector<1x256xf32> to vector<16x256xf32>
    %228 = arith.addf %225, %227 : vector<16x256xf32>
    %cst_86 = arith.constant 0.000000e+00 : f32
    %229 = vector.broadcast %cst_86 : f32 to vector<16x256xf32>
    %230 = arith.cmpf oge, %228, %229 : vector<16x256xf32>
    %cst_87 = arith.constant 2.000000e-01 : f32
    %231 = vector.broadcast %cst_87 : f32 to vector<16x256xf32>
    %232 = arith.mulf %228, %231 : vector<16x256xf32>
    %233 = arith.select %230, %228, %232 : vector<16x256xi1>, vector<16x256xf32>
    %234 = arith.truncf %233 : vector<16x256xf32> to vector<16x256xbf16>
    %c1792 = arith.constant 1792 : index
    %c0_88 = arith.constant 0 : index
    %235 = vector.load %arg2[%c1792, %c0_88] : memref<2560x256xbf16, #tpu.memory_space<vmem>>, vector<256x256xbf16>
    %cst_89 = arith.constant dense<0.000000e+00> : vector<16x256xf32>
    %236 = tpu.matmul %234, %235, %cst_89 {dimension_numbers = #tpu.dot_dimension_numbers<[1], [0], [0], [1], [0, 0, 1, 1], [], []>} : vector<16x256xbf16>, vector<256x256xbf16>, vector<16x256xf32> -> vector<16x256xf32>
    %cst_90 = arith.constant dense<0.000000e+00> : vector<16xf32>
    %237 = vector.multi_reduction <add>, %236, %cst_90 [1] : vector<16x256xf32> to vector<16xf32>
    %238 = vector.shape_cast %237 : vector<16xf32> to vector<16x1xf32>
    %cst_91 = arith.constant 7.812500e-03 : f32
    %239 = vector.broadcast %cst_91 : f32 to vector<16x1xf32>
    %240 = arith.mulf %238, %239 : vector<16x1xf32>
    %241 = vector.broadcast %240 : vector<16x1xf32> to vector<16x256xf32>
    %242 = arith.subf %236, %241 : vector<16x256xf32>
    %243 = vector.broadcast %202 : vector<1x256xf32> to vector<16x256xf32>
    %244 = arith.mulf %242, %243 : vector<16x256xf32>
    %245 = arith.mulf %244, %244 : vector<16x256xf32>
    %cst_92 = arith.constant dense<0.000000e+00> : vector<16xf32>
    %246 = vector.multi_reduction <add>, %245, %cst_92 [1] : vector<16x256xf32> to vector<16xf32>
    %247 = vector.shape_cast %246 : vector<16xf32> to vector<16x1xf32>
    %cst_93 = arith.constant 7.812500e-03 : f32
    %248 = vector.broadcast %cst_93 : f32 to vector<16x1xf32>
    %249 = arith.mulf %247, %248 : vector<16x1xf32>
    %cst_94 = arith.constant 9.99999974E-6 : f32
    %250 = vector.broadcast %cst_94 : f32 to vector<16x1xf32>
    %251 = arith.addf %249, %250 : vector<16x1xf32>
    %252 = math.rsqrt %251 : vector<16x1xf32>
    %253 = vector.broadcast %252 : vector<16x1xf32> to vector<16x256xf32>
    %254 = arith.mulf %244, %253 : vector<16x256xf32>
    %c531 = arith.constant 531 : index
    %c0_95 = arith.constant 0 : index
    %255 = vector.load %arg3[%c531, %c0_95] : memref<544x256xf32, #tpu.memory_space<vmem>>, vector<1x256xf32>
    %256 = vector.broadcast %255 : vector<1x256xf32> to vector<16x256xf32>
    %257 = arith.mulf %254, %256 : vector<16x256xf32>
    %c532 = arith.constant 532 : index
    %c0_96 = arith.constant 0 : index
    %258 = vector.load %arg3[%c532, %c0_96] : memref<544x256xf32, #tpu.memory_space<vmem>>, vector<1x256xf32>
    %259 = vector.broadcast %258 : vector<1x256xf32> to vector<16x256xf32>
    %260 = arith.addf %257, %259 : vector<16x256xf32>
    %cst_97 = arith.constant 0.000000e+00 : f32
    %261 = vector.broadcast %cst_97 : f32 to vector<16x256xf32>
    %262 = arith.cmpf oge, %260, %261 : vector<16x256xf32>
    %cst_98 = arith.constant 2.000000e-01 : f32
    %263 = vector.broadcast %cst_98 : f32 to vector<16x256xf32>
    %264 = arith.mulf %260, %263 : vector<16x256xf32>
    %265 = arith.select %262, %260, %264 : vector<16x256xi1>, vector<16x256xf32>
    %266 = arith.truncf %265 : vector<16x256xf32> to vector<16x256xbf16>
    %c2048 = arith.constant 2048 : index
    %c0_99 = arith.constant 0 : index
    %267 = vector.load %arg2[%c2048, %c0_99] : memref<2560x256xbf16, #tpu.memory_space<vmem>>, vector<256x256xbf16>
    %cst_100 = arith.constant dense<0.000000e+00> : vector<16x256xf32>
    %268 = tpu.matmul %266, %267, %cst_100 {dimension_numbers = #tpu.dot_dimension_numbers<[1], [0], [0], [1], [0, 0, 1, 1], [], []>} : vector<16x256xbf16>, vector<256x256xbf16>, vector<16x256xf32> -> vector<16x256xf32>
    %cst_101 = arith.constant dense<0.000000e+00> : vector<16xf32>
    %269 = vector.multi_reduction <add>, %268, %cst_101 [1] : vector<16x256xf32> to vector<16xf32>
    %270 = vector.shape_cast %269 : vector<16xf32> to vector<16x1xf32>
    %cst_102 = arith.constant 7.812500e-03 : f32
    %271 = vector.broadcast %cst_102 : f32 to vector<16x1xf32>
    %272 = arith.mulf %270, %271 : vector<16x1xf32>
    %273 = vector.broadcast %272 : vector<16x1xf32> to vector<16x256xf32>
    %274 = arith.subf %268, %273 : vector<16x256xf32>
    %275 = vector.broadcast %202 : vector<1x256xf32> to vector<16x256xf32>
    %276 = arith.mulf %274, %275 : vector<16x256xf32>
    %277 = arith.mulf %276, %276 : vector<16x256xf32>
    %cst_103 = arith.constant dense<0.000000e+00> : vector<16xf32>
    %278 = vector.multi_reduction <add>, %277, %cst_103 [1] : vector<16x256xf32> to vector<16xf32>
    %279 = vector.shape_cast %278 : vector<16xf32> to vector<16x1xf32>
    %cst_104 = arith.constant 7.812500e-03 : f32
    %280 = vector.broadcast %cst_104 : f32 to vector<16x1xf32>
    %281 = arith.mulf %279, %280 : vector<16x1xf32>
    %cst_105 = arith.constant 9.99999974E-6 : f32
    %282 = vector.broadcast %cst_105 : f32 to vector<16x1xf32>
    %283 = arith.addf %281, %282 : vector<16x1xf32>
    %284 = math.rsqrt %283 : vector<16x1xf32>
    %285 = vector.broadcast %284 : vector<16x1xf32> to vector<16x256xf32>
    %286 = arith.mulf %276, %285 : vector<16x256xf32>
    %c533 = arith.constant 533 : index
    %c0_106 = arith.constant 0 : index
    %287 = vector.load %arg3[%c533, %c0_106] : memref<544x256xf32, #tpu.memory_space<vmem>>, vector<1x256xf32>
    %288 = vector.broadcast %287 : vector<1x256xf32> to vector<16x256xf32>
    %289 = arith.mulf %286, %288 : vector<16x256xf32>
    %c534 = arith.constant 534 : index
    %c0_107 = arith.constant 0 : index
    %290 = vector.load %arg3[%c534, %c0_107] : memref<544x256xf32, #tpu.memory_space<vmem>>, vector<1x256xf32>
    %291 = vector.broadcast %290 : vector<1x256xf32> to vector<16x256xf32>
    %292 = arith.addf %289, %291 : vector<16x256xf32>
    %293 = arith.addf %292, %200 : vector<16x256xf32>
    %cst_108 = arith.constant 0.000000e+00 : f32
    %294 = vector.broadcast %cst_108 : f32 to vector<16x256xf32>
    %295 = arith.cmpf oge, %293, %294 : vector<16x256xf32>
    %cst_109 = arith.constant 2.000000e-01 : f32
    %296 = vector.broadcast %cst_109 : f32 to vector<16x256xf32>
    %297 = arith.mulf %293, %296 : vector<16x256xf32>
    %298 = arith.select %295, %293, %297 : vector<16x256xi1>, vector<16x256xf32>
    %299 = arith.truncf %298 : vector<16x256xf32> to vector<16x256xbf16>
    %c2304 = arith.constant 2304 : index
    %c0_110 = arith.constant 0 : index
    %300 = vector.load %arg2[%c2304, %c0_110] : memref<2560x256xbf16, #tpu.memory_space<vmem>>, vector<256x256xbf16>
    %cst_111 = arith.constant dense<0.000000e+00> : vector<16x256xf32>
    %301 = tpu.matmul %299, %300, %cst_111 {dimension_numbers = #tpu.dot_dimension_numbers<[1], [0], [0], [1], [0, 0, 1, 1], [], []>} : vector<16x256xbf16>, vector<256x256xbf16>, vector<16x256xf32> -> vector<16x256xf32>
    %c536 = arith.constant 536 : index
    %c0_112 = arith.constant 0 : index
    %302 = vector.load %arg3[%c536, %c0_112] : memref<544x256xf32, #tpu.memory_space<vmem>>, vector<1x256xf32>
    %303 = vector.broadcast %302 : vector<1x256xf32> to vector<16x256xf32>
    %304 = arith.addf %301, %303 : vector<16x256xf32>
    %c0_113 = arith.constant 0 : index
    %c0_114 = arith.constant 0 : index
    %305 = vector.load %arg4[%c0_113, %c0_114] : memref<16x256xf32, #tpu.memory_space<vmem>>, vector<16x256xf32>
    tpu.vector_store %arg4[%c0_113, %c0_114], %304 {strides = array<i32>} : memref<16x256xf32, #tpu.memory_space<vmem>>, vector<16x256xf32>,
    return
  }
  func.func @transform_0(%arg0: i32) -> (i32, i32) {
    %c0_i32 = arith.constant 0 : i32
    %c0_i32_0 = arith.constant 0 : i32
    return %arg0, %c0_i32 : i32, i32
  }
  func.func @transform_1(%arg0: i32) -> (i32, i32) {
    %c0_i32 = arith.constant 0 : i32
    %c0_i32_0 = arith.constant 0 : i32
    %c0_i32_1 = arith.constant 0 : i32
    return %c0_i32, %c0_i32_0 : i32, i32
  }
  func.func @transform_2(%arg0: i32) -> (i32, i32) {
    %c0_i32 = arith.constant 0 : i32
    %c0_i32_0 = arith.constant 0 : i32
    %c0_i32_1 = arith.constant 0 : i32
    return %c0_i32, %c0_i32_0 : i32, i32
  }
  func.func @transform_3(%arg0: i32) -> (i32, i32) {
    %c0_i32 = arith.constant 0 : i32
    %c0_i32_0 = arith.constant 0 : i32
    return %arg0, %c0_i32 : i32, i32
  }
}

</mosaic_0001>

<bundles_post_ra>
// kernel: ms_decoder_forward.1
= control target key start
LH: loop header
LB: loop body
LE: loop exit
PB: predicated region body
PF: predicated region fallthrough
CT: control target
= control target key end

     0   :  { %v270_v61 = vlaneseq  ;;  %s6076_s1 = inlined_call_operand.vmem [shape: bf16[2560,256], index: 1, kind: input, shape index: {}]   ;;  %s6077_s0 = inlined_call_operand.vmem [shape: f32[16,256], index: 0, kind: input, shape index: {}]   ;;  %s6078_s2 = inlined_call_operand.vmem [shape: f32[544,256], index: 2, kind: input, shape index: {}]   ;;  %s6079_s3 = inlined_call_operand.vmem [shape: f32[16,256], index: 3, kind: output, shape index: {}]  }
   0x1   :  { %v3950_v0 = vld [vmem:[%s6076_s1 + $0x4] ss:$8 sps:$4 sm:$0xff]   ;;  %v3952_v1 = vld [vmem:[%s6076_s1] ss:$8 sps:$4 sm:$0xff]   ;;  %v3953_v2 = vld [vmem:[%s6076_s1 + $0x14] ss:$8 sps:$4 sm:$0xff]  }
   0x2   :  { %214 = vmatprep.subr.bf16.mxu0 %v3950_v0  ;;  %v3955_v3 = vld [vmem:[%s6076_s1 + $0x10] ss:$8 sps:$4 sm:$0xff]   ;;  %v3956_v4 = vld [vmem:[%s6076_s1 + $0x24] ss:$8 sps:$4 sm:$0xff]   ;;  %v3958_v5 = vld [vmem:[%s6076_s1 + $0x20] ss:$8 sps:$4 sm:$0xff]  }
   0x3   :  { %215 = vmatpush1.bf16.msra.mxu0 %v3952_v1  ;;  %v3959_v6 = vld [vmem:[%s6076_s1 + $0x34] ss:$8 sps:$4 sm:$0xff]   ;;  %v3961_v7 = vld [vmem:[%s6076_s1 + $0x30] ss:$8 sps:$4 sm:$0xff]   ;;  %v3962_v8 = vld [vmem:[%s6076_s1 + $0x44] ss:$8 sps:$4 sm:$0xff]  }
   0x4   :  { %216 = vmatprep.subr.bf16.mxu0 %v3953_v2  ;;  %v3964_v9 = vld [vmem:[%s6076_s1 + $0x40] ss:$8 sps:$4 sm:$0xff]   ;;  %v3965_v10 = vld [vmem:[%s6076_s1 + $0x54] ss:$8 sps:$4 sm:$0xff]   ;;  %v3967_v11 = vld [vmem:[%s6076_s1 + $0x50] ss:$8 sps:$4 sm:$0xff]  }
   0x5   :  { %v3968_v12 = vld [vmem:[%s6076_s1 + $0x64] ss:$8 sps:$4 sm:$0xff]   ;;  %v17_v14 = vld [vmem:[%s6077_s0 + $0x18] sm:$0xff]  ;;  %v3970_v15 = vld [vmem:[%s6076_s1 + $0x60] ss:$8 sps:$4 sm:$0xff]   ;;  %v271_v62 = vshrl.u32 %v270_v61, 7 }
   0x6   :  { %v4531_v13 = vld [vmem:[%s6077_s0 + $0x8] sm:$0xff]  ;;  %v3971_v16 = vld [vmem:[%s6076_s1 + $0x74] ss:$8 sps:$4 sm:$0xff]   ;;  %v3973_v18 = vld [vmem:[%s6076_s1 + $0x70] ss:$8 sps:$4 sm:$0xff]  }
   0x7   :  { %217 = vmatpush1.bf16.msra.mxu0 %v3955_v3  ;;  %v19_v17 = vpack.c.bf16 %v17_v14, %v4531_v13  ;;  %v3974_v19 = vld [vmem:[%s6076_s1 + $0x84] ss:$8 sps:$4 sm:$0xff]   ;;  %v3976_v20 = vld [vmem:[%s6076_s1 + $0x80] ss:$8 sps:$4 sm:$0xff]   ;;  %v3977_v21 = vld [vmem:[%s6076_s1 + $0x94] ss:$8 sps:$4 sm:$0xff]  }
   0x8   :  { %218 = vmatprep.subr.bf16.mxu0 %v3956_v4  ;;  %v3979_v22 = vld [vmem:[%s6076_s1 + $0x90] ss:$8 sps:$4 sm:$0xff]   ;;  %v3980_v23 = vld [vmem:[%s6076_s1 + $0xa4] ss:$8 sps:$4 sm:$0xff]   ;;  %v3982_v24 = vld [vmem:[%s6076_s1 + $0xa0] ss:$8 sps:$4 sm:$0xff]  }
   0x9   :  { %246 = vmatprep.mubr.bf16.mxu0 %v19_v17  ;;  %v3983_v25 = vld [vmem:[%s6076_s1 + $0xb4] ss:$8 sps:$4 sm:$0xff]   ;;  %v3985_v26 = vld [vmem:[%s6076_s1 + $0xb0] ss:$8 sps:$4 sm:$0xff]   ;;  %v3986_v27 = vld [vmem:[%s6076_s1 + $0xc4] ss:$8 sps:$4 sm:$0xff]  }
   0xa   :  { %v3988_v28 = vld [vmem:[%s6076_s1 + $0xc0] ss:$8 sps:$4 sm:$0xff]   ;;  %v3989_v29 = vld [vmem:[%s6076_s1 + $0xd4] ss:$8 sps:$4 sm:$0xff]   ;;  %v3991_v30 = vld [vmem:[%s6076_s1 + $0xd0] ss:$8 sps:$4 sm:$0xff]  }
   0xb   :  { %219 = vmatpush1.bf16.msra.mxu0 %v3958_v5  ;;  %v3992_v31 = vld [vmem:[%s6076_s1 + $0xe4] ss:$8 sps:$4 sm:$0xff]   ;;  %v3994_v32 = vld [vmem:[%s6076_s1 + $0xe0] ss:$8 sps:$4 sm:$0xff]   ;;  %v3995_v33 = vld [vmem:[%s6076_s1 + $0xf4] ss:$8 sps:$4 sm:$0xff]  }
   0xc   :  { %220 = vmatprep.subr.bf16.mxu0 %v3959_v6  ;;  %v3997_v34 = vld [vmem:[%s6076_s1 + $0xf0] ss:$8 sps:$4 sm:$0xff]   ;;  %v14_v35 = vld [vmem:[%s6077_s0] sm:$0xff]  ;;  %v4001_v46 = vld [vmem:[%s6076_s1 + $0x114] ss:$8 sps:$4 sm:$0xff]   ;;  %v4651_v63 = vsub.s32 0, %v271_v62 }
   0xd   :  { %v16_v36 = vld [vmem:[%s6077_s0 + $0x10] sm:$0xff]  ;;  %v3998_v44 = vld [vmem:[%s6076_s1 + $0x104] ss:$8 sps:$4 sm:$0xff]   ;;  %v4000_v45 = vld [vmem:[%s6076_s1 + $0x100] ss:$8 sps:$4 sm:$0xff]   ;;  %v4653_v0 = vsub.s32 1, %v271_v62 }
   0xe   :  { %v18_v37 = vpack.c.bf16 %v16_v36, %v14_v35  ;;  %544 = vmatprep.subr.bf16.mxu1 %v3998_v44  ;;  %v4003_v47 = vld [vmem:[%s6076_s1 + $0x110] ss:$8 sps:$4 sm:$0xff]   ;;  %v4004_v48 = vld [vmem:[%s6076_s1 + $0x124] ss:$8 sps:$4 sm:$0xff]   ;;  %v4006_v49 = vld [vmem:[%s6076_s1 + $0x120] ss:$8 sps:$4 sm:$0xff]  }
   0xf   :  { %221 = vmatpush1.bf16.msra.mxu0 %v3961_v7  ;;  %545 = vmatpush1.bf16.msra.mxu1 %v4000_v45  ;;  %v4007_v50 = vld [vmem:[%s6076_s1 + $0x134] ss:$8 sps:$4 sm:$0xff]   ;;  %v4009_v51 = vld [vmem:[%s6076_s1 + $0x130] ss:$8 sps:$4 sm:$0xff]   ;;  %v4010_v52 = vld [vmem:[%s6076_s1 + $0x144] ss:$8 sps:$4 sm:$0xff]  }
  0x10   :  { %222 = vmatprep.subr.bf16.mxu0 %v3962_v8  ;;  %546 = vmatprep.subr.bf16.mxu1 %v4001_v46  ;;  %v4012_v53 = vld [vmem:[%s6076_s1 + $0x140] ss:$8 sps:$4 sm:$0xff]   ;;  %v4013_v54 = vld [vmem:[%s6076_s1 + $0x154] ss:$8 sps:$4 sm:$0xff]   ;;  %v4015_v55 = vld [vmem:[%s6076_s1 + $0x150] ss:$8 sps:$4 sm:$0xff]  }
  0x11   :  { %v4016_v56 = vld [vmem:[%s6076_s1 + $0x164] ss:$8 sps:$4 sm:$0xff]   ;;  %v4018_v57 = vld [vmem:[%s6076_s1 + $0x160] ss:$8 sps:$4 sm:$0xff]   ;;  %v4019_v58 = vld [vmem:[%s6076_s1 + $0x174] ss:$8 sps:$4 sm:$0xff]  }
  0x12   :  { %v4021_v59 = vld [vmem:[%s6076_s1 + $0x170] ss:$8 sps:$4 sm:$0xff]   ;;  %v4022_v60 = vld [vmem:[%s6076_s1 + $0x184] ss:$8 sps:$4 sm:$0xff]   ;;  %v4042_v35 = vld [vmem:[%s6076_s1 + $0x1e0] ss:$8 sps:$4 sm:$0xff]  }
  0x13   :  { %223 = vmatpush1.bf16.msra.mxu0 %v3964_v9  ;;  %547 = vmatpush1.bf16.msra.mxu1 %v4003_v47  ;;  %v3480_v1 = vld [vmem:[%s6078_s2 + $0x400] ss:$8 sm:$0x3]  ;;  %v4043_v36 = vld [vmem:[%s6076_s1 + $0x1f4] ss:$8 sps:$4 sm:$0xff]  }
  0x14   :  { %224 = vmatprep.subr.bf16.mxu0 %v3965_v10  ;;  %548 = vmatprep.subr.bf16.mxu1 %v4004_v48  ;;  %v4659_v4 = vrot.slane %v3480_v1, %v4651_v63  ;;  %v4662_v5 = vrot.slane %v3480_v1, %v4653_v0  ;;  %v3513_v44 = vld [vmem:[%s6078_s2 + $0x401] ss:$8 sm:$0x3]  ;;  %v3514_v45 = vld [vmem:[%s6078_s2 + $0x402] ss:$8 sm:$0x3] }
  0x15   :  { %v310_v46 = vrot.slane %v3513_v44, %v4651_v63  ;;  %v314_v47 = vrot.slane %v3513_v44, %v4653_v0 }
  0x17   :  { %225 = vmatpush1.bf16.msra.mxu0 %v3967_v11  ;;  %549 = vmatpush1.bf16.msra.mxu1 %v4006_v49 }
  0x18   :  { %226 = vmatprep.subr.bf16.mxu0 %v3968_v12  ;;  %550 = vmatprep.subr.bf16.mxu1 %v4007_v50 }
  0x1b   :  { %227 = vmatpush1.bf16.msra.mxu0 %v3970_v15  ;;  %551 = vmatpush1.bf16.msra.mxu1 %v4009_v51  ;;  %v327_v51 = vrot.slane %v3514_v45, %v4651_v63 }
  0x1c   :  { %228 = vmatprep.subr.bf16.mxu0 %v3971_v16  ;;  %552 = vmatprep.subr.bf16.mxu1 %v4010_v52  ;;  %v331_v52 = vrot.slane %v3514_v45, %v4653_v0 }
  0x1f   :  { %229 = vmatpush1.bf16.msra.mxu0 %v3973_v18  ;;  %553 = vmatpush1.bf16.msra.mxu1 %v4012_v53 }
  0x20   :  { %230 = vmatprep.subr.bf16.mxu0 %v3974_v19  ;;  %554 = vmatprep.subr.bf16.mxu1 %v4013_v54 }
  0x23   :  { %231 = vmatpush1.bf16.msra.mxu0 %v3976_v20  ;;  %555 = vmatpush1.bf16.msra.mxu1 %v4015_v55 }
  0x24   :  { %232 = vmatprep.subr.bf16.mxu0 %v3977_v21  ;;  %556 = vmatprep.subr.bf16.mxu1 %v4016_v56 }
  0x27   :  { %233 = vmatpush1.bf16.msra.mxu0 %v3979_v22  ;;  %557 = vmatpush1.bf16.msra.mxu1 %v4018_v57 }
  0x28   :  { %234 = vmatprep.subr.bf16.mxu0 %v3980_v23  ;;  %558 = vmatprep.subr.bf16.mxu1 %v4019_v58  ;;  %v4024_v23 = vld [vmem:[%s6076_s1 + $0x180] ss:$8 sps:$4 sm:$0xff]  }
  0x2b   :  { %235 = vmatpush1.bf16.msra.mxu0 %v3982_v24  ;;  %559 = vmatpush1.bf16.msra.mxu1 %v4021_v59  ;;  %v4025_v24 = vld [vmem:[%s6076_s1 + $0x194] ss:$8 sps:$4 sm:$0xff]  }
  0x2c   :  { %236 = vmatprep.subr.bf16.mxu0 %v3983_v25  ;;  %560 = vmatprep.subr.bf16.mxu1 %v4022_v60  ;;  %v4027_v25 = vld [vmem:[%s6076_s1 + $0x190] ss:$8 sps:$4 sm:$0xff]  }
  0x2f   :  { %237 = vmatpush1.bf16.msra.mxu0 %v3985_v26  ;;  %561 = vmatpush1.bf16.msra.mxu1 %v4024_v23  ;;  %v4028_v26 = vld [vmem:[%s6076_s1 + $0x1a4] ss:$8 sps:$4 sm:$0xff]   ;;  %v4049_v23 = vld [vmem:[%s6076_s1 + $0x210] ss:$8 sps:$4 sm:$0xff]  }
  0x30   :  { %238 = vmatprep.subr.bf16.mxu0 %v3986_v27  ;;  %562 = vmatprep.subr.bf16.mxu1 %v4025_v24  ;;  %v4030_v27 = vld [vmem:[%s6076_s1 + $0x1a0] ss:$8 sps:$4 sm:$0xff]   ;;  %v4054_v24 = vld [vmem:[%s6076_s1 + $0x224] ss:$8 sps:$4 sm:$0xff]  }
  0x33   :  { %239 = vmatpush1.bf16.msra.mxu0 %v3988_v28  ;;  %563 = vmatpush1.bf16.msra.mxu1 %v4027_v25  ;;  %v4031_v28 = vld [vmem:[%s6076_s1 + $0x1b4] ss:$8 sps:$4 sm:$0xff]   ;;  %v4052_v25 = vld [vmem:[%s6076_s1 + $0x220] ss:$8 sps:$4 sm:$0xff]  }
  0x34   :  { %240 = vmatprep.subr.bf16.mxu0 %v3989_v29  ;;  %564 = vmatprep.subr.bf16.mxu1 %v4028_v26  ;;  %v4033_v29 = vld [vmem:[%s6076_s1 + $0x1b0] ss:$8 sps:$4 sm:$0xff]   ;;  %v4057_v26 = vld [vmem:[%s6076_s1 + $0x234] ss:$8 sps:$4 sm:$0xff]  }
  0x37   :  { %241 = vmatpush1.bf16.msra.mxu0 %v3991_v30  ;;  %565 = vmatpush1.bf16.msra.mxu1 %v4030_v27  ;;  %v4034_v30 = vld [vmem:[%s6076_s1 + $0x1c4] ss:$8 sps:$4 sm:$0xff]   ;;  %v4055_v27 = vld [vmem:[%s6076_s1 + $0x230] ss:$8 sps:$4 sm:$0xff]  }
  0x38   :  { %242 = vmatprep.subr.bf16.mxu0 %v3992_v31  ;;  %566 = vmatprep.subr.bf16.mxu1 %v4031_v28  ;;  %v4036_v31 = vld [vmem:[%s6076_s1 + $0x1c0] ss:$8 sps:$4 sm:$0xff]   ;;  %v4060_v28 = vld [vmem:[%s6076_s1 + $0x244] ss:$8 sps:$4 sm:$0xff]  }
  0x3b   :  { %243 = vmatpush1.bf16.msra.mxu0 %v3994_v32  ;;  %567 = vmatpush1.bf16.msra.mxu1 %v4033_v29  ;;  %v4037_v32 = vld [vmem:[%s6076_s1 + $0x1d4] ss:$8 sps:$4 sm:$0xff]   ;;  %v4058_v29 = vld [vmem:[%s6076_s1 + $0x240] ss:$8 sps:$4 sm:$0xff]  }
  0x3c   :  { %244 = vmatprep.subr.bf16.mxu0 %v3995_v33  ;;  %568 = vmatprep.subr.bf16.mxu1 %v4034_v30  ;;  %v4039_v33 = vld [vmem:[%s6076_s1 + $0x1d0] ss:$8 sps:$4 sm:$0xff]   ;;  %v4063_v30 = vld [vmem:[%s6076_s1 + $0x254] ss:$8 sps:$4 sm:$0xff]  }
  0x3f   :  { %245 = vmatpush1.bf16.msra.mxu0 %v3997_v34  ;;  %569 = vmatpush1.bf16.msra.mxu1 %v4036_v31  ;;  %v4040_v34 = vld [vmem:[%s6076_s1 + $0x1e4] ss:$8 sps:$4 sm:$0xff]   ;;  %v4061_v31 = vld [vmem:[%s6076_s1 + $0x250] ss:$8 sps:$4 sm:$0xff]  }
  0x40   :  { %570 = vmatprep.subr.bf16.mxu1 %v4037_v32  ;;  %v4066_v32 = vld [vmem:[%s6076_s1 + $0x264] ss:$8 sps:$4 sm:$0xff]  }
  0x42   :  { %247 = vmatmul.mubr.bf16.vlgmr.msra.gmra.mrb[0].mxu0 %v18_v37  ;;  %v4045_v37 = vld [vmem:[%s6076_s1 + $0x1f0] ss:$8 sps:$4 sm:$0xff]  }
  0x43   :  { %571 = vmatpush1.bf16.msra.mxu1 %v4039_v33  ;;  %v4064_v33 = vld [vmem:[%s6076_s1 + $0x260] ss:$8 sps:$4 sm:$0xff]  }
  0x44   :  { %572 = vmatprep.subr.bf16.mxu1 %v4040_v34  ;;  %v4069_v34 = vld [vmem:[%s6076_s1 + $0x274] ss:$8 sps:$4 sm:$0xff]  }
  0x47   :  { %573 = vmatpush1.bf16.msra.mxu1 %v4042_v35  ;;  %v4067_v35 = vld [vmem:[%s6076_s1 + $0x270] ss:$8 sps:$4 sm:$0xff]  }
  0x48   :  { %574 = vmatprep.subr.bf16.mxu1 %v4043_v36  ;;  %v4072_v36 = vld [vmem:[%s6076_s1 + $0x284] ss:$8 sps:$4 sm:$0xff]  }
  0x4b   :  { %575 = vmatpush1.bf16.msra.mxu1 %v4045_v37  ;;  %v4070_v37 = vld [vmem:[%s6076_s1 + $0x280] ss:$8 sps:$4 sm:$0xff]  }
 0x115   :  { %v248_v38 = vpop.f32.mrb[0].mxu0 }
 0x116   :  { %v250_v39 = vpop.f32.mrb[1].mxu0 }
 0x117   :  { %v252_v40 = vpop.f32.mrb[2].mxu0  ;;  %v257_v41 = vadd.f32 %v250_v39, %v248_v38 }
 0x118   :  { %v254_v42 = vpop.f32.mrb[3].mxu0 }
 0x119   :  { %258 = vadd.xlane.f32.xlu0 %v257_v41  ;;  %v260_v43 = vadd.f32 %v254_v42, %v252_v40 }
 0x11d   :  { %261 = vadd.xlane.f32.xlu0 %v260_v43 }
 0x1a6   :  { %v259_v2 = vpop.xlane.xlu0 %258 }
 0x1a7   :  { %v263_v3 = vmul.f32 0.015625, %v259_v2 }
 0x1a9   :  { %v265_v6 = vsub.f32 %v248_v38, %v263_v3  ;;  %v266_v7 = vsub.f32 %v250_v39, %v263_v3 }
 0x1aa   :  { %v262_v8 = vpop.xlane.xlu0 %261 }
 0x1ab   :  { %v264_v9 = vmul.f32 0.015625, %v262_v8  ;;  %v280_v10 = vmul.f32 %v4659_v4, %v265_v6  ;;  %v281_v11 = vmul.f32 %v4662_v5, %v266_v7 }
 0x1ad   :  { %v267_v12 = vsub.f32 %v252_v40, %v264_v9  ;;  %v268_v14 = vsub.f32 %v254_v42, %v264_v9  ;;  %v284_v15 = vmul.f32 %v280_v10, %v280_v10  ;;  %v285_v16 = vmul.f32 %v281_v11, %v281_v11 }
 0x1af   :  { %v282_v17 = vmul.f32 %v4659_v4, %v267_v12  ;;  %v283_v18 = vmul.f32 %v4662_v5, %v268_v14  ;;  %v288_v19 = vadd.f32 %v285_v16, %v284_v15 }
 0x1b1   :  { %289 = vadd.xlane.f32.xlu1 %v288_v19  ;;  %v286_v20 = vmul.f32 %v282_v17, %v282_v17  ;;  %v287_v21 = vmul.f32 %v283_v18, %v283_v18 }
 0x1b3   :  { %v291_v22 = vadd.f32 %v287_v21, %v286_v20  ;;  %v4046_v21 = vld [vmem:[%s6076_s1 + $0x200] ss:$8 sps:$4 sm:$0xff]  }
 0x1b5   :  { %292 = vadd.xlane.f32.xlu1 %v291_v22  ;;  %v4048_v22 = vld [vmem:[%s6076_s1 + $0x204] ss:$8 sps:$4 sm:$0xff]  }
 0x1b6   :  { %863 = vmatprep.subr.bf16.mxu0 %v4048_v22 }
 0x1b7   :  { %864 = vmatpush1.bf16.msra.mxu0 %v4046_v21 }
 0x23e   :  { %v290_v38 = vpop.xlane.xlu1 %289 }
 0x23f   :  { %v294_v39 = vmul.f32 0.015625, %v290_v38 }
 0x241   :  { %v296_v40 = vadd.f32 1e-05, %v294_v39 }
 0x242   :  { %v293_v41 = vpop.xlane.xlu1 %292 }
 0x243   :  { %4430 = vrsqrt.f32 %v296_v40  ;;  %v295_v42 = vmul.f32 0.015625, %v293_v41 }
 0x245   :  { %v297_v43 = vadd.f32 1e-05, %v295_v42 }
 0x247   :  { %4432 = vrsqrt.f32 %v297_v43 }
 0x24d   :  { %v4431_v48 = vpop.eup %4430 }
 0x24e   :  { %v300_v49 = vmul.f32 %v4431_v48, %v280_v10  ;;  %v301_v50 = vmul.f32 %v4431_v48, %v281_v11 }
 0x250   :  { %v318_v53 = vmul.f32 %v314_v47, %v301_v50  ;;  %v317_v54 = vmul.f32 %v310_v46, %v300_v49 }
 0x251   :  { %v4433_v55 = vpop.eup %4432 }
 0x252   :  { %v302_v56 = vmul.f32 %v4433_v55, %v282_v17  ;;  %v303_v57 = vmul.f32 %v4433_v55, %v283_v18  ;;  %v335_v58 = vadd.f32 %v331_v52, %v318_v53  ;;  %v334_v59 = vadd.f32 %v327_v51, %v317_v54 }
 0x254   :  { %v320_v60 = vmul.f32 %v314_v47, %v303_v57  ;;  %v319_v61 = vmul.f32 %v310_v46, %v302_v56  ;;  %v343_v1 = vmul.f32 0.2, %v335_v58  ;;  %v342_v3 = vmul.f32 0.2, %v334_v59  ;;  %v4075_v56 = vld [vmem:[%s6076_s1 + $0x294] ss:$8 sps:$4 sm:$0xff]  }
 0x255   :  { %vm339_vm0 = vcmp.ge.f32.partialorder %v335_v58, 0.0  ;;  %vm338_vm1 = vcmp.ge.f32.partialorder %v334_v59, 0.0  ;;  %v4073_v57 = vld [vmem:[%s6076_s1 + $0x290] ss:$8 sps:$4 sm:$0xff]  }
 0x256   :  { %v337_v62 = vadd.f32 %v331_v52, %v320_v60  ;;  %v336_v2 = vadd.f32 %v327_v51, %v319_v61  ;;  %v347_v8 = vsel %vm339_vm0, %v335_v58, %v343_v1  ;;  %v346_v10 = vsel %vm338_vm1, %v334_v59, %v342_v3  ;;  %v4078_v58 = vld [vmem:[%s6076_s1 + $0x2a4] ss:$8 sps:$4 sm:$0xff]   ;;  %v4076_v59 = vld [vmem:[%s6076_s1 + $0x2a0] ss:$8 sps:$4 sm:$0xff]   ;;  %v4081_v60 = vld [vmem:[%s6076_s1 + $0x2b4] ss:$8 sps:$4 sm:$0xff]  }
 0x257   :  { %v4079_v61 = vld [vmem:[%s6076_s1 + $0x2b0] ss:$8 sps:$4 sm:$0xff]   ;;  %v4082_v1 = vld [vmem:[%s6076_s1 + $0x2c0] ss:$8 sps:$4 sm:$0xff]  }
 0x258   :  { %vm341_vm2 = vcmp.ge.f32.partialorder %v337_v62, 0.0  ;;  %v345_v6 = vmul.f32 0.2, %v337_v62  ;;  %vm340_vm3 = vcmp.ge.f32.partialorder %v336_v2, 0.0  ;;  %v344_v7 = vmul.f32 0.2, %v336_v2 }
 0x259   :  { %v4085_v3 = vld [vmem:[%s6076_s1 + $0x2d0] ss:$8 sps:$4 sm:$0xff]  }
 0x25a   :  { %v349_v9 = vsel %vm341_vm2, %v337_v62, %v345_v6  ;;  %v348_v11 = vsel %vm340_vm3, %v336_v2, %v344_v7  ;;  %v4084_v62 = vld [vmem:[%s6076_s1 + $0x2c4] ss:$8 sps:$4 sm:$0xff]   ;;  %v4087_v2 = vld [vmem:[%s6076_s1 + $0x2d4] ss:$8 sps:$4 sm:$0xff]   ;;  %v4088_v6 = vld [vmem:[%s6076_s1 + $0x2e0] ss:$8 sps:$4 sm:$0xff]  }
 0x25b   :  { %v351_v12 = vpack.c.bf16 %v349_v9, %v347_v8  ;;  %v350_v14 = vpack.c.bf16 %v348_v11, %v346_v10  ;;  %v4090_v7 = vld [vmem:[%s6076_s1 + $0x2e4] ss:$8 sps:$4 sm:$0xff]   ;;  %v4093_v8 = vld [vmem:[%s6076_s1 + $0x2f4] ss:$8 sps:$4 sm:$0xff]   ;;  %v4091_v9 = vld [vmem:[%s6076_s1 + $0x2f0] ss:$8 sps:$4 sm:$0xff]  }
 0x25d   :  { %576 = vmatprep.mubr.bf16.mxu1 %v351_v12 }
 0x25e   :  { %577 = vmatmul.mubr.bf16.vlgmr.msra.gmra.mrb[0].mxu1 %v350_v14 }
 0x25f   :  { %1104 = vmatprep.mubr.f32.mxu1 %v4531_v13  ;;  %v4051_v13 = vld [vmem:[%s6076_s1 + $0x214] ss:$8 sps:$4 sm:$0xff]  }
 0x260   :  { %865 = vmatprep.subr.bf16.mxu0 %v4051_v13 }
 0x261   :  { %866 = vmatpush1.bf16.msra.mxu0 %v4049_v23 }
 0x262   :  { %867 = vmatprep.subr.bf16.mxu0 %v4054_v24 }
 0x265   :  { %868 = vmatpush1.bf16.msra.mxu0 %v4052_v25 }
 0x266   :  { %869 = vmatprep.subr.bf16.mxu0 %v4057_v26 }
 0x269   :  { %870 = vmatpush1.bf16.msra.mxu0 %v4055_v27 }
 0x26a   :  { %871 = vmatprep.subr.bf16.mxu0 %v4060_v28 }
 0x26d   :  { %872 = vmatpush1.bf16.msra.mxu0 %v4058_v29 }
 0x26e   :  { %873 = vmatprep.subr.bf16.mxu0 %v4063_v30 }
 0x271   :  { %874 = vmatpush1.bf16.msra.mxu0 %v4061_v31 }
 0x272   :  { %875 = vmatprep.subr.bf16.mxu0 %v4066_v32 }
 0x275   :  { %876 = vmatpush1.bf16.msra.mxu0 %v4064_v33 }
 0x276   :  { %877 = vmatprep.subr.bf16.mxu0 %v4069_v34 }
 0x279   :  { %878 = vmatpush1.bf16.msra.mxu0 %v4067_v35 }
 0x27a   :  { %879 = vmatprep.subr.bf16.mxu0 %v4072_v36 }
 0x27d   :  { %880 = vmatpush1.bf16.msra.mxu0 %v4070_v37 }
 0x27e   :  { %881 = vmatprep.subr.bf16.mxu0 %v4075_v56  ;;  %v982_v56 = vld [vmem:[%s6078_s2 + $0x30] sm:$0xff] }
 0x281   :  { %882 = vmatpush1.bf16.msra.mxu0 %v4073_v57  ;;  %v985_v57 = vld [vmem:[%s6078_s2 + $0x48] sm:$0xff] }
 0x282   :  { %883 = vmatprep.subr.bf16.mxu0 %v4078_v58  ;;  %v987_v58 = vld [vmem:[%s6078_s2 + $0x58] sm:$0xff] }
 0x285   :  { %884 = vmatpush1.bf16.msra.mxu0 %v4076_v59 }
 0x286   :  { %885 = vmatprep.subr.bf16.mxu0 %v4081_v60  ;;  %v3830_v60 = vpack.c.bf16 %v987_v58, %v985_v57  ;;  %v1025_v57 = vld [vmem:[%s6078_s2 + $0x188] sm:$0xff]  ;;  %v1027_v58 = vld [vmem:[%s6078_s2 + $0x198] sm:$0xff] }
 0x289   :  { %886 = vmatpush1.bf16.msra.mxu0 %v4079_v61  ;;  %v984_v61 = vld [vmem:[%s6078_s2 + $0x40] sm:$0xff] }
 0x28a   :  { %887 = vmatprep.subr.bf16.mxu0 %v4084_v62  ;;  %v986_v62 = vld [vmem:[%s6078_s2 + $0x50] sm:$0xff] }
 0x28d   :  { %888 = vmatpush1.bf16.msra.mxu0 %v4082_v1  ;;  %v989_v1 = vld [vmem:[%s6078_s2 + $0x68] sm:$0xff] }
 0x28e   :  { %889 = vmatprep.subr.bf16.mxu0 %v4087_v2  ;;  %v991_v2 = vld [vmem:[%s6078_s2 + $0x78] sm:$0xff] }
 0x291   :  { %890 = vmatpush1.bf16.msra.mxu0 %v4085_v3  ;;  %v3832_v3 = vpack.c.bf16 %v986_v62, %v984_v61  ;;  %v1024_v61 = vld [vmem:[%s6078_s2 + $0x180] sm:$0xff]  ;;  %v1026_v62 = vld [vmem:[%s6078_s2 + $0x190] sm:$0xff] }
 0x292   :  { %891 = vmatprep.subr.bf16.mxu0 %v4090_v7  ;;  %v988_v7 = vld [vmem:[%s6078_s2 + $0x60] sm:$0xff] }
 0x295   :  { %892 = vmatpush1.bf16.msra.mxu0 %v4088_v6  ;;  %v3834_v6 = vpack.c.bf16 %v991_v2, %v989_v1  ;;  %v1029_v1 = vld [vmem:[%s6078_s2 + $0x1a8] sm:$0xff]  ;;  %v1031_v2 = vld [vmem:[%s6078_s2 + $0x1b8] sm:$0xff] }
 0x296   :  { %893 = vmatprep.subr.bf16.mxu0 %v4093_v8  ;;  %v990_v8 = vld [vmem:[%s6078_s2 + $0x70] sm:$0xff] }
 0x299   :  { %894 = vmatpush1.bf16.msra.mxu0 %v4091_v9  ;;  %v993_v9 = vld [vmem:[%s6078_s2 + $0x88] sm:$0xff] }
 0x331   :  { %v578_v15 = vpop.f32.mrb[0].mxu1 }
 0x332   :  { %v580_v16 = vpop.f32.mrb[1].mxu1 }
 0x333   :  { %v582_v17 = vpop.f32.mrb[2].mxu1  ;;  %v587_v18 = vadd.f32 %v580_v16, %v578_v15 }
 0x334   :  { %v584_v19 = vpop.f32.mrb[3].mxu1 }
 0x335   :  { %588 = vadd.xlane.f32.xlu0 %v587_v18  ;;  %v590_v20 = vadd.f32 %v584_v19, %v582_v17  ;;  %v3548_v18 = vld [vmem:[%s6078_s2 + $0x404] ss:$8 sm:$0x3] }
 0x336   :  { %v646_v23 = vrot.slane %v3548_v18, %v4651_v63  ;;  %v650_v24 = vrot.slane %v3548_v18, %v4653_v0 }
 0x337   :  { %591 = vadd.xlane.f32.xlu1 %v590_v20 }
 0x3c2   :  { %v589_v38 = vpop.xlane.xlu0 %588 }
 0x3c3   :  { %v593_v39 = vmul.f32 0.015625, %v589_v38 }
 0x3c4   :  { %v592_v40 = vpop.xlane.xlu1 %591 }
 0x3c5   :  { %v595_v41 = vsub.f32 %v578_v15, %v593_v39  ;;  %v596_v42 = vsub.f32 %v580_v16, %v593_v39  ;;  %v594_v43 = vmul.f32 0.015625, %v592_v40 }
 0x3c7   :  { %v599_v44 = vmul.f32 %v595_v41, %v4659_v4  ;;  %v600_v45 = vmul.f32 %v596_v42, %v4662_v5  ;;  %v597_v46 = vsub.f32 %v582_v17, %v594_v43  ;;  %v598_v47 = vsub.f32 %v584_v19, %v594_v43  ;;  %v3547_v17 = vld [vmem:[%s6078_s2 + $0x403] ss:$8 sm:$0x3] }
 0x3c8   :  { %v629_v19 = vrot.slane %v3547_v17, %v4651_v63  ;;  %v633_v20 = vrot.slane %v3547_v17, %v4653_v0  ;;  %v999_v17 = vld [vmem:[%s6078_s2 + $0xb8] sm:$0xff] }
 0x3c9   :  { %v601_v48 = vmul.f32 %v597_v46, %v4659_v4  ;;  %v602_v49 = vmul.f32 %v598_v47, %v4662_v5  ;;  %v603_v50 = vmul.f32 %v599_v44, %v599_v44  ;;  %v604_v51 = vmul.f32 %v600_v45, %v600_v45  ;;  %v977_v46 = vld [vmem:[%s6078_s2 + $0x8] sm:$0xff]  ;;  %v979_v47 = vld [vmem:[%s6078_s2 + $0x18] sm:$0xff] }
 0x3cb   :  { %v607_v52 = vadd.f32 %v604_v51, %v603_v50  ;;  %v605_v53 = vmul.f32 %v601_v48, %v601_v48  ;;  %v606_v54 = vmul.f32 %v602_v49, %v602_v49  ;;  %v978_v50 = vld [vmem:[%s6078_s2 + $0x10] sm:$0xff]  ;;  %v981_v51 = vld [vmem:[%s6078_s2 + $0x28] sm:$0xff] }
 0x3cd   :  { %608 = vadd.xlane.f32.xlu0 %v607_v52  ;;  %v610_v55 = vadd.f32 %v606_v54, %v605_v53  ;;  %v983_v52 = vld [vmem:[%s6078_s2 + $0x38] sm:$0xff] }
 0x3ce   :  { %v3826_v54 = vpack.c.bf16 %v983_v52, %v981_v51  ;;  %v1021_v51 = vld [vmem:[%s6078_s2 + $0x168] sm:$0xff]  ;;  %v1023_v52 = vld [vmem:[%s6078_s2 + $0x178] sm:$0xff] }
 0x3cf   :  { %611 = vadd.xlane.f32.xlu1 %v610_v55  ;;  %v980_v55 = vld [vmem:[%s6078_s2 + $0x20] sm:$0xff] }
 0x3d0   :  { %v3828_v59 = vpack.c.bf16 %v982_v56, %v980_v55  ;;  %v1020_v55 = vld [vmem:[%s6078_s2 + $0x160] sm:$0xff]  ;;  %v1022_v56 = vld [vmem:[%s6078_s2 + $0x170] sm:$0xff] }
 0x45a   :  { %v609_v10 = vpop.xlane.xlu0 %608 }
 0x45b   :  { %v613_v11 = vmul.f32 0.015625, %v609_v10  ;;  %v995_v10 = vld [vmem:[%s6078_s2 + $0x98] sm:$0xff] }
 0x45c   :  { %v612_v12 = vpop.xlane.xlu1 %611 }
 0x45d   :  { %v615_v14 = vadd.f32 1e-05, %v613_v11  ;;  %v614_v15 = vmul.f32 0.015625, %v612_v12  ;;  %v3836_v11 = vpack.c.bf16 %v990_v8, %v988_v7  ;;  %v3838_v12 = vpack.c.bf16 %v995_v10, %v993_v9  ;;  %v1028_v7 = vld [vmem:[%s6078_s2 + $0x1a0] sm:$0xff]  ;;  %v1030_v8 = vld [vmem:[%s6078_s2 + $0x1b0] sm:$0xff]  ;;  %v1033_v9 = vld [vmem:[%s6078_s2 + $0x1c8] sm:$0xff] }
 0x45e   :  { %v1035_v10 = vld [vmem:[%s6078_s2 + $0x1d8] sm:$0xff] }
 0x45f   :  { %4434 = vrsqrt.f32 %v615_v14  ;;  %v616_v16 = vadd.f32 1e-05, %v614_v15  ;;  %v992_v14 = vld [vmem:[%s6078_s2 + $0x80] sm:$0xff]  ;;  %v994_v15 = vld [vmem:[%s6078_s2 + $0x90] sm:$0xff] }
 0x460   :  { %v3840_v18 = vpack.c.bf16 %v994_v15, %v992_v14  ;;  %v1032_v14 = vld [vmem:[%s6078_s2 + $0x1c0] sm:$0xff]  ;;  %v1034_v15 = vld [vmem:[%s6078_s2 + $0x1d0] sm:$0xff] }
 0x461   :  { %4436 = vrsqrt.f32 %v616_v16  ;;  %v997_v16 = vld [vmem:[%s6078_s2 + $0xa8] sm:$0xff] }
 0x469   :  { %v4435_v21 = vpop.eup %4434 }
 0x46a   :  { %v619_v22 = vmul.f32 %v4435_v21, %v599_v44  ;;  %v620_v13 = vmul.f32 %v4435_v21, %v600_v45  ;;  %v998_v21 = vld [vmem:[%s6078_s2 + $0xb0] sm:$0xff] }
 0x46b   :  { %v4437_v25 = vpop.eup %4436 }
 0x46c   :  { %v636_v26 = vmul.f32 %v629_v19, %v619_v22  ;;  %v621_v27 = vmul.f32 %v4437_v25, %v601_v48  ;;  %v622_v28 = vmul.f32 %v4437_v25, %v602_v49  ;;  %v637_v29 = vmul.f32 %v633_v20, %v620_v13  ;;  %v976_v48 = vld [vmem:[%s6078_s2] sm:$0xff]  ;;  %v1001_v22 = vld [vmem:[%s6078_s2 + $0xc8] sm:$0xff]  ;;  %v1003_v13 = vld [vmem:[%s6078_s2 + $0xd8] sm:$0xff] }
 0x46d   :  { %v3822_v49 = vpack.c.bf16 %v979_v47, %v977_v46  ;;  %v3824_v53 = vpack.c.bf16 %v978_v50, %v976_v48  ;;  %v1000_v25 = vld [vmem:[%s6078_s2 + $0xc0] sm:$0xff]  ;;  %v1019_v46 = vld [vmem:[%s6078_s2 + $0x158] sm:$0xff]  ;;  %v1018_v50 = vld [vmem:[%s6078_s2 + $0x150] sm:$0xff] }
 0x46e   :  { %v638_v30 = vmul.f32 %v629_v19, %v621_v27  ;;  %v639_v31 = vmul.f32 %v633_v20, %v622_v28  ;;  %v654_v32 = vadd.f32 %v650_v24, %v637_v29  ;;  %v653_v33 = vadd.f32 %v646_v23, %v636_v26  ;;  %v996_v20 = vld [vmem:[%s6078_s2 + $0xa0] sm:$0xff]  ;;  %v1002_v26 = vld [vmem:[%s6078_s2 + $0xd0] sm:$0xff]  ;;  %v1005_v27 = vld [vmem:[%s6078_s2 + $0xe8] sm:$0xff] }
 0x46f   :  { %3823 = vmatprep.subr.bf16.mxu1 %v3822_v49  ;;  %v3842_v19 = vpack.c.bf16 %v999_v17, %v997_v16  ;;  %v1007_v28 = vld [vmem:[%s6078_s2 + $0xf8] sm:$0xff]  ;;  %v3848_v29 = vpack.c.bf16 %v1002_v26, %v1000_v25  ;;  %v1016_v49 = vld [vmem:[%s6078_s2 + $0x140] sm:$0xff]  ;;  %v1037_v16 = vld [vmem:[%s6078_s2 + $0x1e8] sm:$0xff] }
 0x470   :  { %v656_v34 = vadd.f32 %v650_v24, %v639_v31  ;;  %v662_v35 = vmul.f32 0.2, %v654_v32  ;;  %v655_v36 = vadd.f32 %v646_v23, %v638_v30  ;;  %vm658_vm4 = vcmp.ge.f32.partialorder %v654_v32, 0.0  ;;  %3825 = vmatpush1.bf16.msra.mxu1 %v3824_v53  ;;  %v1004_v31 = vld [vmem:[%s6078_s2 + $0xe0] sm:$0xff]  ;;  %v1039_v17 = vld [vmem:[%s6078_s2 + $0x1f8] sm:$0xff] }
 0x471   :  { %v661_v37 = vmul.f32 0.2, %v653_v33  ;;  %vm657_vm6 = vcmp.ge.f32.partialorder %v653_v33, 0.0  ;;  %3827 = vmatprep.subr.bf16.mxu1 %v3826_v54  ;;  %v3844_v23 = vpack.c.bf16 %v998_v21, %v996_v20  ;;  %v3846_v24 = vpack.c.bf16 %v1003_v13, %v1001_v22  ;;  %v1036_v20 = vld [vmem:[%s6078_s2 + $0x1e0] sm:$0xff]  ;;  %v1038_v21 = vld [vmem:[%s6078_s2 + $0x1f0] sm:$0xff] }
 0x472   :  { %vm660_vm5 = vcmp.ge.f32.partialorder %v656_v34, 0.0  ;;  %v664_v38 = vmul.f32 0.2, %v656_v34  ;;  %vm659_vm7 = vcmp.ge.f32.partialorder %v655_v36, 0.0  ;;  %v663_v39 = vmul.f32 0.2, %v655_v36 }
 0x473   :  { %v666_v40 = vsel %vm658_vm4, %v654_v32, %v662_v35  ;;  %v665_v43 = vsel %vm657_vm6, %v653_v33, %v661_v37  ;;  %v3850_v30 = vpack.c.bf16 %v1007_v28, %v1005_v27  ;;  %v1006_v32 = vld [vmem:[%s6078_s2 + $0xf0] sm:$0xff]  ;;  %v1009_v33 = vld [vmem:[%s6078_s2 + $0x108] sm:$0xff]  ;;  %v1008_v37 = vld [vmem:[%s6078_s2 + $0x100] sm:$0xff]  ;;  %v3864_v53 = vpack.c.bf16 %v1018_v50, %v1016_v49 }
 0x474   :  { %v668_v41 = vsel %vm660_vm5, %v656_v34, %v664_v38  ;;  %v667_v44 = vsel %vm659_vm7, %v655_v36, %v663_v39  ;;  %3829 = vmatpush1.bf16.msra.mxu1 %v3828_v59  ;;  %v1011_v34 = vld [vmem:[%s6078_s2 + $0x118] sm:$0xff]  ;;  %v3852_v35 = vpack.c.bf16 %v1006_v32, %v1004_v31  ;;  %v1010_v38 = vld [vmem:[%s6078_s2 + $0x110] sm:$0xff]  ;;  %v1013_v39 = vld [vmem:[%s6078_s2 + $0x128] sm:$0xff]  ;;  %v3866_v54 = vpack.c.bf16 %v1023_v52, %v1021_v51 }
 0x475   :  { %v670_v42 = vpack.c.bf16 %v668_v41, %v666_v40  ;;  %v669_v45 = vpack.c.bf16 %v667_v44, %v665_v43  ;;  %3831 = vmatprep.subr.bf16.mxu1 %v3830_v60  ;;  %v3854_v36 = vpack.c.bf16 %v1011_v34, %v1009_v33  ;;  %v1015_v40 = vld [vmem:[%s6078_s2 + $0x138] sm:$0xff]  ;;  %v3856_v41 = vpack.c.bf16 %v1010_v38, %v1008_v37  ;;  %v1012_v43 = vld [vmem:[%s6078_s2 + $0x120] sm:$0xff]  ;;  %v1014_v44 = vld [vmem:[%s6078_s2 + $0x130] sm:$0xff] }
 0x476   :  { %v3860_v47 = vpack.c.bf16 %v1014_v44, %v1012_v43  ;;  %v3868_v59 = vpack.c.bf16 %v1022_v56, %v1020_v55  ;;  %v3870_v60 = vpack.c.bf16 %v1027_v58, %v1025_v57  ;;  %v3884_v22 = vpack.c.bf16 %v1038_v21, %v1036_v20  ;;  %v4466_v13 = vld [vmem:[%s6077_s0] sm:$0xff]  ;;  %v4099_v33 = vld [vmem:[%s6076_s1 + $0x314] ss:$8 sps:$4 sm:$0xff]   ;;  %v4097_v34 = vld [vmem:[%s6076_s1 + $0x310] ss:$8 sps:$4 sm:$0xff]  }
 0x477   :  { %895 = vmatprep.mubr.bf16.mxu0 %v670_v42  ;;  %v3858_v42 = vpack.c.bf16 %v1015_v40, %v1013_v39  ;;  %v4094_v31 = vld [vmem:[%s6076_s1 + $0x300] ss:$8 sps:$4 sm:$0xff]   ;;  %v4096_v32 = vld [vmem:[%s6076_s1 + $0x304] ss:$8 sps:$4 sm:$0xff]   ;;  %v4105_v37 = vld [vmem:[%s6076_s1 + $0x334] ss:$8 sps:$4 sm:$0xff]  }
 0x478   :  { %896 = vmatmul.mubr.bf16.vlgmr.msra.gmra.mrb[4].mxu0 %v669_v45  ;;  %3833 = vmatpush1.bf16.msra.mxu1 %v3832_v3  ;;  %v1017_v45 = vld [vmem:[%s6078_s2 + $0x148] sm:$0xff]  ;;  %v3872_v3 = vpack.c.bf16 %v1026_v62, %v1024_v61  ;;  %v4103_v38 = vld [vmem:[%s6076_s1 + $0x330] ss:$8 sps:$4 sm:$0xff]  }
 0x479   :  { %3835 = vmatprep.subr.bf16.mxu1 %v3834_v6  ;;  %v3862_v48 = vpack.c.bf16 %v1019_v46, %v1017_v45  ;;  %v3874_v6 = vpack.c.bf16 %v1031_v2, %v1029_v1  ;;  %1329 = vmatprep.subr.bf16.mxu0 %v4096_v32  ;;  %v4108_v39 = vld [vmem:[%s6076_s1 + $0x344] ss:$8 sps:$4 sm:$0xff]   ;;  %v4106_v40 = vld [vmem:[%s6076_s1 + $0x340] ss:$8 sps:$4 sm:$0xff]   ;;  %v4117_v45 = vld [vmem:[%s6076_s1 + $0x374] ss:$8 sps:$4 sm:$0xff]  }
 0x47a   :  { %1330 = vmatpush1.bf16.msra.mxu0 %v4094_v31  ;;  %v4114_v43 = vld [vmem:[%s6076_s1 + $0x364] ss:$8 sps:$4 sm:$0xff]   ;;  %v4112_v44 = vld [vmem:[%s6076_s1 + $0x360] ss:$8 sps:$4 sm:$0xff]   ;;  %v4115_v46 = vld [vmem:[%s6076_s1 + $0x370] ss:$8 sps:$4 sm:$0xff]  }
 0x47b   :  { %1331 = vmatprep.subr.bf16.mxu0 %v4099_v33  ;;  %v4138_v20 = vld [vmem:[%s6076_s1 + $0x3e4] ss:$8 sps:$4 sm:$0xff]   ;;  %v4136_v21 = vld [vmem:[%s6076_s1 + $0x3e0] ss:$8 sps:$4 sm:$0xff]  }
 0x47c   :  { %3837 = vmatpush1.bf16.msra.mxu1 %v3836_v11  ;;  %v3876_v11 = vpack.c.bf16 %v1030_v8, %v1028_v7  ;;  %v4123_v7 = vld [vmem:[%s6076_s1 + $0x394] ss:$8 sps:$4 sm:$0xff]   ;;  %v4121_v8 = vld [vmem:[%s6076_s1 + $0x390] ss:$8 sps:$4 sm:$0xff]  }
 0x47d   :  { %3839 = vmatprep.subr.bf16.mxu1 %v3838_v12  ;;  %v3878_v12 = vpack.c.bf16 %v1035_v10, %v1033_v9  ;;  %v4129_v9 = vld [vmem:[%s6076_s1 + $0x3b4] ss:$8 sps:$4 sm:$0xff]   ;;  %v4127_v10 = vld [vmem:[%s6076_s1 + $0x3b0] ss:$8 sps:$4 sm:$0xff]  }
 0x47e   :  { %1332 = vmatpush1.bf16.msra.mxu0 %v4097_v34 }
 0x480   :  { %3841 = vmatpush1.bf16.msra.mxu1 %v3840_v18  ;;  %v3880_v18 = vpack.c.bf16 %v1034_v15, %v1032_v14 }
 0x481   :  { %3843 = vmatprep.subr.bf16.mxu1 %v3842_v19  ;;  %v3882_v19 = vpack.c.bf16 %v1039_v17, %v1037_v16  ;;  %v4135_v16 = vld [vmem:[%s6076_s1 + $0x3d4] ss:$8 sps:$4 sm:$0xff]   ;;  %v4133_v17 = vld [vmem:[%s6076_s1 + $0x3d0] ss:$8 sps:$4 sm:$0xff]  }
 0x484   :  { %3845 = vmatpush1.bf16.msra.mxu1 %v3844_v23  ;;  %v4467_v23 = vld [vmem:[%s6077_s0 + $0x18] sm:$0xff] }
 0x485   :  { %3847 = vmatprep.subr.bf16.mxu1 %v3846_v24  ;;  %v4468_v24 = vld [vmem:[%s6077_s0 + $0x10] sm:$0xff] }
 0x488   :  { %3849 = vmatpush1.bf16.msra.mxu1 %v3848_v29 }
 0x489   :  { %3851 = vmatprep.subr.bf16.mxu1 %v3850_v30 }
 0x48c   :  { %3853 = vmatpush1.bf16.msra.mxu1 %v3852_v35  ;;  %v4102_v35 = vld [vmem:[%s6076_s1 + $0x324] ss:$8 sps:$4 sm:$0xff]  }
 0x48d   :  { %3855 = vmatprep.subr.bf16.mxu1 %v3854_v36  ;;  %v4100_v36 = vld [vmem:[%s6076_s1 + $0x320] ss:$8 sps:$4 sm:$0xff]   ;;  %1333 = vmatprep.subr.bf16.mxu0 %v4102_v35 }
 0x48e   :  { %1334 = vmatpush1.bf16.msra.mxu0 %v4100_v36 }
 0x48f   :  { %1335 = vmatprep.subr.bf16.mxu0 %v4105_v37 }
 0x490   :  { %3857 = vmatpush1.bf16.msra.mxu1 %v3856_v41  ;;  %v4111_v41 = vld [vmem:[%s6076_s1 + $0x354] ss:$8 sps:$4 sm:$0xff]  }
 0x491   :  { %3859 = vmatprep.subr.bf16.mxu1 %v3858_v42  ;;  %v4109_v42 = vld [vmem:[%s6076_s1 + $0x350] ss:$8 sps:$4 sm:$0xff]  }
 0x492   :  { %1336 = vmatpush1.bf16.msra.mxu0 %v4103_v38 }
 0x493   :  { %1337 = vmatprep.subr.bf16.mxu0 %v4108_v39 }
 0x494   :  { %3861 = vmatpush1.bf16.msra.mxu1 %v3860_v47  ;;  %v4120_v47 = vld [vmem:[%s6076_s1 + $0x384] ss:$8 sps:$4 sm:$0xff]  }
 0x495   :  { %3863 = vmatprep.subr.bf16.mxu1 %v3862_v48  ;;  %v4118_v48 = vld [vmem:[%s6076_s1 + $0x380] ss:$8 sps:$4 sm:$0xff]  }
 0x496   :  { %1338 = vmatpush1.bf16.msra.mxu0 %v4106_v40 }
 0x497   :  { %1339 = vmatprep.subr.bf16.mxu0 %v4111_v41 }
 0x498   :  { %3865 = vmatpush1.bf16.msra.mxu1 %v3864_v53 }
 0x499   :  { %3867 = vmatprep.subr.bf16.mxu1 %v3866_v54 }
 0x49a   :  { %1340 = vmatpush1.bf16.msra.mxu0 %v4109_v42 }
 0x49b   :  { %1341 = vmatprep.subr.bf16.mxu0 %v4114_v43 }
 0x49c   :  { %3869 = vmatpush1.bf16.msra.mxu1 %v3868_v59 }
 0x49d   :  { %3871 = vmatprep.subr.bf16.mxu1 %v3870_v60 }
 0x49e   :  { %1342 = vmatpush1.bf16.msra.mxu0 %v4112_v44 }
 0x49f   :  { %1343 = vmatprep.subr.bf16.mxu0 %v4117_v45 }
 0x4a0   :  { %3873 = vmatpush1.bf16.msra.mxu1 %v3872_v3 }
 0x4a1   :  { %3875 = vmatprep.subr.bf16.mxu1 %v3874_v6 }
 0x4a2   :  { %1344 = vmatpush1.bf16.msra.mxu0 %v4115_v46 }
 0x4a3   :  { %1345 = vmatprep.subr.bf16.mxu0 %v4120_v47 }
 0x4a4   :  { %3877 = vmatpush1.bf16.msra.mxu1 %v3876_v11  ;;  %v4132_v11 = vld [vmem:[%s6076_s1 + $0x3c4] ss:$8 sps:$4 sm:$0xff]  }
 0x4a5   :  { %3879 = vmatprep.subr.bf16.mxu1 %v3878_v12  ;;  %v4130_v12 = vld [vmem:[%s6076_s1 + $0x3c0] ss:$8 sps:$4 sm:$0xff]  }
 0x4a6   :  { %1346 = vmatpush1.bf16.msra.mxu0 %v4118_v48 }
 0x4a7   :  { %1347 = vmatprep.subr.bf16.mxu0 %v4123_v7 }
 0x4a8   :  { %3881 = vmatpush1.bf16.msra.mxu1 %v3880_v18 }
 0x4a9   :  { %3883 = vmatprep.subr.bf16.mxu1 %v3882_v19 }
 0x4aa   :  { %1348 = vmatpush1.bf16.msra.mxu0 %v4121_v8 }
 0x4ac   :  { %3885 = vmatpush1.bf16.msra.mxu1 %v3884_v22  ;;  %v4141_v22 = vld [vmem:[%s6076_s1 + $0x3f4] ss:$8 sps:$4 sm:$0xff]  }
 0x4af   :  { %1105 = vmatmul.mubr.f32.vlgmr.msra.gmra.mrb[4].mxu1 %v4466_v13  ;;  %v4139_v13 = vld [vmem:[%s6076_s1 + $0x3f0] ss:$8 sps:$4 sm:$0xff]  }
 0x4b0   :  { %1110 = vmatprep.mubr.f32.mxu1 %v4467_v23 }
 0x4b3   :  { %1111 = vmatmul.mubr.f32.gmra.mrb[6].mxu1 %v4468_v24 }
 0x54b   :  { %v897_v25 = vpop.f32.mrb[4].mxu0 }
 0x54c   :  { %v899_v26 = vpop.f32.mrb[5].mxu0 }
 0x54d   :  { %v901_v27 = vpop.f32.mrb[6].mxu0  ;;  %v906_v28 = vadd.f32 %v899_v26, %v897_v25 }
 0x54e   :  { %v903_v29 = vpop.f32.mrb[7].mxu0 }
 0x54f   :  { %907 = vadd.xlane.f32.xlu0 %v906_v28  ;;  %v909_v30 = vadd.f32 %v903_v29, %v901_v27 }
 0x551   :  { %910 = vadd.xlane.f32.xlu1 %v909_v30  ;;  %v3582_v30 = vld [vmem:[%s6078_s2 + $0x406] ss:$8 sm:$0x3] }
 0x552   :  { %v965_v35 = vrot.slane %v3582_v30, %v4651_v63  ;;  %v969_v37 = vrot.slane %v3582_v30, %v4653_v0 }
 0x582   :  { %v1106_v14 = vpop.f32.mrb[4].mxu1 }
 0x583   :  { %v1108_v15 = vpop.f32.mrb[5].mxu1 }
 0x586   :  { %v1112_v18 = vpop.f32.mrb[6].mxu1 }
 0x587   :  { %v1114_v19 = vpop.f32.mrb[7].mxu1 }
 0x5dc   :  { %v908_v49 = vpop.xlane.xlu0 %907 }
 0x5dd   :  { %v912_v50 = vmul.f32 0.015625, %v908_v49 }
 0x5de   :  { %v911_v51 = vpop.xlane.xlu1 %910 }
 0x5df   :  { %v914_v52 = vsub.f32 %v897_v25, %v912_v50  ;;  %v915_v53 = vsub.f32 %v899_v26, %v912_v50  ;;  %v913_v54 = vmul.f32 0.015625, %v911_v51 }
 0x5e1   :  { %v918_v55 = vmul.f32 %v914_v52, %v4659_v4  ;;  %v919_v56 = vmul.f32 %v915_v53, %v4662_v5  ;;  %v916_v57 = vsub.f32 %v901_v27, %v913_v54  ;;  %v917_v58 = vsub.f32 %v903_v29, %v913_v54  ;;  %v3581_v29 = vld [vmem:[%s6078_s2 + $0x405] ss:$8 sm:$0x3] }
 0x5e2   :  { %v948_v31 = vrot.slane %v3581_v29, %v4651_v63  ;;  %v952_v32 = vrot.slane %v3581_v29, %v4653_v0 }
 0x5e3   :  { %v920_v59 = vmul.f32 %v916_v57, %v4659_v4  ;;  %v921_v60 = vmul.f32 %v917_v58, %v4662_v5  ;;  %v922_v61 = vmul.f32 %v918_v55, %v918_v55  ;;  %v923_v62 = vmul.f32 %v919_v56, %v919_v56  ;;  %v4124_v4 = vld [vmem:[%s6076_s1 + $0x3a0] ss:$8 sps:$4 sm:$0xff]   ;;  %v4126_v5 = vld [vmem:[%s6076_s1 + $0x3a4] ss:$8 sps:$4 sm:$0xff]  }
 0x5e4   :  { %1349 = vmatprep.subr.bf16.mxu0 %v4126_v5  ;;  %v4144_v5 = vld [vmem:[%s6076_s1 + $0x404] ss:$8 sps:$4 sm:$0xff]  }
 0x5e5   :  { %v926_v1 = vadd.f32 %v923_v62, %v922_v61  ;;  %v924_v2 = vmul.f32 %v920_v59, %v920_v59  ;;  %v925_v3 = vmul.f32 %v921_v60, %v921_v60  ;;  %1350 = vmatpush1.bf16.msra.mxu0 %v4124_v4  ;;  %v4142_v4 = vld [vmem:[%s6076_s1 + $0x400] ss:$8 sps:$4 sm:$0xff]   ;;  %1659 = vmatprep.subr.bf16.mxu1 %v4144_v5 }
 0x5e6   :  { %1351 = vmatprep.subr.bf16.mxu0 %v4129_v9  ;;  %v4147_v9 = vld [vmem:[%s6076_s1 + $0x414] ss:$8 sps:$4 sm:$0xff]   ;;  %1660 = vmatpush1.bf16.msra.mxu1 %v4142_v4 }
 0x5e7   :  { %927 = vadd.xlane.f32.xlu0 %v926_v1  ;;  %v929_v6 = vadd.f32 %v925_v3, %v924_v2  ;;  %1661 = vmatprep.subr.bf16.mxu1 %v4147_v9 }
 0x5e9   :  { %930 = vadd.xlane.f32.xlu1 %v929_v6  ;;  %1352 = vmatpush1.bf16.msra.mxu0 %v4127_v10  ;;  %v4145_v10 = vld [vmem:[%s6076_s1 + $0x410] ss:$8 sps:$4 sm:$0xff]  }
 0x5ea   :  { %1353 = vmatprep.subr.bf16.mxu0 %v4132_v11  ;;  %v4150_v11 = vld [vmem:[%s6076_s1 + $0x424] ss:$8 sps:$4 sm:$0xff]   ;;  %1662 = vmatpush1.bf16.msra.mxu1 %v4145_v10 }
 0x5eb   :  { %1663 = vmatprep.subr.bf16.mxu1 %v4150_v11  ;;  %v3616_v11 = vld [vmem:[%s6078_s2 + $0x411] ss:$8 sm:$0x3] }
 0x5ed   :  { %1354 = vmatpush1.bf16.msra.mxu0 %v4130_v12  ;;  %v4148_v12 = vld [vmem:[%s6076_s1 + $0x420] ss:$8 sps:$4 sm:$0xff]  }
 0x5ee   :  { %1355 = vmatprep.subr.bf16.mxu0 %v4135_v16  ;;  %1664 = vmatpush1.bf16.msra.mxu1 %v4148_v12  ;;  %v4156_v16 = vld [vmem:[%s6076_s1 + $0x444] ss:$8 sps:$4 sm:$0xff]   ;;  %v3617_v12 = vld [vmem:[%s6078_s2 + $0x412] ss:$8 sm:$0x3] }
 0x5f1   :  { %1356 = vmatpush1.bf16.msra.mxu0 %v4133_v17  ;;  %v4154_v17 = vld [vmem:[%s6076_s1 + $0x440] ss:$8 sps:$4 sm:$0xff]  }
 0x5f2   :  { %1357 = vmatprep.subr.bf16.mxu0 %v4138_v20  ;;  %v4162_v20 = vld [vmem:[%s6076_s1 + $0x464] ss:$8 sps:$4 sm:$0xff]  }
 0x5f5   :  { %1358 = vmatpush1.bf16.msra.mxu0 %v4136_v21  ;;  %v4160_v21 = vld [vmem:[%s6076_s1 + $0x460] ss:$8 sps:$4 sm:$0xff]  }
 0x5f6   :  { %1359 = vmatprep.subr.bf16.mxu0 %v4141_v22  ;;  %v4165_v22 = vld [vmem:[%s6076_s1 + $0x474] ss:$8 sps:$4 sm:$0xff]  }
 0x5f9   :  { %1360 = vmatpush1.bf16.msra.mxu0 %v4139_v13  ;;  %v4163_v13 = vld [vmem:[%s6076_s1 + $0x470] ss:$8 sps:$4 sm:$0xff]  }
 0x674   :  { %v928_v23 = vpop.xlane.xlu0 %927 }
 0x675   :  { %v932_v24 = vmul.f32 0.015625, %v928_v23  ;;  %v4168_v23 = vld [vmem:[%s6076_s1 + $0x484] ss:$8 sps:$4 sm:$0xff]  }
 0x676   :  { %v931_v25 = vpop.xlane.xlu1 %930 }
 0x677   :  { %v934_v26 = vadd.f32 1e-05, %v932_v24  ;;  %v933_v27 = vmul.f32 0.015625, %v931_v25  ;;  %v4166_v24 = vld [vmem:[%s6076_s1 + $0x480] ss:$8 sps:$4 sm:$0xff]  }
 0x678   :  { %v3583_v25 = vld [vmem:[%s6078_s2 + $0x410] ss:$8 sm:$0x3] }
 0x679   :  { %4438 = vrsqrt.f32 %v934_v26  ;;  %v935_v28 = vadd.f32 1e-05, %v933_v27  ;;  %v5215_v27 = vrot.slane %v3583_v25, %v4651_v63 }
 0x67b   :  { %4440 = vrsqrt.f32 %v935_v28  ;;  %v5218_v28 = vrot.slane %v3583_v25, %v4653_v0 }
 0x683   :  { %v4439_v33 = vpop.eup %4438 }
 0x684   :  { %v938_v34 = vmul.f32 %v4439_v33, %v918_v55  ;;  %v939_v36 = vmul.f32 %v4439_v33, %v919_v56 }
 0x685   :  { %v4441_v38 = vpop.eup %4440 }
 0x686   :  { %v955_v39 = vmul.f32 %v948_v31, %v938_v34  ;;  %v956_v40 = vmul.f32 %v952_v32, %v939_v36  ;;  %v940_v41 = vmul.f32 %v4441_v38, %v920_v59  ;;  %v941_v42 = vmul.f32 %v4441_v38, %v921_v60 }
 0x688   :  { %v972_v43 = vadd.f32 %v965_v35, %v955_v39  ;;  %v973_v44 = vadd.f32 %v969_v37, %v956_v40  ;;  %v957_v45 = vmul.f32 %v948_v31, %v940_v41  ;;  %v958_v46 = vmul.f32 %v952_v32, %v941_v42 }
 0x68a   :  { %v1117_v47 = vadd.f32 %v1106_v14, %v972_v43  ;;  %v1118_v48 = vadd.f32 %v1108_v15, %v973_v44  ;;  %v974_v49 = vadd.f32 %v965_v35, %v957_v45  ;;  %v975_v50 = vadd.f32 %v969_v37, %v958_v46  ;;  %v4153_v14 = vld [vmem:[%s6076_s1 + $0x434] ss:$8 sps:$4 sm:$0xff]   ;;  %v4151_v15 = vld [vmem:[%s6076_s1 + $0x430] ss:$8 sps:$4 sm:$0xff]  }
 0x68b   :  { %1665 = vmatprep.subr.bf16.mxu1 %v4153_v14  ;;  %v4171_v46 = vld [vmem:[%s6076_s1 + $0x494] ss:$8 sps:$4 sm:$0xff]   ;;  %v1425_v14 = vrot.slane %v3616_v11, %v4651_v63 }
 0x68c   :  { %v1125_v51 = vmul.f32 0.2, %v1117_v47  ;;  %v1126_v52 = vmul.f32 0.2, %v1118_v48  ;;  %v1119_v53 = vadd.f32 %v1112_v18, %v974_v49  ;;  %v1120_v54 = vadd.f32 %v1114_v19, %v975_v50  ;;  %1666 = vmatpush1.bf16.msra.mxu1 %v4151_v15  ;;  %v4159_v18 = vld [vmem:[%s6076_s1 + $0x454] ss:$8 sps:$4 sm:$0xff]  }
 0x68d   :  { %vm1121_vm8 = vcmp.ge.f32.partialorder %v1117_v47, 0.0  ;;  %vm1122_vm9 = vcmp.ge.f32.partialorder %v1118_v48, 0.0  ;;  %1667 = vmatprep.subr.bf16.mxu1 %v4156_v16  ;;  %v4157_v19 = vld [vmem:[%s6076_s1 + $0x450] ss:$8 sps:$4 sm:$0xff]   ;;  %v4172_v49 = vld [vmem:[%s6076_s1 + $0x4a0] ss:$8 sps:$4 sm:$0xff]   ;;  %v1429_v15 = vrot.slane %v3616_v11, %v4653_v0 }
 0x68e   :  { %vm1123_vm10 = vcmp.ge.f32.partialorder %v1119_v53, 0.0  ;;  %v1127_v55 = vmul.f32 0.2, %v1119_v53  ;;  %vm1124_vm11 = vcmp.ge.f32.partialorder %v1120_v54, 0.0  ;;  %v1128_v56 = vmul.f32 0.2, %v1120_v54 }
 0x68f   :  { %v5145_v57 = vsel %vm1121_vm8, %v1117_v47, %v1125_v51  ;;  %v5149_v59 = vsel %vm1122_vm9, %v1118_v48, %v1126_v52  ;;  %v4169_v47 = vld [vmem:[%s6076_s1 + $0x490] ss:$8 sps:$4 sm:$0xff]   ;;  %v4174_v48 = vld [vmem:[%s6076_s1 + $0x4a4] ss:$8 sps:$4 sm:$0xff]   ;;  %v4177_v50 = vld [vmem:[%s6076_s1 + $0x4b4] ss:$8 sps:$4 sm:$0xff]  }
 0x690   :  { %v5147_v58 = vsel %vm1123_vm10, %v1119_v53, %v1127_v55  ;;  %v5151_v60 = vsel %vm1124_vm11, %v1120_v54, %v1128_v56  ;;  %1668 = vmatpush1.bf16.msra.mxu1 %v4154_v17  ;;  %v4175_v51 = vld [vmem:[%s6076_s1 + $0x4b0] ss:$8 sps:$4 sm:$0xff]   ;;  %v4180_v52 = vld [vmem:[%s6076_s1 + $0x4c4] ss:$8 sps:$4 sm:$0xff]   ;;  %v4178_v53 = vld [vmem:[%s6076_s1 + $0x4c0] ss:$8 sps:$4 sm:$0xff]  }
 0x691   :  { %v1133_v61 = vpack.c.bf16 %v5147_v58, %v5145_v57  ;;  %v1134_v62 = vpack.c.bf16 %v5151_v60, %v5149_v59  ;;  %1669 = vmatprep.subr.bf16.mxu1 %v4159_v18  ;;  %v4183_v54 = vld [vmem:[%s6076_s1 + $0x4d4] ss:$8 sps:$4 sm:$0xff]   ;;  %v4181_v55 = vld [vmem:[%s6076_s1 + $0x4d0] ss:$8 sps:$4 sm:$0xff]   ;;  %v4186_v56 = vld [vmem:[%s6076_s1 + $0x4e4] ss:$8 sps:$4 sm:$0xff]  }
 0x692   :  { %v2114_v11 = vld [vmem:[%s6078_s2 + $0x2b8] sm:$0xff] }
 0x693   :  { %1361 = vmatprep.mubr.bf16.mxu0 %v1134_v62  ;;  %v4189_v62 = vld [vmem:[%s6076_s1 + $0x4f4] ss:$8 sps:$4 sm:$0xff]  }
 0x694   :  { %1362 = vmatmul.mubr.bf16.vlgmr.msra.gmra.mrb[8].mxu0 %v1133_v61  ;;  %1670 = vmatpush1.bf16.msra.mxu1 %v4157_v19  ;;  %v4184_v61 = vld [vmem:[%s6076_s1 + $0x4e0] ss:$8 sps:$4 sm:$0xff]   ;;  %v1442_v19 = vrot.slane %v3617_v12, %v4651_v63 }
 0x695   :  { %1671 = vmatprep.subr.bf16.mxu1 %v4162_v20  ;;  %v1446_v20 = vrot.slane %v3617_v12, %v4653_v0 }
 0x698   :  { %1672 = vmatpush1.bf16.msra.mxu1 %v4160_v21 }
 0x699   :  { %1673 = vmatprep.subr.bf16.mxu1 %v4165_v22 }
 0x69c   :  { %1674 = vmatpush1.bf16.msra.mxu1 %v4163_v13 }
 0x69d   :  { %1675 = vmatprep.subr.bf16.mxu1 %v4168_v23 }
 0x6a0   :  { %1676 = vmatpush1.bf16.msra.mxu1 %v4166_v24 }
 0x6a1   :  { %1677 = vmatprep.subr.bf16.mxu1 %v4171_v46 }
 0x6a4   :  { %1678 = vmatpush1.bf16.msra.mxu1 %v4169_v47 }
 0x6a5   :  { %1679 = vmatprep.subr.bf16.mxu1 %v4174_v48 }
 0x6a8   :  { %1680 = vmatpush1.bf16.msra.mxu1 %v4172_v49  ;;  %v2095_v49 = vld [vmem:[%s6078_s2 + $0x220] sm:$0xff] }
 0x6a9   :  { %1681 = vmatprep.subr.bf16.mxu1 %v4177_v50  ;;  %v2097_v50 = vld [vmem:[%s6078_s2 + $0x230] sm:$0xff] }
 0x6ac   :  { %1682 = vmatpush1.bf16.msra.mxu1 %v4175_v51  ;;  %v2100_v51 = vld [vmem:[%s6078_s2 + $0x248] sm:$0xff] }
 0x6ad   :  { %1683 = vmatprep.subr.bf16.mxu1 %v4180_v52  ;;  %v2102_v52 = vld [vmem:[%s6078_s2 + $0x258] sm:$0xff] }
 0x6b0   :  { %1684 = vmatpush1.bf16.msra.mxu1 %v4178_v53  ;;  %v3892_v53 = vpack.c.bf16 %v2097_v50, %v2095_v49  ;;  %v2138_v49 = vld [vmem:[%s6078_s2 + $0x378] sm:$0xff] }
 0x6b1   :  { %1685 = vmatprep.subr.bf16.mxu1 %v4183_v54  ;;  %v3894_v54 = vpack.c.bf16 %v2102_v52, %v2100_v51  ;;  %v2135_v52 = vld [vmem:[%s6078_s2 + $0x360] sm:$0xff] }
 0x6b4   :  { %1686 = vmatpush1.bf16.msra.mxu1 %v4181_v55  ;;  %v2099_v55 = vld [vmem:[%s6078_s2 + $0x240] sm:$0xff] }
 0x6b5   :  { %1687 = vmatprep.subr.bf16.mxu1 %v4186_v56  ;;  %v2101_v56 = vld [vmem:[%s6078_s2 + $0x250] sm:$0xff] }
 0x6b8   :  { %1688 = vmatpush1.bf16.msra.mxu1 %v4184_v61  ;;  %v2104_v61 = vld [vmem:[%s6078_s2 + $0x268] sm:$0xff] }
 0x6b9   :  { %1689 = vmatprep.subr.bf16.mxu1 %v4189_v62  ;;  %v2106_v62 = vld [vmem:[%s6078_s2 + $0x278] sm:$0xff] }
 0x767   :  { %v1363_v1 = vpop.f32.mrb[8].mxu0 }
 0x768   :  { %v1365_v2 = vpop.f32.mrb[9].mxu0 }
 0x769   :  { %v1367_v3 = vpop.f32.mrb[10].mxu0  ;;  %v1372_v6 = vadd.f32 %v1365_v2, %v1363_v1 }
 0x76a   :  { %v1369_v7 = vpop.f32.mrb[11].mxu0 }
 0x76b   :  { %1373 = vadd.xlane.f32.xlu0 %v1372_v6  ;;  %v1375_v8 = vadd.f32 %v1369_v7, %v1367_v3 }
 0x76d   :  { %1376 = vadd.xlane.f32.xlu1 %v1375_v8 }
 0x7f8   :  { %v1374_v26 = vpop.xlane.xlu0 %1373 }
 0x7f9   :  { %v1378_v29 = vmul.f32 0.0078125, %v1374_v26 }
 0x7fa   :  { %v1377_v30 = vpop.xlane.xlu1 %1376 }
 0x7fb   :  { %v1380_v31 = vsub.f32 %v1363_v1, %v1378_v29  ;;  %v1381_v32 = vsub.f32 %v1365_v2, %v1378_v29  ;;  %v1379_v33 = vmul.f32 0.0078125, %v1377_v30  ;;  %v4187_v1 = vld [vmem:[%s6076_s1 + $0x4f0] ss:$8 sps:$4 sm:$0xff]   ;;  %v2092_v2 = vld [vmem:[%s6078_s2 + $0x208] sm:$0xff] }
 0x7fc   :  { %1690 = vmatpush1.bf16.msra.mxu1 %v4187_v1  ;;  %v3898_v1 = vpack.c.bf16 %v2106_v62, %v2104_v61  ;;  %v2139_v62 = vld [vmem:[%s6078_s2 + $0x380] sm:$0xff] }
 0x7fd   :  { %v1395_v34 = vmul.f32 %v5215_v27, %v1380_v31  ;;  %v1396_v35 = vmul.f32 %v5218_v28, %v1381_v32  ;;  %v1382_v36 = vsub.f32 %v1367_v3, %v1379_v33  ;;  %v1383_v37 = vsub.f32 %v1369_v7, %v1379_v33  ;;  %v2094_v3 = vld [vmem:[%s6078_s2 + $0x218] sm:$0xff] }
 0x7fe   :  { %v3886_v6 = vpack.c.bf16 %v2094_v3, %v2092_v2  ;;  %v2103_v2 = vld [vmem:[%s6078_s2 + $0x260] sm:$0xff]  ;;  %v2105_v3 = vld [vmem:[%s6078_s2 + $0x270] sm:$0xff] }
 0x7ff   :  { %v1397_v38 = vmul.f32 %v5215_v27, %v1382_v36  ;;  %v1398_v39 = vmul.f32 %v5218_v28, %v1383_v37  ;;  %v1399_v40 = vmul.f32 %v1395_v34, %v1395_v34  ;;  %v1400_v41 = vmul.f32 %v1396_v35, %v1396_v35  ;;  %v2093_v37 = vld [vmem:[%s6078_s2 + $0x210] sm:$0xff] }
 0x800   :  { %3887 = vmatprep.subr.bf16.mxu1 %v3886_v6  ;;  %v2108_v6 = vld [vmem:[%s6078_s2 + $0x288] sm:$0xff] }
 0x801   :  { %v1403_v42 = vadd.f32 %v1400_v41, %v1399_v40  ;;  %v1401_v43 = vmul.f32 %v1397_v38, %v1397_v38  ;;  %v1402_v44 = vmul.f32 %v1398_v39, %v1398_v39  ;;  %v2098_v40 = vld [vmem:[%s6078_s2 + $0x238] sm:$0xff] }
 0x803   :  { %1404 = vadd.xlane.f32.xlu0 %v1403_v42  ;;  %v1406_v45 = vadd.f32 %v1402_v44, %v1401_v43 }
 0x805   :  { %1407 = vadd.xlane.f32.xlu1 %v1406_v45 }
 0x890   :  { %v1405_v7 = vpop.xlane.xlu0 %1404 }
 0x891   :  { %v1409_v8 = vmul.f32 0.0078125, %v1405_v7  ;;  %v2110_v7 = vld [vmem:[%s6078_s2 + $0x298] sm:$0xff] }
 0x892   :  { %v1408_v4 = vpop.xlane.xlu1 %1407 }
 0x893   :  { %v1411_v5 = vadd.f32 1e-05, %v1409_v8  ;;  %v1410_v9 = vmul.f32 0.0078125, %v1408_v4  ;;  %v3900_v8 = vpack.c.bf16 %v2105_v3, %v2103_v2  ;;  %v3902_v4 = vpack.c.bf16 %v2110_v7, %v2108_v6  ;;  %v2146_v2 = vld [vmem:[%s6078_s2 + $0x3b8] sm:$0xff]  ;;  %v2143_v7 = vld [vmem:[%s6078_s2 + $0x3a0] sm:$0xff] }
 0x895   :  { %4442 = vrsqrt.f32 %v1411_v5  ;;  %v1412_v10 = vadd.f32 1e-05, %v1410_v9  ;;  %v2107_v5 = vld [vmem:[%s6078_s2 + $0x280] sm:$0xff]  ;;  %v2109_v9 = vld [vmem:[%s6078_s2 + $0x290] sm:$0xff] }
 0x896   :  { %v3904_v12 = vpack.c.bf16 %v2109_v9, %v2107_v5  ;;  %v2150_v5 = vld [vmem:[%s6078_s2 + $0x3d8] sm:$0xff] }
 0x897   :  { %4444 = vrsqrt.f32 %v1412_v10  ;;  %v2112_v10 = vld [vmem:[%s6078_s2 + $0x2a8] sm:$0xff] }
 0x89f   :  { %v4443_v16 = vpop.eup %4442 }
 0x8a0   :  { %v1415_v17 = vmul.f32 %v4443_v16, %v1395_v34  ;;  %v1416_v18 = vmul.f32 %v4443_v16, %v1396_v35  ;;  %v2091_v34 = vld [vmem:[%s6078_s2 + $0x200] sm:$0xff]  ;;  %v2113_v16 = vld [vmem:[%s6078_s2 + $0x2b0] sm:$0xff] }
 0x8a1   :  { %v4445_v21 = vpop.eup %4444  ;;  %v3888_v46 = vpack.c.bf16 %v2093_v37, %v2091_v34  ;;  %v2125_v34 = vld [vmem:[%s6078_s2 + $0x310] sm:$0xff]  ;;  %v2130_v37 = vld [vmem:[%s6078_s2 + $0x338] sm:$0xff] }
 0x8a2   :  { %v1432_v22 = vmul.f32 %v1425_v14, %v1415_v17  ;;  %v1417_v13 = vmul.f32 %v4445_v21, %v1397_v38  ;;  %v1418_v23 = vmul.f32 %v4445_v21, %v1398_v39  ;;  %v1433_v24 = vmul.f32 %v1429_v15, %v1416_v18  ;;  %v2096_v39 = vld [vmem:[%s6078_s2 + $0x228] sm:$0xff]  ;;  %v2118_v18 = vld [vmem:[%s6078_s2 + $0x2d8] sm:$0xff]  ;;  %v2115_v21 = vld [vmem:[%s6078_s2 + $0x2c0] sm:$0xff] }
 0x8a3   :  { %v3890_v48 = vpack.c.bf16 %v2098_v40, %v2096_v39  ;;  %v2116_v17 = vld [vmem:[%s6078_s2 + $0x2c8] sm:$0xff]  ;;  %v2127_v40 = vld [vmem:[%s6078_s2 + $0x320] sm:$0xff] }
 0x8a4   :  { %v1434_v25 = vmul.f32 %v1425_v14, %v1417_v13  ;;  %v1435_v26 = vmul.f32 %v1429_v15, %v1418_v23  ;;  %v1449_v29 = vadd.f32 %v1442_v19, %v1432_v22  ;;  %v1450_v30 = vadd.f32 %v1446_v20, %v1433_v24  ;;  %v2111_v15 = vld [vmem:[%s6078_s2 + $0x2a0] sm:$0xff]  ;;  %v2117_v22 = vld [vmem:[%s6078_s2 + $0x2d0] sm:$0xff]  ;;  %v2120_v13 = vld [vmem:[%s6078_s2 + $0x2e8] sm:$0xff] }
 0x8a5   :  { %v3906_v14 = vpack.c.bf16 %v2114_v11, %v2112_v10  ;;  %v2122_v23 = vld [vmem:[%s6078_s2 + $0x2f8] sm:$0xff]  ;;  %v3912_v24 = vpack.c.bf16 %v2117_v22, %v2115_v21  ;;  %v2147_v11 = vld [vmem:[%s6078_s2 + $0x3c0] sm:$0xff] }
 0x8a6   :  { %v1451_v31 = vadd.f32 %v1442_v19, %v1434_v25  ;;  %v1452_v32 = vadd.f32 %v1446_v20, %v1435_v26  ;;  %v1458_v33 = vmul.f32 0.2, %v1450_v30  ;;  %vm1454_vm12 = vcmp.ge.f32.partialorder %v1450_v30, 0.0  ;;  %v2119_v26 = vld [vmem:[%s6078_s2 + $0x2e0] sm:$0xff] }
 0x8a7   :  { %v1457_v36 = vmul.f32 0.2, %v1449_v29  ;;  %vm1453_vm14 = vcmp.ge.f32.partialorder %v1449_v29, 0.0  ;;  %v3908_v19 = vpack.c.bf16 %v2113_v16, %v2111_v15  ;;  %v3910_v20 = vpack.c.bf16 %v2118_v18, %v2116_v17  ;;  %v2154_v15 = vld [vmem:[%s6078_s2 + $0x3f8] sm:$0xff]  ;;  %v2151_v18 = vld [vmem:[%s6078_s2 + $0x3e0] sm:$0xff] }
 0x8a8   :  { %vm1456_vm13 = vcmp.ge.f32.partialorder %v1452_v32, 0.0  ;;  %v1460_v35 = vmul.f32 0.2, %v1452_v32  ;;  %vm1455_vm15 = vcmp.ge.f32.partialorder %v1451_v31, 0.0  ;;  %v1459_v38 = vmul.f32 0.2, %v1451_v31 }
 0x8a9   :  { %v1462_v41 = vsel %vm1454_vm12, %v1450_v30, %v1458_v33  ;;  %v1461_v44 = vsel %vm1453_vm14, %v1449_v29, %v1457_v36  ;;  %v3914_v25 = vpack.c.bf16 %v2122_v23, %v2120_v13  ;;  %v2121_v29 = vld [vmem:[%s6078_s2 + $0x2f0] sm:$0xff]  ;;  %v2124_v30 = vld [vmem:[%s6078_s2 + $0x308] sm:$0xff]  ;;  %v2123_v36 = vld [vmem:[%s6078_s2 + $0x300] sm:$0xff] }
 0x8aa   :  { %v1464_v42 = vsel %vm1456_vm13, %v1452_v32, %v1460_v35  ;;  %v1463_v45 = vsel %vm1455_vm15, %v1451_v31, %v1459_v38  ;;  %v2126_v31 = vld [vmem:[%s6078_s2 + $0x318] sm:$0xff]  ;;  %v3916_v32 = vpack.c.bf16 %v2121_v29, %v2119_v26  ;;  %v2128_v35 = vld [vmem:[%s6078_s2 + $0x328] sm:$0xff]  ;;  %v3920_v38 = vpack.c.bf16 %v2125_v34, %v2123_v36 }
 0x8ab   :  { %v1466_v43 = vpack.c.bf16 %v1464_v42, %v1462_v41  ;;  %v1465_v47 = vpack.c.bf16 %v1463_v45, %v1461_v44  ;;  %v3918_v33 = vpack.c.bf16 %v2126_v31, %v2124_v30  ;;  %v3922_v39 = vpack.c.bf16 %v2130_v37, %v2128_v35  ;;  %v2129_v41 = vld [vmem:[%s6078_s2 + $0x330] sm:$0xff]  ;;  %v2132_v42 = vld [vmem:[%s6078_s2 + $0x348] sm:$0xff] }
 0x8ac   :  { %v3924_v44 = vpack.c.bf16 %v2129_v41, %v2127_v40  ;;  %v4190_v26 = vld [vmem:[%s6076_s1 + $0x500] ss:$8 sps:$4 sm:$0xff]   ;;  %v4198_v29 = vld [vmem:[%s6076_s1 + $0x524] ss:$8 sps:$4 sm:$0xff]   ;;  %v4201_v31 = vld [vmem:[%s6076_s1 + $0x534] ss:$8 sps:$4 sm:$0xff]  }
 0x8ad   :  { %1691 = vmatprep.mubr.bf16.mxu1 %v1466_v43  ;;  %v2134_v43 = vld [vmem:[%s6078_s2 + $0x358] sm:$0xff]  ;;  %v4196_v30 = vld [vmem:[%s6076_s1 + $0x520] ss:$8 sps:$4 sm:$0xff]   ;;  %v4210_v37 = vld [vmem:[%s6076_s1 + $0x564] ss:$8 sps:$4 sm:$0xff]  }
 0x8ae   :  { %1692 = vmatmul.mubr.bf16.vlgmr.msra.gmra.mrb[8].mxu1 %v1465_v47  ;;  %v3926_v45 = vpack.c.bf16 %v2134_v43, %v2132_v42  ;;  %v2133_v47 = vld [vmem:[%s6078_s2 + $0x350] sm:$0xff]  ;;  %v4202_v36 = vld [vmem:[%s6076_s1 + $0x540] ss:$8 sps:$4 sm:$0xff]   ;;  %v4216_v41 = vld [vmem:[%s6076_s1 + $0x584] ss:$8 sps:$4 sm:$0xff]  }
 0x8af   :  { %3889 = vmatpush1.bf16.msra.mxu1 %v3888_v46  ;;  %2219 = vmatprep.mubr.f32.mxu1 %v5149_v59  ;;  %v3896_v59 = vpack.c.bf16 %v2101_v56, %v2099_v55  ;;  %v2131_v46 = vld [vmem:[%s6078_s2 + $0x340] sm:$0xff]  ;;  %v2142_v55 = vld [vmem:[%s6078_s2 + $0x398] sm:$0xff] }
 0x8b0   :  { %3891 = vmatprep.subr.bf16.mxu1 %v3890_v48  ;;  %v2136_v48 = vld [vmem:[%s6078_s2 + $0x368] sm:$0xff]  ;;  %v3928_v50 = vpack.c.bf16 %v2133_v47, %v2131_v46  ;;  %v4207_v34 = vld [vmem:[%s6076_s1 + $0x554] ss:$8 sps:$4 sm:$0xff]   ;;  %v4205_v35 = vld [vmem:[%s6076_s1 + $0x550] ss:$8 sps:$4 sm:$0xff]  }
 0x8b1   :  { %v3930_v51 = vpack.c.bf16 %v2138_v49, %v2136_v48  ;;  %v4211_v40 = vld [vmem:[%s6076_s1 + $0x570] ss:$8 sps:$4 sm:$0xff]   ;;  %v4214_v42 = vld [vmem:[%s6076_s1 + $0x580] ss:$8 sps:$4 sm:$0xff]  }
 0x8b3   :  { %3893 = vmatpush1.bf16.msra.mxu1 %v3892_v53  ;;  %v2137_v53 = vld [vmem:[%s6078_s2 + $0x370] sm:$0xff] }
 0x8b4   :  { %3895 = vmatprep.subr.bf16.mxu1 %v3894_v54  ;;  %v2140_v54 = vld [vmem:[%s6078_s2 + $0x388] sm:$0xff]  ;;  %v3932_v56 = vpack.c.bf16 %v2137_v53, %v2135_v52 }
 0x8b5   :  { %v3934_v61 = vpack.c.bf16 %v2142_v55, %v2140_v54 }
 0x8b7   :  { %3897 = vmatpush1.bf16.msra.mxu1 %v3896_v59  ;;  %v2141_v59 = vld [vmem:[%s6078_s2 + $0x390] sm:$0xff] }
 0x8b8   :  { %3899 = vmatprep.subr.bf16.mxu1 %v3898_v1  ;;  %v2144_v1 = vld [vmem:[%s6078_s2 + $0x3a8] sm:$0xff]  ;;  %v3936_v3 = vpack.c.bf16 %v2141_v59, %v2139_v62 }
 0x8b9   :  { %v3938_v6 = vpack.c.bf16 %v2146_v2, %v2144_v1 }
 0x8bb   :  { %3901 = vmatpush1.bf16.msra.mxu1 %v3900_v8  ;;  %v2145_v8 = vld [vmem:[%s6078_s2 + $0x3b0] sm:$0xff] }
 0x8bc   :  { %3903 = vmatprep.subr.bf16.mxu1 %v3902_v4  ;;  %v2148_v4 = vld [vmem:[%s6078_s2 + $0x3c8] sm:$0xff]  ;;  %v3940_v9 = vpack.c.bf16 %v2145_v8, %v2143_v7  ;;  %v4219_v8 = vld [vmem:[%s6076_s1 + $0x594] ss:$8 sps:$4 sm:$0xff]  }
 0x8bd   :  { %v3942_v10 = vpack.c.bf16 %v2150_v5, %v2148_v4  ;;  %v4217_v4 = vld [vmem:[%s6076_s1 + $0x590] ss:$8 sps:$4 sm:$0xff]   ;;  %v4222_v5 = vld [vmem:[%s6076_s1 + $0x5a4] ss:$8 sps:$4 sm:$0xff]  }
 0x8bf   :  { %3905 = vmatpush1.bf16.msra.mxu1 %v3904_v12  ;;  %v2149_v12 = vld [vmem:[%s6078_s2 + $0x3d0] sm:$0xff] }
 0x8c0   :  { %3907 = vmatprep.subr.bf16.mxu1 %v3906_v14  ;;  %v2152_v14 = vld [vmem:[%s6078_s2 + $0x3e8] sm:$0xff]  ;;  %v3944_v16 = vpack.c.bf16 %v2149_v12, %v2147_v11  ;;  %v4223_v11 = vld [vmem:[%s6076_s1 + $0x5b0] ss:$8 sps:$4 sm:$0xff]  }
 0x8c1   :  { %v3946_v17 = vpack.c.bf16 %v2154_v15, %v2152_v14  ;;  %v4228_v12 = vld [vmem:[%s6076_s1 + $0x5c4] ss:$8 sps:$4 sm:$0xff]   ;;  %v4226_v14 = vld [vmem:[%s6076_s1 + $0x5c0] ss:$8 sps:$4 sm:$0xff]   ;;  %v4231_v15 = vld [vmem:[%s6076_s1 + $0x5d4] ss:$8 sps:$4 sm:$0xff]  }
 0x8c3   :  { %3909 = vmatpush1.bf16.msra.mxu1 %v3908_v19  ;;  %v2153_v19 = vld [vmem:[%s6078_s2 + $0x3f0] sm:$0xff] }
 0x8c4   :  { %3911 = vmatprep.subr.bf16.mxu1 %v3910_v20  ;;  %v3948_v20 = vpack.c.bf16 %v2153_v19, %v2151_v18  ;;  %v4234_v18 = vld [vmem:[%s6076_s1 + $0x5e4] ss:$8 sps:$4 sm:$0xff]   ;;  %v4237_v19 = vld [vmem:[%s6076_s1 + $0x5f4] ss:$8 sps:$4 sm:$0xff]  }
 0x8c7   :  { %3913 = vmatpush1.bf16.msra.mxu1 %v3912_v24 }
 0x8c8   :  { %3915 = vmatprep.subr.bf16.mxu1 %v3914_v25 }
 0x8cb   :  { %3917 = vmatpush1.bf16.msra.mxu1 %v3916_v32  ;;  %v4199_v32 = vld [vmem:[%s6076_s1 + $0x530] ss:$8 sps:$4 sm:$0xff]  }
 0x8cc   :  { %3919 = vmatprep.subr.bf16.mxu1 %v3918_v33  ;;  %v4204_v33 = vld [vmem:[%s6076_s1 + $0x544] ss:$8 sps:$4 sm:$0xff]  }
 0x8cf   :  { %3921 = vmatpush1.bf16.msra.mxu1 %v3920_v38  ;;  %v4208_v38 = vld [vmem:[%s6076_s1 + $0x560] ss:$8 sps:$4 sm:$0xff]  }
 0x8d0   :  { %3923 = vmatprep.subr.bf16.mxu1 %v3922_v39  ;;  %v4213_v39 = vld [vmem:[%s6076_s1 + $0x574] ss:$8 sps:$4 sm:$0xff]  }
 0x8d3   :  { %3925 = vmatpush1.bf16.msra.mxu1 %v3924_v44 }
 0x8d4   :  { %3927 = vmatprep.subr.bf16.mxu1 %v3926_v45 }
 0x8d7   :  { %3929 = vmatpush1.bf16.msra.mxu1 %v3928_v50 }
 0x8d8   :  { %3931 = vmatprep.subr.bf16.mxu1 %v3930_v51 }
 0x8db   :  { %3933 = vmatpush1.bf16.msra.mxu1 %v3932_v56 }
 0x8dc   :  { %3935 = vmatprep.subr.bf16.mxu1 %v3934_v61 }
 0x8df   :  { %3937 = vmatpush1.bf16.msra.mxu1 %v3936_v3 }
 0x8e0   :  { %3939 = vmatprep.subr.bf16.mxu1 %v3938_v6 }
 0x8e3   :  { %3941 = vmatpush1.bf16.msra.mxu1 %v3940_v9  ;;  %v4220_v9 = vld [vmem:[%s6076_s1 + $0x5a0] ss:$8 sps:$4 sm:$0xff]  }
 0x8e4   :  { %3943 = vmatprep.subr.bf16.mxu1 %v3942_v10  ;;  %v4225_v10 = vld [vmem:[%s6076_s1 + $0x5b4] ss:$8 sps:$4 sm:$0xff]  }
 0x8e7   :  { %3945 = vmatpush1.bf16.msra.mxu1 %v3944_v16  ;;  %v4229_v16 = vld [vmem:[%s6076_s1 + $0x5d0] ss:$8 sps:$4 sm:$0xff]  }
 0x8e8   :  { %3947 = vmatprep.subr.bf16.mxu1 %v3946_v17  ;;  %v4232_v17 = vld [vmem:[%s6076_s1 + $0x5e0] ss:$8 sps:$4 sm:$0xff]  }
 0x8eb   :  { %3949 = vmatpush1.bf16.msra.mxu1 %v3948_v20  ;;  %v4235_v20 = vld [vmem:[%s6076_s1 + $0x5f0] ss:$8 sps:$4 sm:$0xff]  }
 0x8ee   :  { %2220 = vmatmul.mubr.f32.vlgmr.msra.gmra.mrb[12].mxu1 %v5145_v57  ;;  %v4192_v57 = vld [vmem:[%s6076_s1 + $0x504] ss:$8 sps:$4 sm:$0xff]  }
 0x8ef   :  { %2225 = vmatprep.mubr.f32.mxu1 %v5151_v60  ;;  %1978 = vmatprep.subr.bf16.mxu0 %v4192_v57  ;;  %v4193_v60 = vld [vmem:[%s6076_s1 + $0x510] ss:$8 sps:$4 sm:$0xff]   ;;  %v3651_v57 = vld [vmem:[%s6078_s2 + $0x414] ss:$8 sm:$0x3] }
 0x8f0   :  { %1979 = vmatpush1.bf16.msra.mxu0 %v4190_v26  ;;  %v3650_v26 = vld [vmem:[%s6078_s2 + $0x413] ss:$8 sm:$0x3] }
 0x8f2   :  { %2226 = vmatmul.mubr.f32.gmra.mrb[14].mxu1 %v5147_v58  ;;  %v4195_v58 = vld [vmem:[%s6076_s1 + $0x514] ss:$8 sps:$4 sm:$0xff]  }
 0x8f3   :  { %1980 = vmatprep.subr.bf16.mxu0 %v4195_v58  ;;  %v1744_v58 = vrot.slane %v3650_v26, %v4651_v63 }
 0x8f4   :  { %1981 = vmatpush1.bf16.msra.mxu0 %v4193_v60  ;;  %v1748_v60 = vrot.slane %v3650_v26, %v4653_v0 }
 0x8f5   :  { %1982 = vmatprep.subr.bf16.mxu0 %v4198_v29 }
 0x8f8   :  { %1983 = vmatpush1.bf16.msra.mxu0 %v4196_v30 }
 0x8f9   :  { %1984 = vmatprep.subr.bf16.mxu0 %v4201_v31 }
 0x8fc   :  { %1985 = vmatpush1.bf16.msra.mxu0 %v4199_v32  ;;  %v1761_v32 = vrot.slane %v3651_v57, %v4651_v63 }
 0x8fd   :  { %1986 = vmatprep.subr.bf16.mxu0 %v4204_v33  ;;  %v1765_v33 = vrot.slane %v3651_v57, %v4653_v0 }
 0x900   :  { %1987 = vmatpush1.bf16.msra.mxu0 %v4202_v36 }
 0x901   :  { %1988 = vmatprep.subr.bf16.mxu0 %v4207_v34 }
 0x904   :  { %1989 = vmatpush1.bf16.msra.mxu0 %v4205_v35 }
 0x905   :  { %1990 = vmatprep.subr.bf16.mxu0 %v4210_v37 }
 0x908   :  { %1991 = vmatpush1.bf16.msra.mxu0 %v4208_v38 }
 0x909   :  { %1992 = vmatprep.subr.bf16.mxu0 %v4213_v39 }
 0x90c   :  { %1993 = vmatpush1.bf16.msra.mxu0 %v4211_v40 }
 0x90d   :  { %1994 = vmatprep.subr.bf16.mxu0 %v4216_v41 }
 0x910   :  { %1995 = vmatpush1.bf16.msra.mxu0 %v4214_v42 }
 0x911   :  { %1996 = vmatprep.subr.bf16.mxu0 %v4219_v8  ;;  %v4238_v8 = vld [vmem:[%s6076_s1 + $0x600] ss:$8 sps:$4 sm:$0xff]  }
 0x914   :  { %1997 = vmatpush1.bf16.msra.mxu0 %v4217_v4  ;;  %v4240_v4 = vld [vmem:[%s6076_s1 + $0x604] ss:$8 sps:$4 sm:$0xff]  }
 0x915   :  { %1998 = vmatprep.subr.bf16.mxu0 %v4222_v5  ;;  %v4243_v5 = vld [vmem:[%s6076_s1 + $0x614] ss:$8 sps:$4 sm:$0xff]  }
 0x918   :  { %1999 = vmatpush1.bf16.msra.mxu0 %v4220_v9  ;;  %v4241_v9 = vld [vmem:[%s6076_s1 + $0x610] ss:$8 sps:$4 sm:$0xff]  }
 0x919   :  { %2000 = vmatprep.subr.bf16.mxu0 %v4225_v10  ;;  %v4246_v10 = vld [vmem:[%s6076_s1 + $0x624] ss:$8 sps:$4 sm:$0xff]  }
 0x91c   :  { %2001 = vmatpush1.bf16.msra.mxu0 %v4223_v11  ;;  %v4244_v11 = vld [vmem:[%s6076_s1 + $0x620] ss:$8 sps:$4 sm:$0xff]  }
 0x91d   :  { %2002 = vmatprep.subr.bf16.mxu0 %v4228_v12  ;;  %v4249_v12 = vld [vmem:[%s6076_s1 + $0x634] ss:$8 sps:$4 sm:$0xff]  }
 0x920   :  { %2003 = vmatpush1.bf16.msra.mxu0 %v4226_v14  ;;  %v4247_v14 = vld [vmem:[%s6076_s1 + $0x630] ss:$8 sps:$4 sm:$0xff]  }
 0x921   :  { %2004 = vmatprep.subr.bf16.mxu0 %v4231_v15  ;;  %v4252_v15 = vld [vmem:[%s6076_s1 + $0x644] ss:$8 sps:$4 sm:$0xff]  }
 0x924   :  { %2005 = vmatpush1.bf16.msra.mxu0 %v4229_v16  ;;  %v4250_v16 = vld [vmem:[%s6076_s1 + $0x640] ss:$8 sps:$4 sm:$0xff]  }
 0x925   :  { %2006 = vmatprep.subr.bf16.mxu0 %v4234_v18  ;;  %v4253_v18 = vld [vmem:[%s6076_s1 + $0x650] ss:$8 sps:$4 sm:$0xff]  }
 0x928   :  { %2007 = vmatpush1.bf16.msra.mxu0 %v4232_v17  ;;  %v4255_v17 = vld [vmem:[%s6076_s1 + $0x654] ss:$8 sps:$4 sm:$0xff]  }
 0x929   :  { %2008 = vmatprep.subr.bf16.mxu0 %v4237_v19  ;;  %v4258_v19 = vld [vmem:[%s6076_s1 + $0x664] ss:$8 sps:$4 sm:$0xff]  }
 0x92c   :  { %2009 = vmatpush1.bf16.msra.mxu0 %v4235_v20  ;;  %v4256_v20 = vld [vmem:[%s6076_s1 + $0x660] ss:$8 sps:$4 sm:$0xff]  }
 0x92d   :  { %2444 = vmatprep.subr.bf16.mxu0 %v4240_v4 }
 0x981   :  { %v1693_v21 = vpop.f32.mrb[8].mxu1 }
 0x982   :  { %v1695_v22 = vpop.f32.mrb[9].mxu1 }
 0x983   :  { %v1697_v13 = vpop.f32.mrb[10].mxu1  ;;  %v1702_v23 = vadd.f32 %v1695_v22, %v1693_v21 }
 0x984   :  { %v1699_v24 = vpop.f32.mrb[11].mxu1 }
 0x985   :  { %1703 = vadd.xlane.f32.xlu0 %v1702_v23  ;;  %v1705_v25 = vadd.f32 %v1699_v24, %v1697_v13 }
 0x987   :  { %1706 = vadd.xlane.f32.xlu1 %v1705_v25 }
 0x9c1   :  { %v5526_v43 = vpop.f32.mrb[12].mxu1 }
 0x9c2   :  { %v5528_v44 = vpop.f32.mrb[13].mxu1 }
 0x9c5   :  { %v5530_v45 = vpop.f32.mrb[14].mxu1 }
 0x9c6   :  { %v5532_v46 = vpop.f32.mrb[15].mxu1 }
 0xa12   :  { %v1704_v47 = vpop.xlane.xlu0 %1703 }
 0xa13   :  { %v1708_v48 = vmul.f32 0.0078125, %v1704_v47 }
 0xa14   :  { %v1707_v49 = vpop.xlane.xlu1 %1706 }
 0xa15   :  { %v1710_v50 = vsub.f32 %v1693_v21, %v1708_v48  ;;  %v1711_v51 = vsub.f32 %v1695_v22, %v1708_v48  ;;  %v1709_v52 = vmul.f32 0.0078125, %v1707_v49 }
 0xa17   :  { %v1714_v53 = vmul.f32 %v1710_v50, %v5215_v27  ;;  %v1715_v54 = vmul.f32 %v1711_v51, %v5218_v28  ;;  %v1712_v55 = vsub.f32 %v1697_v13, %v1709_v52  ;;  %v1713_v56 = vsub.f32 %v1699_v24, %v1709_v52 }
 0xa19   :  { %v1716_v61 = vmul.f32 %v1712_v55, %v5215_v27  ;;  %v1717_v62 = vmul.f32 %v1713_v56, %v5218_v28  ;;  %v1718_v59 = vmul.f32 %v1714_v53, %v1714_v53  ;;  %v1719_v1 = vmul.f32 %v1715_v54, %v1715_v54 }
 0xa1b   :  { %v1722_v2 = vadd.f32 %v1719_v1, %v1718_v59  ;;  %v1720_v3 = vmul.f32 %v1716_v61, %v1716_v61  ;;  %v1721_v6 = vmul.f32 %v1717_v62, %v1717_v62 }
 0xa1d   :  { %1723 = vadd.xlane.f32.xlu0 %v1722_v2  ;;  %v1725_v7 = vadd.f32 %v1721_v6, %v1720_v3 }
 0xa1f   :  { %1726 = vadd.xlane.f32.xlu1 %v1725_v7 }
 0xaaa   :  { %v1724_v21 = vpop.xlane.xlu0 %1723 }
 0xaab   :  { %v1728_v22 = vmul.f32 0.0078125, %v1724_v21  ;;  %v4261_v21 = vld [vmem:[%s6076_s1 + $0x674] ss:$8 sps:$4 sm:$0xff]  }
 0xaac   :  { %v1727_v13 = vpop.xlane.xlu1 %1726 }
 0xaad   :  { %v1730_v23 = vadd.f32 1e-05, %v1728_v22  ;;  %v1729_v24 = vmul.f32 0.0078125, %v1727_v13  ;;  %v4259_v22 = vld [vmem:[%s6076_s1 + $0x670] ss:$8 sps:$4 sm:$0xff]  }
 0xaae   :  { %v4264_v13 = vld [vmem:[%s6076_s1 + $0x684] ss:$8 sps:$4 sm:$0xff]  }
 0xaaf   :  { %4446 = vrsqrt.f32 %v1730_v23  ;;  %v1731_v25 = vadd.f32 1e-05, %v1729_v24  ;;  %v4262_v23 = vld [vmem:[%s6076_s1 + $0x680] ss:$8 sps:$4 sm:$0xff]  }
 0xab1   :  { %4448 = vrsqrt.f32 %v1731_v25 }
 0xab9   :  { %v4447_v29 = vpop.eup %4446 }
 0xaba   :  { %v1734_v30 = vmul.f32 %v4447_v29, %v1714_v53  ;;  %v1735_v31 = vmul.f32 %v4447_v29, %v1715_v54 }
 0xabb   :  { %v4449_v36 = vpop.eup %4448 }
 0xabc   :  { %v1751_v34 = vmul.f32 %v1744_v58, %v1734_v30  ;;  %v1736_v35 = vmul.f32 %v4449_v36, %v1716_v61  ;;  %v1737_v37 = vmul.f32 %v4449_v36, %v1717_v62  ;;  %v1752_v38 = vmul.f32 %v1748_v60, %v1735_v31 }
 0xabe   :  { %v1753_v39 = vmul.f32 %v1744_v58, %v1736_v35  ;;  %v1754_v40 = vmul.f32 %v1748_v60, %v1737_v37  ;;  %v1769_v41 = vadd.f32 %v1765_v33, %v1752_v38  ;;  %v1768_v42 = vadd.f32 %v1761_v32, %v1751_v34 }
 0xac0   :  { %v1771_v47 = vadd.f32 %v1765_v33, %v1754_v40  ;;  %v1777_v48 = vmul.f32 0.2, %v1769_v41  ;;  %v1770_v49 = vadd.f32 %v1761_v32, %v1753_v39  ;;  %vm1773_vm0 = vcmp.ge.f32.partialorder %v1769_v41, 0.0 }
 0xac1   :  { %v1776_v50 = vmul.f32 0.2, %v1768_v42  ;;  %vm1772_vm2 = vcmp.ge.f32.partialorder %v1768_v42, 0.0 }
 0xac2   :  { %vm1775_vm1 = vcmp.ge.f32.partialorder %v1771_v47, 0.0  ;;  %v1779_v51 = vmul.f32 0.2, %v1771_v47  ;;  %vm1774_vm3 = vcmp.ge.f32.partialorder %v1770_v49, 0.0  ;;  %v1778_v52 = vmul.f32 0.2, %v1770_v49 }
 0xac3   :  { %v1781_v53 = vsel %vm1773_vm0, %v1769_v41, %v1777_v48  ;;  %v1780_v56 = vsel %vm1772_vm2, %v1768_v42, %v1776_v50  ;;  %v4267_v41 = vld [vmem:[%s6076_s1 + $0x694] ss:$8 sps:$4 sm:$0xff]   ;;  %v4265_v42 = vld [vmem:[%s6076_s1 + $0x690] ss:$8 sps:$4 sm:$0xff]   ;;  %v4274_v50 = vld [vmem:[%s6076_s1 + $0x6c0] ss:$8 sps:$4 sm:$0xff]  }
 0xac4   :  { %v1783_v54 = vsel %vm1775_vm1, %v1771_v47, %v1779_v51  ;;  %v1782_v61 = vsel %vm1774_vm3, %v1770_v49, %v1778_v52  ;;  %v4273_v47 = vld [vmem:[%s6076_s1 + $0x6b4] ss:$8 sps:$4 sm:$0xff]   ;;  %v4271_v48 = vld [vmem:[%s6076_s1 + $0x6b0] ss:$8 sps:$4 sm:$0xff]   ;;  %v4276_v49 = vld [vmem:[%s6076_s1 + $0x6c4] ss:$8 sps:$4 sm:$0xff]  }
 0xac5   :  { %v1785_v55 = vpack.c.bf16 %v1783_v54, %v1781_v53  ;;  %v1784_v62 = vpack.c.bf16 %v1782_v61, %v1780_v56  ;;  %v4279_v51 = vld [vmem:[%s6076_s1 + $0x6d4] ss:$8 sps:$4 sm:$0xff]   ;;  %v4277_v52 = vld [vmem:[%s6076_s1 + $0x6d0] ss:$8 sps:$4 sm:$0xff]   ;;  %v4282_v53 = vld [vmem:[%s6076_s1 + $0x6e4] ss:$8 sps:$4 sm:$0xff]  }
 0xac6   :  { %v4280_v54 = vld [vmem:[%s6076_s1 + $0x6e0] ss:$8 sps:$4 sm:$0xff]   ;;  %v4283_v56 = vld [vmem:[%s6076_s1 + $0x6f0] ss:$8 sps:$4 sm:$0xff]  }
 0xac7   :  { %2010 = vmatprep.mubr.bf16.mxu0 %v1785_v55  ;;  %v4285_v55 = vld [vmem:[%s6076_s1 + $0x6f4] ss:$8 sps:$4 sm:$0xff]  }
 0xac8   :  { %2011 = vmatmul.mubr.bf16.vlgmr.msra.gmra.mrb[12].mxu0 %v1784_v62 }
 0xac9   :  { %2445 = vmatpush1.bf16.msra.mxu0 %v4238_v8 }
 0xaca   :  { %2446 = vmatprep.subr.bf16.mxu0 %v4243_v5 }
 0xacd   :  { %2447 = vmatpush1.bf16.msra.mxu0 %v4241_v9 }
 0xace   :  { %2448 = vmatprep.subr.bf16.mxu0 %v4246_v10 }
 0xad1   :  { %2449 = vmatpush1.bf16.msra.mxu0 %v4244_v11 }
 0xad2   :  { %2450 = vmatprep.subr.bf16.mxu0 %v4249_v12 }
 0xad5   :  { %2451 = vmatpush1.bf16.msra.mxu0 %v4247_v14 }
 0xad6   :  { %2452 = vmatprep.subr.bf16.mxu0 %v4252_v15 }
 0xad9   :  { %2453 = vmatpush1.bf16.msra.mxu0 %v4250_v16 }
 0xada   :  { %2454 = vmatprep.subr.bf16.mxu0 %v4255_v17 }
 0xadd   :  { %2455 = vmatpush1.bf16.msra.mxu0 %v4253_v18 }
 0xade   :  { %2456 = vmatprep.subr.bf16.mxu0 %v4258_v19 }
 0xae1   :  { %2457 = vmatpush1.bf16.msra.mxu0 %v4256_v20 }
 0xae2   :  { %2458 = vmatprep.subr.bf16.mxu0 %v4261_v21 }
 0xae5   :  { %2459 = vmatpush1.bf16.msra.mxu0 %v4259_v22 }
 0xae6   :  { %2460 = vmatprep.subr.bf16.mxu0 %v4264_v13 }
 0xae9   :  { %2461 = vmatpush1.bf16.msra.mxu0 %v4262_v23 }
 0xaea   :  { %2462 = vmatprep.subr.bf16.mxu0 %v4267_v41  ;;  %v4291_v41 = vld [vmem:[%s6076_s1 + $0x714] ss:$8 sps:$4 sm:$0xff]  }
 0xaed   :  { %2463 = vmatpush1.bf16.msra.mxu0 %v4265_v42  ;;  %v4289_v42 = vld [vmem:[%s6076_s1 + $0x710] ss:$8 sps:$4 sm:$0xff]  }
 0xb9b   :  { %v2012_v59 = vpop.f32.mrb[12].mxu0 }
 0xb9c   :  { %v2014_v1 = vpop.f32.mrb[13].mxu0 }
 0xb9d   :  { %v2016_v2 = vpop.f32.mrb[14].mxu0  ;;  %v2021_v3 = vadd.f32 %v2014_v1, %v2012_v59 }
 0xb9e   :  { %v2018_v6 = vpop.f32.mrb[15].mxu0 }
 0xb9f   :  { %2022 = vadd.xlane.f32.xlu0 %v2021_v3  ;;  %v2024_v7 = vadd.f32 %v2018_v6, %v2016_v2 }
 0xba1   :  { %2025 = vadd.xlane.f32.xlu1 %v2024_v7  ;;  %v3685_v7 = vld [vmem:[%s6078_s2 + $0x416] ss:$8 sm:$0x3] }
 0xba2   :  { %v2080_v11 = vrot.slane %v3685_v7, %v4651_v63  ;;  %v2084_v12 = vrot.slane %v3685_v7, %v4653_v0 }
 0xc2c   :  { %v2023_v24 = vpop.xlane.xlu0 %2022 }
 0xc2d   :  { %v2027_v25 = vmul.f32 0.0078125, %v2023_v24 }
 0xc2e   :  { %v2026_v26 = vpop.xlane.xlu1 %2025 }
 0xc2f   :  { %v2029_v57 = vsub.f32 %v2012_v59, %v2027_v25  ;;  %v2030_v58 = vsub.f32 %v2014_v1, %v2027_v25  ;;  %v2028_v60 = vmul.f32 0.0078125, %v2026_v26 }
 0xc31   :  { %v2033_v29 = vmul.f32 %v2029_v57, %v5215_v27  ;;  %v2034_v30 = vmul.f32 %v2030_v58, %v5218_v28  ;;  %v2031_v31 = vsub.f32 %v2016_v2, %v2028_v60  ;;  %v2032_v32 = vsub.f32 %v2018_v6, %v2028_v60  ;;  %v3684_v6 = vld [vmem:[%s6078_s2 + $0x415] ss:$8 sm:$0x3] }
 0xc32   :  { %v2063_v8 = vrot.slane %v3684_v6, %v4651_v63  ;;  %v2067_v4 = vrot.slane %v3684_v6, %v4653_v0 }
 0xc33   :  { %v2035_v33 = vmul.f32 %v2031_v31, %v5215_v27  ;;  %v2036_v36 = vmul.f32 %v2032_v32, %v5218_v28  ;;  %v2037_v34 = vmul.f32 %v2033_v29, %v2033_v29  ;;  %v2038_v35 = vmul.f32 %v2034_v30, %v2034_v30  ;;  %v4270_v27 = vld [vmem:[%s6076_s1 + $0x6a4] ss:$8 sps:$4 sm:$0xff]   ;;  %v4268_v28 = vld [vmem:[%s6076_s1 + $0x6a0] ss:$8 sps:$4 sm:$0xff]  }
 0xc34   :  { %2464 = vmatprep.subr.bf16.mxu0 %v4270_v27  ;;  %v4294_v27 = vld [vmem:[%s6076_s1 + $0x724] ss:$8 sps:$4 sm:$0xff]  }
 0xc35   :  { %v2041_v37 = vadd.f32 %v2038_v35, %v2037_v34  ;;  %v2039_v38 = vmul.f32 %v2035_v33, %v2035_v33  ;;  %v2040_v39 = vmul.f32 %v2036_v36, %v2036_v36  ;;  %2465 = vmatpush1.bf16.msra.mxu0 %v4268_v28  ;;  %v4292_v28 = vld [vmem:[%s6076_s1 + $0x720] ss:$8 sps:$4 sm:$0xff]  }
 0xc36   :  { %2466 = vmatprep.subr.bf16.mxu0 %v4273_v47  ;;  %v4297_v47 = vld [vmem:[%s6076_s1 + $0x734] ss:$8 sps:$4 sm:$0xff]  }
 0xc37   :  { %2042 = vadd.xlane.f32.xlu0 %v2041_v37  ;;  %v2044_v40 = vadd.f32 %v2040_v39, %v2039_v38  ;;  %v4286_v39 = vld [vmem:[%s6076_s1 + $0x700] ss:$8 sps:$4 sm:$0xff]  }
 0xc39   :  { %2045 = vadd.xlane.f32.xlu1 %v2044_v40  ;;  %2467 = vmatpush1.bf16.msra.mxu0 %v4271_v48  ;;  %v4288_v40 = vld [vmem:[%s6076_s1 + $0x704] ss:$8 sps:$4 sm:$0xff]   ;;  %v4295_v48 = vld [vmem:[%s6076_s1 + $0x730] ss:$8 sps:$4 sm:$0xff]  }
 0xc3a   :  { %2468 = vmatprep.subr.bf16.mxu0 %v4276_v49  ;;  %2774 = vmatprep.subr.bf16.mxu1 %v4288_v40  ;;  %v4300_v49 = vld [vmem:[%s6076_s1 + $0x744] ss:$8 sps:$4 sm:$0xff]   ;;  %v3719_v40 = vld [vmem:[%s6078_s2 + $0x421] ss:$8 sm:$0x3] }
 0xc3b   :  { %2775 = vmatpush1.bf16.msra.mxu1 %v4286_v39 }
 0xc3c   :  { %2776 = vmatprep.subr.bf16.mxu1 %v4291_v41  ;;  %v3720_v41 = vld [vmem:[%s6078_s2 + $0x422] ss:$8 sm:$0x3] }
 0xc3d   :  { %2469 = vmatpush1.bf16.msra.mxu0 %v4274_v50  ;;  %v4298_v50 = vld [vmem:[%s6076_s1 + $0x740] ss:$8 sps:$4 sm:$0xff]  }
 0xc3e   :  { %2470 = vmatprep.subr.bf16.mxu0 %v4279_v51  ;;  %v4303_v51 = vld [vmem:[%s6076_s1 + $0x754] ss:$8 sps:$4 sm:$0xff]  }
 0xc3f   :  { %2777 = vmatpush1.bf16.msra.mxu1 %v4289_v42  ;;  %v2540_v42 = vrot.slane %v3719_v40, %v4651_v63 }
 0xc40   :  { %2778 = vmatprep.subr.bf16.mxu1 %v4294_v27  ;;  %v2544_v27 = vrot.slane %v3719_v40, %v4653_v0 }
 0xc41   :  { %2471 = vmatpush1.bf16.msra.mxu0 %v4277_v52  ;;  %v4301_v52 = vld [vmem:[%s6076_s1 + $0x750] ss:$8 sps:$4 sm:$0xff]  }
 0xc42   :  { %2472 = vmatprep.subr.bf16.mxu0 %v4282_v53  ;;  %v4306_v53 = vld [vmem:[%s6076_s1 + $0x764] ss:$8 sps:$4 sm:$0xff]  }
 0xc43   :  { %2779 = vmatpush1.bf16.msra.mxu1 %v4292_v28 }
 0xc44   :  { %2780 = vmatprep.subr.bf16.mxu1 %v4297_v47 }
 0xc45   :  { %2473 = vmatpush1.bf16.msra.mxu0 %v4280_v54  ;;  %v4304_v54 = vld [vmem:[%s6076_s1 + $0x760] ss:$8 sps:$4 sm:$0xff]  }
 0xc46   :  { %2474 = vmatprep.subr.bf16.mxu0 %v4285_v55  ;;  %v4309_v55 = vld [vmem:[%s6076_s1 + $0x774] ss:$8 sps:$4 sm:$0xff]  }
 0xc47   :  { %2781 = vmatpush1.bf16.msra.mxu1 %v4295_v48 }
 0xc48   :  { %2782 = vmatprep.subr.bf16.mxu1 %v4300_v49  ;;  %v2557_v49 = vrot.slane %v3720_v41, %v4651_v63 }
 0xc49   :  { %2475 = vmatpush1.bf16.msra.mxu0 %v4283_v56  ;;  %v4307_v56 = vld [vmem:[%s6076_s1 + $0x770] ss:$8 sps:$4 sm:$0xff]  }
 0xc4b   :  { %2783 = vmatpush1.bf16.msra.mxu1 %v4298_v50  ;;  %v2561_v50 = vrot.slane %v3720_v41, %v4653_v0 }
 0xc4c   :  { %2784 = vmatprep.subr.bf16.mxu1 %v4303_v51 }
 0xc4f   :  { %2785 = vmatpush1.bf16.msra.mxu1 %v4301_v52 }
 0xc50   :  { %2786 = vmatprep.subr.bf16.mxu1 %v4306_v53 }
 0xc53   :  { %2787 = vmatpush1.bf16.msra.mxu1 %v4304_v54 }
 0xc54   :  { %2788 = vmatprep.subr.bf16.mxu1 %v4309_v55 }
 0xc57   :  { %2789 = vmatpush1.bf16.msra.mxu1 %v4307_v56 }
 0xcc4   :  { %v2043_v61 = vpop.xlane.xlu0 %2042 }
 0xcc5   :  { %v2047_v62 = vmul.f32 0.0078125, %v2043_v61  ;;  %v4312_v61 = vld [vmem:[%s6076_s1 + $0x784] ss:$8 sps:$4 sm:$0xff]  }
 0xcc6   :  { %v2046_v59 = vpop.xlane.xlu1 %2045  ;;  %2790 = vmatprep.subr.bf16.mxu1 %v4312_v61 }
 0xcc7   :  { %v2049_v1 = vadd.f32 1e-05, %v2047_v62  ;;  %v2048_v2 = vmul.f32 0.0078125, %v2046_v59  ;;  %v4310_v62 = vld [vmem:[%s6076_s1 + $0x780] ss:$8 sps:$4 sm:$0xff]  }
 0xcc8   :  { %2791 = vmatpush1.bf16.msra.mxu1 %v4310_v62  ;;  %v3686_v59 = vld [vmem:[%s6078_s2 + $0x420] ss:$8 sm:$0x3] }
 0xcc9   :  { %4450 = vrsqrt.f32 %v2049_v1  ;;  %v2050_v3 = vadd.f32 1e-05, %v2048_v2  ;;  %v5774_v2 = vrot.slane %v3686_v59, %v4651_v63 }
 0xccb   :  { %4452 = vrsqrt.f32 %v2050_v3  ;;  %v5777_v3 = vrot.slane %v3686_v59, %v4653_v0 }
 0xcd3   :  { %v4451_v5 = vpop.eup %4450 }
 0xcd4   :  { %v2053_v9 = vmul.f32 %v4451_v5, %v2033_v29  ;;  %v2054_v10 = vmul.f32 %v4451_v5, %v2034_v30 }
 0xcd5   :  { %v4453_v14 = vpop.eup %4452 }
 0xcd6   :  { %v2070_v15 = vmul.f32 %v2063_v8, %v2053_v9  ;;  %v2055_v16 = vmul.f32 %v4453_v14, %v2035_v33  ;;  %v2056_v17 = vmul.f32 %v4453_v14, %v2036_v36  ;;  %v2071_v18 = vmul.f32 %v2067_v4, %v2054_v10 }
 0xcd8   :  { %v2072_v19 = vmul.f32 %v2063_v8, %v2055_v16  ;;  %v2073_v20 = vmul.f32 %v2067_v4, %v2056_v17  ;;  %v2088_v21 = vadd.f32 %v2084_v12, %v2071_v18  ;;  %v2087_v22 = vadd.f32 %v2080_v11, %v2070_v15 }
 0xcda   :  { %v2090_v13 = vadd.f32 %v2084_v12, %v2073_v20  ;;  %v2233_v23 = vadd.f32 %v5528_v44, %v2088_v21  ;;  %v2089_v24 = vadd.f32 %v2080_v11, %v2072_v19  ;;  %v2232_v25 = vadd.f32 %v5526_v43, %v2087_v22  ;;  %v4315_v22 = vld [vmem:[%s6076_s1 + $0x794] ss:$8 sps:$4 sm:$0xff]  }
 0xcdb   :  { %2792 = vmatprep.subr.bf16.mxu1 %v4315_v22  ;;  %v4334_v22 = vld [vmem:[%s6076_s1 + $0x800] ss:$8 sps:$4 sm:$0xff]  }
 0xcdc   :  { %v2235_v26 = vadd.f32 %v5532_v46, %v2090_v13  ;;  %v2241_v57 = vmul.f32 0.2, %v2233_v23  ;;  %v2234_v58 = vadd.f32 %v5530_v45, %v2089_v24  ;;  %vm2237_vm4 = vcmp.ge.f32.partialorder %v2233_v23, 0.0  ;;  %v4313_v13 = vld [vmem:[%s6076_s1 + $0x790] ss:$8 sps:$4 sm:$0xff]  }
 0xcdd   :  { %v2240_v60 = vmul.f32 0.2, %v2232_v25  ;;  %vm2236_vm6 = vcmp.ge.f32.partialorder %v2232_v25, 0.0  ;;  %2793 = vmatpush1.bf16.msra.mxu1 %v4313_v13  ;;  %v4316_v24 = vld [vmem:[%s6076_s1 + $0x7a0] ss:$8 sps:$4 sm:$0xff]  }
 0xcde   :  { %vm2239_vm5 = vcmp.ge.f32.partialorder %v2235_v26, 0.0  ;;  %v2243_v29 = vmul.f32 0.2, %v2235_v26  ;;  %vm2238_vm7 = vcmp.ge.f32.partialorder %v2234_v58, 0.0  ;;  %v2242_v30 = vmul.f32 0.2, %v2234_v58 }
 0xcdf   :  { %v5704_v31 = vsel %vm2237_vm4, %v2233_v23, %v2241_v57  ;;  %v5710_v43 = vsel %vm2236_vm6, %v2232_v25, %v2240_v60  ;;  %v4318_v23 = vld [vmem:[%s6076_s1 + $0x7a4] ss:$8 sps:$4 sm:$0xff]   ;;  %v4321_v25 = vld [vmem:[%s6076_s1 + $0x7b4] ss:$8 sps:$4 sm:$0xff]  }
 0xce0   :  { %v5706_v32 = vsel %vm2239_vm5, %v2235_v26, %v2243_v29  ;;  %v5712_v46 = vsel %vm2238_vm7, %v2234_v58, %v2242_v30  ;;  %2794 = vmatprep.subr.bf16.mxu1 %v4318_v23  ;;  %v4319_v26 = vld [vmem:[%s6076_s1 + $0x7b0] ss:$8 sps:$4 sm:$0xff]   ;;  %v4324_v57 = vld [vmem:[%s6076_s1 + $0x7c4] ss:$8 sps:$4 sm:$0xff]   ;;  %v4322_v58 = vld [vmem:[%s6076_s1 + $0x7c0] ss:$8 sps:$4 sm:$0xff]  }
 0xce1   :  { %v2249_v44 = vpack.c.bf16 %v5706_v32, %v5704_v31  ;;  %v2248_v45 = vpack.c.bf16 %v5712_v46, %v5710_v43  ;;  %2795 = vmatpush1.bf16.msra.mxu1 %v4316_v24  ;;  %v4327_v60 = vld [vmem:[%s6076_s1 + $0x7d4] ss:$8 sps:$4 sm:$0xff]   ;;  %v4325_v29 = vld [vmem:[%s6076_s1 + $0x7d0] ss:$8 sps:$4 sm:$0xff]   ;;  %v4328_v30 = vld [vmem:[%s6076_s1 + $0x7e0] ss:$8 sps:$4 sm:$0xff]  }
 0xce2   :  { %2796 = vmatprep.subr.bf16.mxu1 %v4321_v25  ;;  %v4336_v13 = vld [vmem:[%s6076_s1 + $0x804] ss:$8 sps:$4 sm:$0xff]   ;;  %v4339_v23 = vld [vmem:[%s6076_s1 + $0x814] ss:$8 sps:$4 sm:$0xff]   ;;  %v4337_v24 = vld [vmem:[%s6076_s1 + $0x810] ss:$8 sps:$4 sm:$0xff]  }
 0xce3   :  { %2476 = vmatprep.mubr.bf16.mxu0 %v2249_v44  ;;  %v4330_v44 = vld [vmem:[%s6076_s1 + $0x7e4] ss:$8 sps:$4 sm:$0xff]   ;;  %3093 = vmatprep.subr.bf16.mxu0 %v4336_v13 }
 0xce4   :  { %2477 = vmatmul.mubr.bf16.vlgmr.msra.gmra.mrb[16].mxu0 %v2248_v45  ;;  %v4333_v45 = vld [vmem:[%s6076_s1 + $0x7f4] ss:$8 sps:$4 sm:$0xff]   ;;  %v4342_v25 = vld [vmem:[%s6076_s1 + $0x824] ss:$8 sps:$4 sm:$0xff]  }
 0xce5   :  { %2797 = vmatpush1.bf16.msra.mxu1 %v4319_v26  ;;  %3094 = vmatpush1.bf16.msra.mxu0 %v4334_v22  ;;  %v4340_v26 = vld [vmem:[%s6076_s1 + $0x820] ss:$8 sps:$4 sm:$0xff]   ;;  %v3754_v13 = vld [vmem:[%s6078_s2 + $0x424] ss:$8 sm:$0x3] }
 0xce6   :  { %2798 = vmatprep.subr.bf16.mxu1 %v4324_v57  ;;  %3095 = vmatprep.subr.bf16.mxu0 %v4339_v23  ;;  %v4345_v57 = vld [vmem:[%s6076_s1 + $0x834] ss:$8 sps:$4 sm:$0xff]   ;;  %v3753_v22 = vld [vmem:[%s6078_s2 + $0x423] ss:$8 sm:$0x3] }
 0xce7   :  { %v2859_v23 = vrot.slane %v3753_v22, %v4651_v63 }
 0xce9   :  { %2799 = vmatpush1.bf16.msra.mxu1 %v4322_v58  ;;  %3096 = vmatpush1.bf16.msra.mxu0 %v4337_v24  ;;  %v4343_v58 = vld [vmem:[%s6076_s1 + $0x830] ss:$8 sps:$4 sm:$0xff]   ;;  %v2863_v24 = vrot.slane %v3753_v22, %v4653_v0 }
 0xcea   :  { %2800 = vmatprep.subr.bf16.mxu1 %v4327_v60  ;;  %3097 = vmatprep.subr.bf16.mxu0 %v4342_v25  ;;  %v4348_v60 = vld [vmem:[%s6076_s1 + $0x844] ss:$8 sps:$4 sm:$0xff]  }
 0xced   :  { %2801 = vmatpush1.bf16.msra.mxu1 %v4325_v29  ;;  %3098 = vmatpush1.bf16.msra.mxu0 %v4340_v26  ;;  %v4346_v29 = vld [vmem:[%s6076_s1 + $0x840] ss:$8 sps:$4 sm:$0xff]  }
 0xcee   :  { %2802 = vmatprep.subr.bf16.mxu1 %v4330_v44  ;;  %3099 = vmatprep.subr.bf16.mxu0 %v4345_v57  ;;  %v4349_v44 = vld [vmem:[%s6076_s1 + $0x850] ss:$8 sps:$4 sm:$0xff]  }
 0xcf1   :  { %2803 = vmatpush1.bf16.msra.mxu1 %v4328_v30  ;;  %3100 = vmatpush1.bf16.msra.mxu0 %v4343_v58  ;;  %v4351_v30 = vld [vmem:[%s6076_s1 + $0x854] ss:$8 sps:$4 sm:$0xff]   ;;  %v2876_v58 = vrot.slane %v3754_v13, %v4651_v63 }
 0xcf2   :  { %2804 = vmatprep.subr.bf16.mxu1 %v4333_v45  ;;  %3101 = vmatprep.subr.bf16.mxu0 %v4348_v60  ;;  %v4354_v45 = vld [vmem:[%s6076_s1 + $0x864] ss:$8 sps:$4 sm:$0xff]   ;;  %v2880_v60 = vrot.slane %v3754_v13, %v4653_v0 }
 0xcf5   :  { %3102 = vmatpush1.bf16.msra.mxu0 %v4346_v29 }
 0xcf6   :  { %3103 = vmatprep.subr.bf16.mxu0 %v4351_v30 }
 0xcf9   :  { %3104 = vmatpush1.bf16.msra.mxu0 %v4349_v44 }
 0xcfa   :  { %3105 = vmatprep.subr.bf16.mxu0 %v4354_v45 }
 0xdb7   :  { %v2478_v33 = vpop.f32.mrb[16].mxu0 }
 0xdb8   :  { %v2480_v36 = vpop.f32.mrb[17].mxu0 }
 0xdb9   :  { %v2482_v34 = vpop.f32.mrb[18].mxu0  ;;  %v2487_v35 = vadd.f32 %v2480_v36, %v2478_v33 }
 0xdba   :  { %v2484_v37 = vpop.f32.mrb[19].mxu0 }
 0xdbb   :  { %2488 = vadd.xlane.f32.xlu0 %v2487_v35  ;;  %v2490_v38 = vadd.f32 %v2484_v37, %v2482_v34 }
 0xdbd   :  { %2491 = vadd.xlane.f32.xlu1 %v2490_v38 }
 0xe48   :  { %v2489_v1 = vpop.xlane.xlu0 %2488 }
 0xe49   :  { %v2493_v6 = vmul.f32 0.0078125, %v2489_v1 }
 0xe4a   :  { %v2492_v7 = vpop.xlane.xlu1 %2491 }
 0xe4b   :  { %v2495_v8 = vsub.f32 %v2478_v33, %v2493_v6  ;;  %v2496_v4 = vsub.f32 %v2480_v36, %v2493_v6  ;;  %v2494_v5 = vmul.f32 0.0078125, %v2492_v7  ;;  %v4331_v33 = vld [vmem:[%s6076_s1 + $0x7f0] ss:$8 sps:$4 sm:$0xff]  }
 0xe4c   :  { %2805 = vmatpush1.bf16.msra.mxu1 %v4331_v33  ;;  %v4352_v33 = vld [vmem:[%s6076_s1 + $0x860] ss:$8 sps:$4 sm:$0xff]  }
 0xe4d   :  { %v2510_v9 = vmul.f32 %v5774_v2, %v2495_v8  ;;  %v2511_v10 = vmul.f32 %v5777_v3, %v2496_v4  ;;  %v2497_v11 = vsub.f32 %v2482_v34, %v2494_v5  ;;  %v2498_v12 = vsub.f32 %v2484_v37, %v2494_v5  ;;  %3106 = vmatpush1.bf16.msra.mxu0 %v4352_v33 }
 0xe4f   :  { %v2512_v14 = vmul.f32 %v5774_v2, %v2497_v11  ;;  %v2513_v15 = vmul.f32 %v5777_v3, %v2498_v12  ;;  %v2514_v16 = vmul.f32 %v2510_v9, %v2510_v9  ;;  %v2515_v17 = vmul.f32 %v2511_v10, %v2511_v10 }
 0xe51   :  { %v2518_v18 = vadd.f32 %v2515_v17, %v2514_v16  ;;  %v2516_v19 = vmul.f32 %v2512_v14, %v2512_v14  ;;  %v2517_v20 = vmul.f32 %v2513_v15, %v2513_v15 }
 0xe53   :  { %2519 = vadd.xlane.f32.xlu0 %v2518_v18  ;;  %v2521_v21 = vadd.f32 %v2517_v20, %v2516_v19 }
 0xe55   :  { %2522 = vadd.xlane.f32.xlu1 %v2521_v21 }
 0xee0   :  { %v2520_v36 = vpop.xlane.xlu0 %2519 }
 0xee1   :  { %v2524_v34 = vmul.f32 0.0078125, %v2520_v36  ;;  %v4357_v36 = vld [vmem:[%s6076_s1 + $0x874] ss:$8 sps:$4 sm:$0xff]  }
 0xee2   :  { %v2523_v35 = vpop.xlane.xlu1 %2522  ;;  %3107 = vmatprep.subr.bf16.mxu0 %v4357_v36 }
 0xee3   :  { %v2526_v37 = vadd.f32 1e-05, %v2524_v34  ;;  %v2525_v38 = vmul.f32 0.0078125, %v2523_v35  ;;  %v4355_v34 = vld [vmem:[%s6076_s1 + $0x870] ss:$8 sps:$4 sm:$0xff]  }
 0xee4   :  { %v4360_v35 = vld [vmem:[%s6076_s1 + $0x884] ss:$8 sps:$4 sm:$0xff]   ;;  %3108 = vmatpush1.bf16.msra.mxu0 %v4355_v34 }
 0xee5   :  { %4454 = vrsqrt.f32 %v2526_v37  ;;  %v2527_v39 = vadd.f32 1e-05, %v2525_v38  ;;  %v4358_v37 = vld [vmem:[%s6076_s1 + $0x880] ss:$8 sps:$4 sm:$0xff]   ;;  %3109 = vmatprep.subr.bf16.mxu0 %v4360_v35 }
 0xee7   :  { %4456 = vrsqrt.f32 %v2527_v39 }
 0xee8   :  { %3110 = vmatpush1.bf16.msra.mxu0 %v4358_v37 }
 0xeef   :  { %v4455_v28 = vpop.eup %4454 }
 0xef0   :  { %v2530_v47 = vmul.f32 %v4455_v28, %v2510_v9  ;;  %v2531_v48 = vmul.f32 %v4455_v28, %v2511_v10 }
 0xef1   :  { %v4457_v51 = vpop.eup %4456 }
 0xef2   :  { %v2547_v52 = vmul.f32 %v2540_v42, %v2530_v47  ;;  %v2532_v53 = vmul.f32 %v4457_v51, %v2512_v14  ;;  %v2533_v54 = vmul.f32 %v4457_v51, %v2513_v15  ;;  %v2548_v55 = vmul.f32 %v2544_v27, %v2531_v48 }
 0xef4   :  { %v2549_v56 = vmul.f32 %v2540_v42, %v2532_v53  ;;  %v2550_v61 = vmul.f32 %v2544_v27, %v2533_v54  ;;  %v2564_v62 = vadd.f32 %v2557_v49, %v2547_v52  ;;  %v2565_v59 = vadd.f32 %v2561_v50, %v2548_v55 }
 0xef6   :  { %v2566_v1 = vadd.f32 %v2557_v49, %v2549_v56  ;;  %v2567_v6 = vadd.f32 %v2561_v50, %v2550_v61  ;;  %v2573_v7 = vmul.f32 0.2, %v2565_v59  ;;  %vm2569_vm8 = vcmp.ge.f32.partialorder %v2565_v59, 0.0 }
 0xef7   :  { %v2572_v8 = vmul.f32 0.2, %v2564_v62  ;;  %vm2568_vm10 = vcmp.ge.f32.partialorder %v2564_v62, 0.0 }
 0xef8   :  { %vm2571_vm9 = vcmp.ge.f32.partialorder %v2567_v6, 0.0  ;;  %v2575_v4 = vmul.f32 0.2, %v2567_v6  ;;  %vm2570_vm11 = vcmp.ge.f32.partialorder %v2566_v1, 0.0  ;;  %v2574_v5 = vmul.f32 0.2, %v2566_v1 }
 0xef9   :  { %v2577_v9 = vsel %vm2569_vm8, %v2565_v59, %v2573_v7  ;;  %v2576_v12 = vsel %vm2568_vm10, %v2564_v62, %v2572_v8  ;;  %v4363_v62 = vld [vmem:[%s6076_s1 + $0x894] ss:$8 sps:$4 sm:$0xff]   ;;  %v4361_v59 = vld [vmem:[%s6076_s1 + $0x890] ss:$8 sps:$4 sm:$0xff]  }
 0xefa   :  { %v2579_v10 = vsel %vm2571_vm9, %v2567_v6, %v2575_v4  ;;  %v2578_v14 = vsel %vm2570_vm11, %v2566_v1, %v2574_v5  ;;  %3111 = vmatprep.subr.bf16.mxu0 %v4363_v62  ;;  %v4366_v1 = vld [vmem:[%s6076_s1 + $0x8a4] ss:$8 sps:$4 sm:$0xff]   ;;  %v4364_v6 = vld [vmem:[%s6076_s1 + $0x8a0] ss:$8 sps:$4 sm:$0xff]   ;;  %v4369_v7 = vld [vmem:[%s6076_s1 + $0x8b4] ss:$8 sps:$4 sm:$0xff]  }
 0xefb   :  { %v2581_v11 = vpack.c.bf16 %v2579_v10, %v2577_v9  ;;  %v2580_v15 = vpack.c.bf16 %v2578_v14, %v2576_v12  ;;  %3112 = vmatpush1.bf16.msra.mxu0 %v4361_v59  ;;  %v4367_v8 = vld [vmem:[%s6076_s1 + $0x8b0] ss:$8 sps:$4 sm:$0xff]   ;;  %v4372_v4 = vld [vmem:[%s6076_s1 + $0x8c4] ss:$8 sps:$4 sm:$0xff]   ;;  %v4370_v5 = vld [vmem:[%s6076_s1 + $0x8c0] ss:$8 sps:$4 sm:$0xff]  }
 0xefc   :  { %3113 = vmatprep.subr.bf16.mxu0 %v4366_v1  ;;  %v4375_v9 = vld [vmem:[%s6076_s1 + $0x8d4] ss:$8 sps:$4 sm:$0xff]   ;;  %v4373_v10 = vld [vmem:[%s6076_s1 + $0x8d0] ss:$8 sps:$4 sm:$0xff]   ;;  %v4378_v12 = vld [vmem:[%s6076_s1 + $0x8e4] ss:$8 sps:$4 sm:$0xff]  }
 0xefd   :  { %2806 = vmatprep.mubr.bf16.mxu1 %v2581_v11  ;;  %v4376_v11 = vld [vmem:[%s6076_s1 + $0x8e0] ss:$8 sps:$4 sm:$0xff]   ;;  %v4381_v14 = vld [vmem:[%s6076_s1 + $0x8f4] ss:$8 sps:$4 sm:$0xff]   ;;  %v4384_v59 = vld [vmem:[%s6076_s1 + $0x904] ss:$8 sps:$4 sm:$0xff]  }
 0xefe   :  { %2807 = vmatmul.mubr.bf16.vlgmr.msra.gmra.mrb[16].mxu1 %v2580_v15  ;;  %v4379_v15 = vld [vmem:[%s6076_s1 + $0x8f0] ss:$8 sps:$4 sm:$0xff]   ;;  %v4382_v62 = vld [vmem:[%s6076_s1 + $0x900] ss:$8 sps:$4 sm:$0xff]   ;;  %v4387_v1 = vld [vmem:[%s6076_s1 + $0x914] ss:$8 sps:$4 sm:$0xff]   ;;  %3429 = vmatprep.subr.bf16.mxu1 %v4384_v59 }
 0xeff   :  { %3114 = vmatpush1.bf16.msra.mxu0 %v4364_v6  ;;  %3430 = vmatpush1.bf16.msra.mxu1 %v4382_v62  ;;  %v4385_v6 = vld [vmem:[%s6076_s1 + $0x910] ss:$8 sps:$4 sm:$0xff]  }
 0xf00   :  { %3115 = vmatprep.subr.bf16.mxu0 %v4369_v7  ;;  %3431 = vmatprep.subr.bf16.mxu1 %v4387_v1  ;;  %v4390_v7 = vld [vmem:[%s6076_s1 + $0x924] ss:$8 sps:$4 sm:$0xff]  }
 0xf03   :  { %3116 = vmatpush1.bf16.msra.mxu0 %v4367_v8  ;;  %3432 = vmatpush1.bf16.msra.mxu1 %v4385_v6  ;;  %v4388_v8 = vld [vmem:[%s6076_s1 + $0x920] ss:$8 sps:$4 sm:$0xff]  }
 0xf04   :  { %3117 = vmatprep.subr.bf16.mxu0 %v4372_v4  ;;  %3433 = vmatprep.subr.bf16.mxu1 %v4390_v7  ;;  %v4393_v4 = vld [vmem:[%s6076_s1 + $0x934] ss:$8 sps:$4 sm:$0xff]  }
 0xf07   :  { %3118 = vmatpush1.bf16.msra.mxu0 %v4370_v5  ;;  %3434 = vmatpush1.bf16.msra.mxu1 %v4388_v8  ;;  %v4391_v5 = vld [vmem:[%s6076_s1 + $0x930] ss:$8 sps:$4 sm:$0xff]  }
 0xf08   :  { %3119 = vmatprep.subr.bf16.mxu0 %v4375_v9  ;;  %3435 = vmatprep.subr.bf16.mxu1 %v4393_v4  ;;  %v4396_v9 = vld [vmem:[%s6076_s1 + $0x944] ss:$8 sps:$4 sm:$0xff]  }
 0xf0b   :  { %3120 = vmatpush1.bf16.msra.mxu0 %v4373_v10  ;;  %3436 = vmatpush1.bf16.msra.mxu1 %v4391_v5  ;;  %v4394_v10 = vld [vmem:[%s6076_s1 + $0x940] ss:$8 sps:$4 sm:$0xff]  }
 0xf0c   :  { %3121 = vmatprep.subr.bf16.mxu0 %v4378_v12  ;;  %3437 = vmatprep.subr.bf16.mxu1 %v4396_v9  ;;  %v4397_v12 = vld [vmem:[%s6076_s1 + $0x950] ss:$8 sps:$4 sm:$0xff]  }
 0xf0f   :  { %3122 = vmatpush1.bf16.msra.mxu0 %v4376_v11  ;;  %v4399_v11 = vld [vmem:[%s6076_s1 + $0x954] ss:$8 sps:$4 sm:$0xff]   ;;  %3438 = vmatpush1.bf16.msra.mxu1 %v4394_v10 }
 0xf10   :  { %3123 = vmatprep.subr.bf16.mxu0 %v4381_v14  ;;  %3439 = vmatprep.subr.bf16.mxu1 %v4399_v11  ;;  %v4402_v14 = vld [vmem:[%s6076_s1 + $0x964] ss:$8 sps:$4 sm:$0xff]  }
 0xf13   :  { %3124 = vmatpush1.bf16.msra.mxu0 %v4379_v15  ;;  %3440 = vmatpush1.bf16.msra.mxu1 %v4397_v12  ;;  %v4400_v15 = vld [vmem:[%s6076_s1 + $0x960] ss:$8 sps:$4 sm:$0xff]  }
 0xf14   :  { %3441 = vmatprep.subr.bf16.mxu1 %v4402_v14 }
 0xf17   :  { %3442 = vmatpush1.bf16.msra.mxu1 %v4400_v15 }
 0xfd1   :  { %v2808_v16 = vpop.f32.mrb[16].mxu1 }
 0xfd2   :  { %v2810_v17 = vpop.f32.mrb[17].mxu1 }
 0xfd3   :  { %v2812_v18 = vpop.f32.mrb[18].mxu1  ;;  %v2817_v19 = vadd.f32 %v2810_v17, %v2808_v16 }
 0xfd4   :  { %v2814_v20 = vpop.f32.mrb[19].mxu1 }
 0xfd5   :  { %2818 = vadd.xlane.f32.xlu0 %v2817_v19  ;;  %v2820_v21 = vadd.f32 %v2814_v20, %v2812_v18 }
 0xfd7   :  { %2821 = vadd.xlane.f32.xlu1 %v2820_v21 }
0x1062   :  { %v2819_v38 = vpop.xlane.xlu0 %2818 }
0x1063   :  { %v2823_v39 = vmul.f32 0.0078125, %v2819_v38 }
0x1064   :  { %v2822_v40 = vpop.xlane.xlu1 %2821 }
0x1065   :  { %v2825_v41 = vsub.f32 %v2808_v16, %v2823_v39  ;;  %v2826_v42 = vsub.f32 %v2810_v17, %v2823_v39  ;;  %v2824_v27 = vmul.f32 0.0078125, %v2822_v40 }
0x1067   :  { %v2829_v28 = vmul.f32 %v2825_v41, %v5774_v2  ;;  %v2830_v47 = vmul.f32 %v2826_v42, %v5777_v3  ;;  %v2827_v48 = vsub.f32 %v2812_v18, %v2824_v27  ;;  %v2828_v49 = vsub.f32 %v2814_v20, %v2824_v27 }
0x1069   :  { %v2831_v50 = vmul.f32 %v2827_v48, %v5774_v2  ;;  %v2832_v51 = vmul.f32 %v2828_v49, %v5777_v3  ;;  %v2833_v52 = vmul.f32 %v2829_v28, %v2829_v28  ;;  %v2834_v53 = vmul.f32 %v2830_v47, %v2830_v47 }
0x106b   :  { %v2837_v54 = vadd.f32 %v2834_v53, %v2833_v52  ;;  %v2835_v55 = vmul.f32 %v2831_v50, %v2831_v50  ;;  %v2836_v56 = vmul.f32 %v2832_v51, %v2832_v51 }
0x106d   :  { %2838 = vadd.xlane.f32.xlu0 %v2837_v54  ;;  %v2840_v61 = vadd.f32 %v2836_v56, %v2835_v55 }
0x106f   :  { %2841 = vadd.xlane.f32.xlu1 %v2840_v61 }
0x10fa   :  { %v2839_v16 = vpop.xlane.xlu0 %2838 }
0x10fb   :  { %v2843_v17 = vmul.f32 0.0078125, %v2839_v16  ;;  %v4405_v16 = vld [vmem:[%s6076_s1 + $0x974] ss:$8 sps:$4 sm:$0xff]  }
0x10fc   :  { %v2842_v18 = vpop.xlane.xlu1 %2841  ;;  %3443 = vmatprep.subr.bf16.mxu1 %v4405_v16 }
0x10fd   :  { %v2845_v19 = vadd.f32 1e-05, %v2843_v17  ;;  %v2844_v20 = vmul.f32 0.0078125, %v2842_v18  ;;  %v4403_v17 = vld [vmem:[%s6076_s1 + $0x970] ss:$8 sps:$4 sm:$0xff]  }
0x10fe   :  { %v4408_v18 = vld [vmem:[%s6076_s1 + $0x984] ss:$8 sps:$4 sm:$0xff]   ;;  %3444 = vmatpush1.bf16.msra.mxu1 %v4403_v17 }
0x10ff   :  { %4458 = vrsqrt.f32 %v2845_v19  ;;  %v2846_v21 = vadd.f32 1e-05, %v2844_v20  ;;  %v4406_v19 = vld [vmem:[%s6076_s1 + $0x980] ss:$8 sps:$4 sm:$0xff]   ;;  %3445 = vmatprep.subr.bf16.mxu1 %v4408_v18 }
0x1101   :  { %4460 = vrsqrt.f32 %v2846_v21 }
0x1102   :  { %3446 = vmatpush1.bf16.msra.mxu1 %v4406_v19 }
0x1109   :  { %v4459_v25 = vpop.eup %4458 }
0x110a   :  { %v2849_v26 = vmul.f32 %v4459_v25, %v2829_v28  ;;  %v2850_v57 = vmul.f32 %v4459_v25, %v2830_v47 }
0x110b   :  { %v4461_v29 = vpop.eup %4460 }
0x110c   :  { %v2866_v30 = vmul.f32 %v2859_v23, %v2849_v26  ;;  %v2851_v44 = vmul.f32 %v4461_v29, %v2831_v50  ;;  %v2852_v45 = vmul.f32 %v4461_v29, %v2832_v51  ;;  %v2867_v33 = vmul.f32 %v2863_v24, %v2850_v57 }
0x110e   :  { %v2868_v36 = vmul.f32 %v2859_v23, %v2851_v44  ;;  %v2869_v34 = vmul.f32 %v2863_v24, %v2852_v45  ;;  %v2884_v35 = vadd.f32 %v2880_v60, %v2867_v33  ;;  %v2883_v37 = vadd.f32 %v2876_v58, %v2866_v30 }
0x1110   :  { %v2886_v38 = vadd.f32 %v2880_v60, %v2869_v34  ;;  %v2892_v39 = vmul.f32 0.2, %v2884_v35  ;;  %v2885_v40 = vadd.f32 %v2876_v58, %v2868_v36  ;;  %vm2888_vm12 = vcmp.ge.f32.partialorder %v2884_v35, 0.0 }
0x1111   :  { %v2891_v41 = vmul.f32 0.2, %v2883_v37  ;;  %vm2887_vm14 = vcmp.ge.f32.partialorder %v2883_v37, 0.0 }
0x1112   :  { %vm2890_vm13 = vcmp.ge.f32.partialorder %v2886_v38, 0.0  ;;  %v2894_v42 = vmul.f32 0.2, %v2886_v38  ;;  %vm2889_vm15 = vcmp.ge.f32.partialorder %v2885_v40, 0.0  ;;  %v2893_v27 = vmul.f32 0.2, %v2885_v40 }
0x1113   :  { %v2896_v28 = vsel %vm2888_vm12, %v2884_v35, %v2892_v39  ;;  %v2895_v49 = vsel %vm2887_vm14, %v2883_v37, %v2891_v41  ;;  %v4411_v35 = vld [vmem:[%s6076_s1 + $0x994] ss:$8 sps:$4 sm:$0xff]   ;;  %v4409_v37 = vld [vmem:[%s6076_s1 + $0x990] ss:$8 sps:$4 sm:$0xff]   ;;  %v4418_v41 = vld [vmem:[%s6076_s1 + $0x9c0] ss:$8 sps:$4 sm:$0xff]  }
0x1114   :  { %v2898_v47 = vsel %vm2890_vm13, %v2886_v38, %v2894_v42  ;;  %v2897_v50 = vsel %vm2889_vm15, %v2885_v40, %v2893_v27  ;;  %3447 = vmatprep.subr.bf16.mxu1 %v4411_v35  ;;  %v4417_v38 = vld [vmem:[%s6076_s1 + $0x9b4] ss:$8 sps:$4 sm:$0xff]   ;;  %v4415_v39 = vld [vmem:[%s6076_s1 + $0x9b0] ss:$8 sps:$4 sm:$0xff]   ;;  %v4420_v40 = vld [vmem:[%s6076_s1 + $0x9c4] ss:$8 sps:$4 sm:$0xff]  }
0x1115   :  { %v2900_v48 = vpack.c.bf16 %v2898_v47, %v2896_v28  ;;  %v2899_v51 = vpack.c.bf16 %v2897_v50, %v2895_v49  ;;  %3448 = vmatpush1.bf16.msra.mxu1 %v4409_v37  ;;  %v4423_v42 = vld [vmem:[%s6076_s1 + $0x9d4] ss:$8 sps:$4 sm:$0xff]   ;;  %v4421_v27 = vld [vmem:[%s6076_s1 + $0x9d0] ss:$8 sps:$4 sm:$0xff]   ;;  %v4426_v28 = vld [vmem:[%s6076_s1 + $0x9e4] ss:$8 sps:$4 sm:$0xff]  }
0x1116   :  { %v4424_v47 = vld [vmem:[%s6076_s1 + $0x9e0] ss:$8 sps:$4 sm:$0xff]   ;;  %v4427_v49 = vld [vmem:[%s6076_s1 + $0x9f0] ss:$8 sps:$4 sm:$0xff]  }
0x1117   :  { %3125 = vmatprep.mubr.bf16.mxu0 %v2900_v48  ;;  %v4429_v48 = vld [vmem:[%s6076_s1 + $0x9f4] ss:$8 sps:$4 sm:$0xff]  }
0x1118   :  { %3126 = vmatmul.mubr.bf16.vlgmr.msra.gmra.mrb[20].mxu0 %v2899_v51 }
0x11eb   :  { %v3127_v52 = vpop.f32.mrb[20].mxu0 }
0x11ec   :  { %v3129_v53 = vpop.f32.mrb[21].mxu0 }
0x11ed   :  { %v3131_v54 = vpop.f32.mrb[22].mxu0  ;;  %v3136_v55 = vadd.f32 %v3129_v53, %v3127_v52 }
0x11ee   :  { %v3133_v56 = vpop.f32.mrb[23].mxu0 }
0x11ef   :  { %v3139_v61 = vadd.f32 %v3133_v56, %v3131_v54  ;;  %3137 = vadd.xlane.f32.xlu0 %v3136_v55 }
0x11f1   :  { %3140 = vadd.xlane.f32.xlu1 %v3139_v61  ;;  %v3788_v61 = vld [vmem:[%s6078_s2 + $0x426] ss:$8 sm:$0x3] }
0x11f2   :  { %v3195_v8 = vrot.slane %v3788_v61, %v4651_v63  ;;  %v3199_v4 = vrot.slane %v3788_v61, %v4653_v0 }
0x127c   :  { %v3138_v20 = vpop.xlane.xlu0 %3137 }
0x127d   :  { %v3142_v21 = vmul.f32 0.0078125, %v3138_v20 }
0x127e   :  { %v3141_v22 = vpop.xlane.xlu1 %3140 }
0x127f   :  { %v3144_v13 = vsub.f32 %v3127_v52, %v3142_v21  ;;  %v3145_v23 = vsub.f32 %v3129_v53, %v3142_v21  ;;  %v3143_v24 = vmul.f32 0.0078125, %v3141_v22 }
0x1281   :  { %v3148_v25 = vmul.f32 %v3144_v13, %v5774_v2  ;;  %v3149_v26 = vmul.f32 %v3145_v23, %v5777_v3  ;;  %v3146_v57 = vsub.f32 %v3131_v54, %v3143_v24  ;;  %v3147_v58 = vsub.f32 %v3133_v56, %v3143_v24  ;;  %v3787_v56 = vld [vmem:[%s6078_s2 + $0x425] ss:$8 sm:$0x3] }
0x1282   :  { %v3178_v62 = vrot.slane %v3787_v56, %v4651_v63  ;;  %v3182_v59 = vrot.slane %v3787_v56, %v4653_v0 }
0x1283   :  { %v3150_v60 = vmul.f32 %v3146_v57, %v5774_v2  ;;  %v3151_v29 = vmul.f32 %v3147_v58, %v5777_v3  ;;  %v3152_v30 = vmul.f32 %v3148_v25, %v3148_v25  ;;  %v3153_v44 = vmul.f32 %v3149_v26, %v3149_v26  ;;  %v4414_v2 = vld [vmem:[%s6076_s1 + $0x9a4] ss:$8 sps:$4 sm:$0xff]   ;;  %v4412_v3 = vld [vmem:[%s6076_s1 + $0x9a0] ss:$8 sps:$4 sm:$0xff]  }
0x1284   :  { %3449 = vmatprep.subr.bf16.mxu1 %v4414_v2 }
0x1285   :  { %v3156_v45 = vadd.f32 %v3153_v44, %v3152_v30  ;;  %v3154_v33 = vmul.f32 %v3150_v60, %v3150_v60  ;;  %v3155_v36 = vmul.f32 %v3151_v29, %v3151_v29  ;;  %3450 = vmatpush1.bf16.msra.mxu1 %v4412_v3 }
0x1286   :  { %3451 = vmatprep.subr.bf16.mxu1 %v4417_v38 }
0x1287   :  { %3157 = vadd.xlane.f32.xlu0 %v3156_v45  ;;  %v3159_v34 = vadd.f32 %v3155_v36, %v3154_v33 }
0x1289   :  { %3160 = vadd.xlane.f32.xlu1 %v3159_v34  ;;  %3452 = vmatpush1.bf16.msra.mxu1 %v4415_v39 }
0x128a   :  { %3453 = vmatprep.subr.bf16.mxu1 %v4420_v40 }
0x128d   :  { %3454 = vmatpush1.bf16.msra.mxu1 %v4418_v41 }
0x128e   :  { %3455 = vmatprep.subr.bf16.mxu1 %v4423_v42 }
0x1291   :  { %3456 = vmatpush1.bf16.msra.mxu1 %v4421_v27 }
0x1292   :  { %3457 = vmatprep.subr.bf16.mxu1 %v4426_v28 }
0x1295   :  { %3458 = vmatpush1.bf16.msra.mxu1 %v4424_v47 }
0x1296   :  { %3459 = vmatprep.subr.bf16.mxu1 %v4429_v48 }
0x1299   :  { %3460 = vmatpush1.bf16.msra.mxu1 %v4427_v49 }
0x1314   :  { %v3158_v50 = vpop.xlane.xlu0 %3157 }
0x1315   :  { %v3162_v51 = vmul.f32 0.0078125, %v3158_v50 }
0x1316   :  { %v3161_v52 = vpop.xlane.xlu1 %3160 }
0x1317   :  { %v3164_v53 = vadd.f32 1e-05, %v3162_v51  ;;  %v3163_v54 = vmul.f32 0.0078125, %v3161_v52 }
0x1319   :  { %4462 = vrsqrt.f32 %v3164_v53  ;;  %v3165_v55 = vadd.f32 1e-05, %v3163_v54 }
0x131b   :  { %4464 = vrsqrt.f32 %v3165_v55 }
0x1323   :  { %v4463_v1 = vpop.eup %4462 }
0x1324   :  { %v3168_v6 = vmul.f32 %v4463_v1, %v3148_v25  ;;  %v3169_v7 = vmul.f32 %v4463_v1, %v3149_v26 }
0x1325   :  { %v4465_v5 = vpop.eup %4464 }
0x1326   :  { %v3185_v9 = vmul.f32 %v3178_v62, %v3168_v6  ;;  %v3170_v10 = vmul.f32 %v4465_v5, %v3150_v60  ;;  %v3171_v11 = vmul.f32 %v4465_v5, %v3151_v29  ;;  %v3186_v12 = vmul.f32 %v3182_v59, %v3169_v7 }
0x1328   :  { %v3187_v14 = vmul.f32 %v3178_v62, %v3170_v10  ;;  %v3188_v15 = vmul.f32 %v3182_v59, %v3171_v11  ;;  %v3203_v16 = vadd.f32 %v3199_v4, %v3186_v12  ;;  %v3202_v17 = vadd.f32 %v3195_v8, %v3185_v9 }
0x132a   :  { %v3205_v18 = vadd.f32 %v3199_v4, %v3188_v15  ;;  %v3207_v19 = vadd.f32 %v3203_v16, %v5704_v31  ;;  %v3204_v20 = vadd.f32 %v3195_v8, %v3187_v14  ;;  %v3206_v21 = vadd.f32 %v3202_v17, %v5710_v43 }
0x132c   :  { %v3209_v22 = vadd.f32 %v3205_v18, %v5706_v32  ;;  %v3215_v13 = vmul.f32 0.2, %v3207_v19  ;;  %v3208_v23 = vadd.f32 %v3204_v20, %v5712_v46  ;;  %vm3211_vm0 = vcmp.ge.f32.partialorder %v3207_v19, 0.0  ;;  %v3789_v32 = vld [vmem:[%s6078_s2 + $0x430] ss:$8 sm:$0x3] }
0x132d   :  { %v3214_v24 = vmul.f32 0.2, %v3206_v21  ;;  %vm3210_vm2 = vcmp.ge.f32.partialorder %v3206_v21, 0.0  ;;  %v3262_v43 = vrot.slane %v3789_v32, %v4651_v63  ;;  %v3266_v46 = vrot.slane %v3789_v32, %v4653_v0 }
0x132e   :  { %vm3213_vm1 = vcmp.ge.f32.partialorder %v3209_v22, 0.0  ;;  %v3217_v25 = vmul.f32 0.2, %v3209_v22  ;;  %vm3212_vm3 = vcmp.ge.f32.partialorder %v3208_v23, 0.0  ;;  %v3216_v26 = vmul.f32 0.2, %v3208_v23 }
0x132f   :  { %v3219_v57 = vsel %vm3211_vm0, %v3207_v19, %v3215_v13  ;;  %v3218_v29 = vsel %vm3210_vm2, %v3206_v21, %v3214_v24 }
0x1330   :  { %v3221_v58 = vsel %vm3213_vm1, %v3209_v22, %v3217_v25  ;;  %v3220_v31 = vsel %vm3212_vm3, %v3208_v23, %v3216_v26 }
0x1331   :  { %v3223_v60 = vpack.c.bf16 %v3221_v58, %v3219_v57  ;;  %v3222_v30 = vpack.c.bf16 %v3220_v31, %v3218_v29 }
0x1333   :  { %3461 = vmatprep.mubr.bf16.mxu1 %v3223_v60 }
0x1334   :  { %3462 = vmatmul.mubr.bf16.vlgmr.msra.gmra.mrb[20].mxu1 %v3222_v30 }
0x1407   :  { %v3463_v44 = vpop.f32.mrb[20].mxu1 }
0x1408   :  { %v3464_v45 = vadd.f32 %v3463_v44, %v3262_v43  ;;  %v3465_v33 = vpop.f32.mrb[21].mxu1 }
0x1409   :  { %v3466_v36 = vadd.f32 %v3465_v33, %v3266_v46  ;;  %v3467_v34 = vpop.f32.mrb[22].mxu1 }
0x140a   :  { %3472 = vst [vmem:[%s6079_s3] sm:$0xff] %v3464_v45  ;;  %v3468_v35 = vadd.f32 %v3467_v34, %v3262_v43  ;;  %v3469_v37 = vpop.f32.mrb[23].mxu1 }
0x140b   :  { %3473 = vst [vmem:[%s6079_s3 + $0x8] sm:$0xff] %v3466_v36  ;;  %v3470_v2 = vadd.f32 %v3469_v37, %v3266_v46 }
0x140c   :  { %3474 = vst [vmem:[%s6079_s3 + $0x10] sm:$0xff] %v3468_v35 }
0x140d   :  { %3475 = vst [vmem:[%s6079_s3 + $0x18] sm:$0xff] %v3470_v2 }

</bundles_post_ra>
